<compile_context>
chip_gen: v6e
topology: v6e:2x2x1
jax: 0.10.0
libtpu: 0.0.40
codegen_flags: <defaults>
</compile_context>

<pallas_src>
import functools

import jax
import jax.numpy as jnp
from jax.experimental import pallas as pl
from jax.experimental.pallas import tpu as pltpu

# ---------------- model hyper-params (small, consistent with the module) -----
CORPUS_SIZE = 50
CORPUS_PAD = 64              # padded corpus rows for aligned one-hot matmul
EMBED_DIM = 16
HIDDEN = 32
NUM_LAYERS = 2
NUM_DIRECTIONS = 2           # bidirectional=True
OUTPUT_DIM = 5
BATCH = 2
SEQ = 8
B_PAD = 8                    # batch padded to one full sublane tile


# ---------------- fused GRUNet kernel -----------------------------------------
def _grunet_kernel(T, Bp, H,
                   ids_ref,
                   gxw0_ref, gxb0_ref, whh0_ref, bhhn0_ref,
                   w1t_ref, w1b_ref, gxb1_ref, whh1_ref, bhhn1_ref,
                   fw1t_ref, fw1b_ref, fb1_ref, fw2_ref, fb2_ref,
                   o_ref):
    f32 = jnp.float32
    H2 = 2 * H
    TB = T * Bp
    C = gxw0_ref.shape[1]          # padded corpus size (64)

    def cell(h, gx_t, whh, bhhn_b):
        # One fused-gate MXU push per step; gates split by static lane slices.
        gh = jnp.dot(h, whh, preferred_element_type=f32)            # (Bp, 3H)
        rz = jax.nn.sigmoid(gx_t[:, :H2] + gh[:, :H2])              # fused r|z
        r, z = rz[:, :H], rz[:, H:]
        n = jnp.tanh(gx_t[:, H2:] + r * (gh[:, H2:] + bhhn_b))
        return (1.0 - z) * n + z * h

    def cell_h0(gx_t, bhhn_b):
        # First step from h0 = 0: h @ W_hh == 0 and z*h == 0 -> no matmul.
        rz = jax.nn.sigmoid(gx_t[:, :H2])
        r, z = rz[:, :H], rz[:, H:]
        n = jnp.tanh(gx_t[:, H2:] + r * bhhn_b)
        return (1.0 - z) * n

    def run_recurrence(gx, whh, bhhn, reverse):
        # gx: (T*Bp, 3H) hoisted input projection (b_ih + b_hh[r,z] folded in).
        bhhn_b = jnp.broadcast_to(bhhn, (Bp, H))     # hoisted once / direction
        order = list(range(T - 1, -1, -1)) if reverse else list(range(T))
        outs = [None] * T
        t0 = order[0]
        h = cell_h0(gx[t0 * Bp:(t0 + 1) * Bp, :], bhhn_b)
        outs[t0] = h
        for t in order[1:]:                          # fully unrolled (T=8)
            h = cell(h, gx[t * Bp:(t + 1) * Bp, :], whh, bhhn_b)
            outs[t] = h
        return outs

    # ---- fused embedding lookup + layer-0 input projection --------------------
    ids = ids_ref[...]                                               # (TB,1) i32
    onehot = jnp.where(
        ids == jax.lax.broadcasted_iota(jnp.int32, (TB, C), 1), 1.0, 0.0
    ).astype(f32)                                                    # (TB, C)
    gx0f = jnp.dot(onehot, gxw0_ref[0], preferred_element_type=f32) + gxb0_ref[0]
    gx0r = jnp.dot(onehot, gxw0_ref[1], preferred_element_type=f32) + gxb0_ref[1]

    # ---- layer 0: forward + reverse (independent 96-lane streams) -------------
    outs_f = run_recurrence(gx0f, whh0_ref[0], bhhn0_ref[0], reverse=False)
    outs_r = run_recurrence(gx0r, whh0_ref[1], bhhn0_ref[1], reverse=True)

    # Layer-1 input kept as separate fwd/rev slabs (W_ih of layer 1 is pre-split
    # into top/bottom halves, so no per-step lane concatenation is needed).
    hf_flat = jnp.concatenate(outs_f, axis=0)                        # (TB, H)
    hr_flat = jnp.concatenate(outs_r, axis=0)                        # (TB, H)

    # ---- layer 1 forward: full recurrence, only the last state is consumed ----
    gx1f = (jnp.dot(hf_flat, w1t_ref[0], preferred_element_type=f32)
            + jnp.dot(hr_flat, w1b_ref[0], preferred_element_type=f32)
            + gxb1_ref[0])
    h1f = run_recurrence(gx1f, whh1_ref[0], bhhn1_ref[0], reverse=False)[T - 1]

    # ---- layer 1 reverse: y[:, -1, H:] is a single cell step from h0 = 0 ------
    gx1r = (jnp.dot(outs_f[T - 1], w1t_ref[1], preferred_element_type=f32)
            + jnp.dot(outs_r[T - 1], w1b_ref[1], preferred_element_type=f32)
            + gxb1_ref[1])
    h1r = cell_h0(gx1r, jnp.broadcast_to(bhhn1_ref[1], (Bp, H)))

    # ---- FC head: Linear -> ReLU -> Linear (fw1 pre-split, single final store)
    hfc = (jnp.dot(h1f, fw1t_ref[...], preferred_element_type=f32)
           + jnp.dot(h1r, fw1b_ref[...], preferred_element_type=f32)
           + fb1_ref[...])
    hfc = jnp.maximum(hfc, 0.0)
    o_ref[...] = jnp.dot(hfc, fw2_ref[...], preferred_element_type=f32) + fb2_ref[...]


def grunet_pallas(ids_col, gxw0, gxb0, whh0, bhhn0,
                  w1t, w1b, gxb1, whh1, bhhn1,
                  fw1t, fw1b, fb1, fw2, fb2, *, T, Bp):
    vmem = pl.BlockSpec(memory_space=pltpu.MemorySpace.VMEM)
    kernel = functools.partial(_grunet_kernel, T, Bp, HIDDEN)
    return pl.pallas_call(
        kernel,
        out_shape=jax.ShapeDtypeStruct((Bp, OUTPUT_DIM), jnp.float32),
        in_specs=[vmem] * 15,
        out_specs=vmem,
    )(ids_col, gxw0, gxb0, whh0, bhhn0,
      w1t, w1b, gxb1, whh1, bhhn1,
      fw1t, fw1b, fb1, fw2, fb2)


# ---------------- full forward (jitted; params already packed) -----------------
def grunet_forward(token_ids, packed):
    B, T = token_ids.shape
    # Pad batch to a full sublane tile; padded rows use token 0 and are dropped.
    ids = jnp.zeros((B_PAD, T), jnp.int32).at[:B, :].set(token_ids)
    ids_col = ids.T.reshape(T * B_PAD, 1)        # t-major rows, matches gx layout
    out = grunet_pallas(ids_col, *packed, T=T, Bp=B_PAD)
    return out[:B]


# ---------------- one-time offline parameter packing ---------------------------
def pack_params(params):
    """Pack raw (torch-layout-transposed) params into kernel-ready arrays.

    Done once at setup time (NOT inside the jitted forward): gate-fused weights,
    embedding @ W_ih folding for layer 0, b_hh[r,z] folded into the input-side
    bias, and top/bottom splits of layer-1 / FC input weights.
    """
    f32 = jnp.float32
    H = HIDDEN
    emb = params["embedding"].astype(f32)                        # (C, E)
    emb_pad = jnp.zeros((CORPUS_PAD, emb.shape[1]), f32).at[:CORPUS_SIZE].set(emb)

    def fold_layer0(dir_params):
        w_ih, w_hh, b_ih, b_hh = [p.astype(f32) for p in dir_params]
        gxw = emb_pad @ w_ih                                     # (C_pad, 3H)
        gxb = b_ih.at[:, :2 * H].add(b_hh[:, :2 * H])            # fold b_hh[r,z]
        return gxw, gxb, w_hh, b_hh[:, 2 * H:]

    def fold_layer1(dir_params):
        w_ih, w_hh, b_ih, b_hh = [p.astype(f32) for p in dir_params]
        gxb = b_ih.at[:, :2 * H].add(b_hh[:, :2 * H])
        return w_ih[:H], w_ih[H:], gxb, w_hh, b_hh[:, 2 * H:]

    l0 = [fold_layer0(params["gru"][0][d]) for d in range(NUM_DIRECTIONS)]
    l1 = [fold_layer1(params["gru"][1][d]) for d in range(NUM_DIRECTIONS)]
    gxw0, gxb0, whh0, bhhn0 = (jnp.stack([l0[d][i] for d in range(2)]) for i in range(4))
    w1t, w1b, gxb1, whh1, bhhn1 = (jnp.stack([l1[d][i] for d in range(2)]) for i in range(5))

    fw1, fb1, fw2, fb2 = [p.astype(f32) for p in params["fc"]]
    fw1t, fw1b = fw1[:H], fw1[H:]
    return (gxw0, gxb0, whh0, bhhn0,
            w1t, w1b, gxb1, whh1, bhhn1,
            fw1t, fw1b, fb1, fw2, fb2)


# ---------------- pure-JAX reference (for correctness check) ------------------
def _gru_layer_ref(x_tbi, w_ih, w_hh, b_ih, b_hh, reverse):
    H = w_hh.shape[0]
    xs = x_tbi[::-1] if reverse else x_tbi

    def step(h, x_t):
        gx = x_t @ w_ih + b_ih
        gh = h @ w_hh + b_hh
        r = jax.nn.sigmoid(gx[:, :H] + gh[:, :H])
        z = jax.nn.sigmoid(gx[:, H:2 * H] + gh[:, H:2 * H])
        n = jnp.tanh(gx[:, 2 * H:] + r * gh[:, 2 * H:])
        h_new = (1.0 - z) * n + z * h
        return h_new, h_new

    h0 = jnp.zeros((x_tbi.shape[1], H), jnp.float32)
    _, outs = jax.lax.scan(step, h0, xs)
    return outs[::-1] if reverse else outs


def grunet_forward_ref(token_ids, params):
    emb = jnp.take(params["embedding"], token_ids, axis=0)
    x = jnp.transpose(emb, (1, 0, 2)).astype(jnp.float32)
    layer_in = x
    for layer in range(NUM_LAYERS):
        outs = [
            _gru_layer_ref(layer_in, *params["gru"][layer][d], reverse=bool(d))
            for d in range(NUM_DIRECTIONS)
        ]
        layer_in = jnp.concatenate(outs, axis=-1)
    last = layer_in[-1]
    w1, b1, w2, b2 = params["fc"]
    h = jnp.maximum(last @ w1 + b1, 0.0)
    return h @ w2 + b2


# ---------------- deterministic parameter construction -------------------------
def build_params(key):
    keys = jax.random.split(key, 64)
    ki = iter(keys)

    def unif(k, shape, bound):
        return jax.random.uniform(k, shape, jnp.float32, -bound, bound)

    params = {}
    # nn.Embedding: N(0, 1)
    params["embedding"] = jax.random.normal(next(ki), (CORPUS_SIZE, EMBED_DIM), jnp.float32)

    # nn.GRU: weights/biases ~ U(-1/sqrt(H), 1/sqrt(H)); gate order (r, z, n).
    kgru = 1.0 / (HIDDEN ** 0.5)
    gru = []
    for layer in range(NUM_LAYERS):
        in_dim = EMBED_DIM if layer == 0 else HIDDEN * NUM_DIRECTIONS
        dirs = []
        for _ in range(NUM_DIRECTIONS):
            w_ih = unif(next(ki), (in_dim, 3 * HIDDEN), kgru)   # transposed vs torch
            w_hh = unif(next(ki), (HIDDEN, 3 * HIDDEN), kgru)
            b_ih = unif(next(ki), (1, 3 * HIDDEN), kgru)
            b_hh = unif(next(ki), (1, 3 * HIDDEN), kgru)
            dirs.append((w_ih, w_hh, b_ih, b_hh))
        gru.append(dirs)
    params["gru"] = gru

    # fc = Linear(2H, H) -> ReLU -> Linear(H, 5), U(-1/sqrt(fan_in), ...)
    k1 = 1.0 / ((HIDDEN * NUM_DIRECTIONS) ** 0.5)
    k2 = 1.0 / (HIDDEN ** 0.5)
    params["fc"] = (
        unif(next(ki), (HIDDEN * NUM_DIRECTIONS, HIDDEN), k1),
        unif(next(ki), (1, HIDDEN), k1),
        unif(next(ki), (HIDDEN, OUTPUT_DIM), k2),
        unif(next(ki), (1, OUTPUT_DIM), k2),
    )
    return params


if __name__ == "__main__":
    root = jax.random.PRNGKey(0)
    k_tok, k_par = jax.random.split(root)

    token_ids = jax.random.randint(k_tok, (BATCH, SEQ), 0, CORPUS_SIZE, jnp.int32)
    params = build_params(k_par)

    # TODO(synk): nn.GRU inter-layer dropout (p=0.1) applies only in training
    # mode; this kernel implements inference (eval) semantics.
    packed = pack_params(params)          # one-time offline packing (not per call)

    out = jax.jit(grunet_forward)(token_ids, packed)
    out = jax.block_until_ready(out)
    assert out.shape == (BATCH, OUTPUT_DIM), out.shape

    ref = jax.jit(grunet_forward_ref)(token_ids, params)
    ref = jax.block_until_ready(ref)
    # Tolerance tightened vs previous (1e-2); kept above 1e-4 to allow for the
    # reference's default (reduced-precision) XLA f32 matmuls + reassociation.
    assert jnp.allclose(out, ref, atol=2e-3, rtol=2e-3), (out, ref)

    print("KERNEL_OK")
</pallas_src>

<mosaic_0001>
module attributes {stable_mosaic.version = 11 : i64} {
  func.func @_grunet_kernel(%arg0: memref<64x1xi32, #tpu.memory_space<vmem>>, %arg1: memref<2x64x96xf32, #tpu.memory_space<vmem>>, %arg2: memref<2x1x96xf32, #tpu.memory_space<vmem>>, %arg3: memref<2x32x96xf32, #tpu.memory_space<vmem>>, %arg4: memref<2x1x32xf32, #tpu.memory_space<vmem>>, %arg5: memref<2x32x96xf32, #tpu.memory_space<vmem>>, %arg6: memref<2x32x96xf32, #tpu.memory_space<vmem>>, %arg7: memref<2x1x96xf32, #tpu.memory_space<vmem>>, %arg8: memref<2x32x96xf32, #tpu.memory_space<vmem>>, %arg9: memref<2x1x32xf32, #tpu.memory_space<vmem>>, %arg10: memref<32x32xf32, #tpu.memory_space<vmem>>, %arg11: memref<32x32xf32, #tpu.memory_space<vmem>>, %arg12: memref<1x32xf32, #tpu.memory_space<vmem>>, %arg13: memref<32x5xf32, #tpu.memory_space<vmem>>, %arg14: memref<1x5xf32, #tpu.memory_space<vmem>>, %arg15: memref<8x5xf32, #tpu.memory_space<vmem>>) attributes {dimension_semantics = [], scalar_prefetch = 0 : i64, scratch_operands = 0 : i64, tpu.core_type = #tpu.core_type<tc>} {
    %c0 = arith.constant 0 : index
    %c0_0 = arith.constant 0 : index
    %0 = vector.load %arg0[%c0, %c0_0] : memref<64x1xi32, #tpu.memory_space<vmem>>, vector<64x1xi32>
    %1 = tpu.iota {dimensions = array<i32: 1>} : vector<64x64xi32>
    %2 = vector.broadcast %0 : vector<64x1xi32> to vector<64x64xi32>
    %3 = arith.cmpi eq, %2, %1 : vector<64x64xi32>
    %cst = arith.constant 1.000000e+00 : f32
    %cst_1 = arith.constant 0.000000e+00 : f32
    %4 = vector.broadcast %cst : f32 to vector<64x64xf32>
    %5 = vector.broadcast %cst_1 : f32 to vector<64x64xf32>
    %6 = arith.select %3, %4, %5 : vector<64x64xi1>, vector<64x64xf32>
    %c0_2 = arith.constant 0 : index
    %c0_3 = arith.constant 0 : index
    %c0_4 = arith.constant 0 : index
    %7 = vector.load %arg1[%c0_2, %c0_3, %c0_4] : memref<2x64x96xf32, #tpu.memory_space<vmem>>, vector<1x64x96xf32>
    %8 = vector.shape_cast %7 : vector<1x64x96xf32> to vector<64x96xf32>
    %cst_5 = arith.constant dense<0.000000e+00> : vector<64x96xf32>
    %9 = tpu.matmul %6, %8, %cst_5 {dimension_numbers = #tpu.dot_dimension_numbers<[1], [0], [0], [1], [0, 0, 1, 1], [], []>} : vector<64x64xf32>, vector<64x96xf32>, vector<64x96xf32> -> vector<64x96xf32>
    %c0_6 = arith.constant 0 : index
    %c0_7 = arith.constant 0 : index
    %c0_8 = arith.constant 0 : index
    %10 = vector.load %arg2[%c0_6, %c0_7, %c0_8] : memref<2x1x96xf32, #tpu.memory_space<vmem>>, vector<1x1x96xf32>
    %11 = vector.shape_cast %10 : vector<1x1x96xf32> to vector<1x96xf32>
    %12 = vector.broadcast %11 : vector<1x96xf32> to vector<64x96xf32>
    %13 = arith.addf %9, %12 : vector<64x96xf32>
    %c1 = arith.constant 1 : index
    %c0_9 = arith.constant 0 : index
    %c0_10 = arith.constant 0 : index
    %14 = vector.load %arg1[%c1, %c0_9, %c0_10] : memref<2x64x96xf32, #tpu.memory_space<vmem>>, vector<1x64x96xf32>
    %15 = vector.shape_cast %14 : vector<1x64x96xf32> to vector<64x96xf32>
    %cst_11 = arith.constant dense<0.000000e+00> : vector<64x96xf32>
    %16 = tpu.matmul %6, %15, %cst_11 {dimension_numbers = #tpu.dot_dimension_numbers<[1], [0], [0], [1], [0, 0, 1, 1], [], []>} : vector<64x64xf32>, vector<64x96xf32>, vector<64x96xf32> -> vector<64x96xf32>
    %c1_12 = arith.constant 1 : index
    %c0_13 = arith.constant 0 : index
    %c0_14 = arith.constant 0 : index
    %17 = vector.load %arg2[%c1_12, %c0_13, %c0_14] : memref<2x1x96xf32, #tpu.memory_space<vmem>>, vector<1x1x96xf32>
    %18 = vector.shape_cast %17 : vector<1x1x96xf32> to vector<1x96xf32>
    %19 = vector.broadcast %18 : vector<1x96xf32> to vector<64x96xf32>
    %20 = arith.addf %16, %19 : vector<64x96xf32>
    %c0_15 = arith.constant 0 : index
    %c0_16 = arith.constant 0 : index
    %c0_17 = arith.constant 0 : index
    %21 = vector.load %arg3[%c0_15, %c0_16, %c0_17] : memref<2x32x96xf32, #tpu.memory_space<vmem>>, vector<1x32x96xf32>
    %22 = vector.shape_cast %21 : vector<1x32x96xf32> to vector<32x96xf32>
    %c0_18 = arith.constant 0 : index
    %c0_19 = arith.constant 0 : index
    %c0_20 = arith.constant 0 : index
    %23 = vector.load %arg4[%c0_18, %c0_19, %c0_20] : memref<2x1x32xf32, #tpu.memory_space<vmem>>, vector<1x1x32xf32>
    %24 = vector.shape_cast %23 : vector<1x1x32xf32> to vector<1x32xf32>
    %25 = vector.shape_cast %24 : vector<1x32xf32> to vector<1x32xf32>
    %26 = vector.broadcast %25 : vector<1x32xf32> to vector<8x32xf32>
    %27 = vector.extract_strided_slice %13 {offsets = [0, 0], sizes = [8, 96], strides = [1, 1]} : vector<64x96xf32> to vector<8x96xf32>
    %28 = vector.extract_strided_slice %27 {offsets = [0, 0], sizes = [8, 64], strides = [1, 1]} : vector<8x96xf32> to vector<8x64xf32>
    %29 = arith.negf %28 : vector<8x64xf32>
    %30 = math.exp %29 : vector<8x64xf32>
    %cst_21 = arith.constant 1.000000e+00 : f32
    %31 = vector.broadcast %cst_21 : f32 to vector<8x64xf32>
    %32 = arith.addf %31, %30 : vector<8x64xf32>
    %33 = arith.divf %31, %32 : vector<8x64xf32>
    %34 = vector.extract_strided_slice %33 {offsets = [0, 0], sizes = [8, 32], strides = [1, 1]} : vector<8x64xf32> to vector<8x32xf32>
    %35 = vector.extract_strided_slice %33 {offsets = [0, 32], sizes = [8, 32], strides = [1, 1]} : vector<8x64xf32> to vector<8x32xf32>
    %36 = vector.extract_strided_slice %27 {offsets = [0, 64], sizes = [8, 32], strides = [1, 1]} : vector<8x96xf32> to vector<8x32xf32>
    %37 = arith.mulf %34, %26 : vector<8x32xf32>
    %38 = arith.addf %36, %37 : vector<8x32xf32>
    %39 = math.tanh %38 : vector<8x32xf32>
    %cst_22 = arith.constant 1.000000e+00 : f32
    %40 = vector.broadcast %cst_22 : f32 to vector<8x32xf32>
    %41 = arith.subf %40, %35 : vector<8x32xf32>
    %42 = arith.mulf %41, %39 : vector<8x32xf32>
    %43 = vector.extract_strided_slice %13 {offsets = [8, 0], sizes = [8, 96], strides = [1, 1]} : vector<64x96xf32> to vector<8x96xf32>
    %cst_23 = arith.constant dense<0.000000e+00> : vector<8x96xf32>
    %44 = tpu.matmul %42, %22, %cst_23 {dimension_numbers = #tpu.dot_dimension_numbers<[1], [0], [0], [1], [0, 0, 1, 1], [], []>} : vector<8x32xf32>, vector<32x96xf32>, vector<8x96xf32> -> vector<8x96xf32>
    %45 = vector.extract_strided_slice %43 {offsets = [0, 0], sizes = [8, 64], strides = [1, 1]} : vector<8x96xf32> to vector<8x64xf32>
    %46 = vector.extract_strided_slice %44 {offsets = [0, 0], sizes = [8, 64], strides = [1, 1]} : vector<8x96xf32> to vector<8x64xf32>
    %47 = arith.addf %45, %46 : vector<8x64xf32>
    %48 = arith.negf %47 : vector<8x64xf32>
    %49 = math.exp %48 : vector<8x64xf32>
    %cst_24 = arith.constant 1.000000e+00 : f32
    %50 = vector.broadcast %cst_24 : f32 to vector<8x64xf32>
    %51 = arith.addf %50, %49 : vector<8x64xf32>
    %52 = arith.divf %50, %51 : vector<8x64xf32>
    %53 = vector.extract_strided_slice %52 {offsets = [0, 0], sizes = [8, 32], strides = [1, 1]} : vector<8x64xf32> to vector<8x32xf32>
    %54 = vector.extract_strided_slice %52 {offsets = [0, 32], sizes = [8, 32], strides = [1, 1]} : vector<8x64xf32> to vector<8x32xf32>
    %55 = vector.extract_strided_slice %43 {offsets = [0, 64], sizes = [8, 32], strides = [1, 1]} : vector<8x96xf32> to vector<8x32xf32>
    %56 = vector.extract_strided_slice %44 {offsets = [0, 64], sizes = [8, 32], strides = [1, 1]} : vector<8x96xf32> to vector<8x32xf32>
    %57 = arith.addf %56, %26 : vector<8x32xf32>
    %58 = arith.mulf %53, %57 : vector<8x32xf32>
    %59 = arith.addf %55, %58 : vector<8x32xf32>
    %60 = math.tanh %59 : vector<8x32xf32>
    %cst_25 = arith.constant 1.000000e+00 : f32
    %61 = vector.broadcast %cst_25 : f32 to vector<8x32xf32>
    %62 = arith.subf %61, %54 : vector<8x32xf32>
    %63 = arith.mulf %62, %60 : vector<8x32xf32>
    %64 = arith.mulf %54, %42 : vector<8x32xf32>
    %65 = arith.addf %63, %64 : vector<8x32xf32>
    %66 = vector.extract_strided_slice %13 {offsets = [16, 0], sizes = [8, 96], strides = [1, 1]} : vector<64x96xf32> to vector<8x96xf32>
    %cst_26 = arith.constant dense<0.000000e+00> : vector<8x96xf32>
    %67 = tpu.matmul %65, %22, %cst_26 {dimension_numbers = #tpu.dot_dimension_numbers<[1], [0], [0], [1], [0, 0, 1, 1], [], []>} : vector<8x32xf32>, vector<32x96xf32>, vector<8x96xf32> -> vector<8x96xf32>
    %68 = vector.extract_strided_slice %66 {offsets = [0, 0], sizes = [8, 64], strides = [1, 1]} : vector<8x96xf32> to vector<8x64xf32>
    %69 = vector.extract_strided_slice %67 {offsets = [0, 0], sizes = [8, 64], strides = [1, 1]} : vector<8x96xf32> to vector<8x64xf32>
    %70 = arith.addf %68, %69 : vector<8x64xf32>
    %71 = arith.negf %70 : vector<8x64xf32>
    %72 = math.exp %71 : vector<8x64xf32>
    %cst_27 = arith.constant 1.000000e+00 : f32
    %73 = vector.broadcast %cst_27 : f32 to vector<8x64xf32>
    %74 = arith.addf %73, %72 : vector<8x64xf32>
    %75 = arith.divf %73, %74 : vector<8x64xf32>
    %76 = vector.extract_strided_slice %75 {offsets = [0, 0], sizes = [8, 32], strides = [1, 1]} : vector<8x64xf32> to vector<8x32xf32>
    %77 = vector.extract_strided_slice %75 {offsets = [0, 32], sizes = [8, 32], strides = [1, 1]} : vector<8x64xf32> to vector<8x32xf32>
    %78 = vector.extract_strided_slice %66 {offsets = [0, 64], sizes = [8, 32], strides = [1, 1]} : vector<8x96xf32> to vector<8x32xf32>
    %79 = vector.extract_strided_slice %67 {offsets = [0, 64], sizes = [8, 32], strides = [1, 1]} : vector<8x96xf32> to vector<8x32xf32>
    %80 = arith.addf %79, %26 : vector<8x32xf32>
    %81 = arith.mulf %76, %80 : vector<8x32xf32>
    %82 = arith.addf %78, %81 : vector<8x32xf32>
    %83 = math.tanh %82 : vector<8x32xf32>
    %cst_28 = arith.constant 1.000000e+00 : f32
    %84 = vector.broadcast %cst_28 : f32 to vector<8x32xf32>
    %85 = arith.subf %84, %77 : vector<8x32xf32>
    %86 = arith.mulf %85, %83 : vector<8x32xf32>
    %87 = arith.mulf %77, %65 : vector<8x32xf32>
    %88 = arith.addf %86, %87 : vector<8x32xf32>
    %89 = vector.extract_strided_slice %13 {offsets = [24, 0], sizes = [8, 96], strides = [1, 1]} : vector<64x96xf32> to vector<8x96xf32>
    %cst_29 = arith.constant dense<0.000000e+00> : vector<8x96xf32>
    %90 = tpu.matmul %88, %22, %cst_29 {dimension_numbers = #tpu.dot_dimension_numbers<[1], [0], [0], [1], [0, 0, 1, 1], [], []>} : vector<8x32xf32>, vector<32x96xf32>, vector<8x96xf32> -> vector<8x96xf32>
    %91 = vector.extract_strided_slice %89 {offsets = [0, 0], sizes = [8, 64], strides = [1, 1]} : vector<8x96xf32> to vector<8x64xf32>
    %92 = vector.extract_strided_slice %90 {offsets = [0, 0], sizes = [8, 64], strides = [1, 1]} : vector<8x96xf32> to vector<8x64xf32>
    %93 = arith.addf %91, %92 : vector<8x64xf32>
    %94 = arith.negf %93 : vector<8x64xf32>
    %95 = math.exp %94 : vector<8x64xf32>
    %cst_30 = arith.constant 1.000000e+00 : f32
    %96 = vector.broadcast %cst_30 : f32 to vector<8x64xf32>
    %97 = arith.addf %96, %95 : vector<8x64xf32>
    %98 = arith.divf %96, %97 : vector<8x64xf32>
    %99 = vector.extract_strided_slice %98 {offsets = [0, 0], sizes = [8, 32], strides = [1, 1]} : vector<8x64xf32> to vector<8x32xf32>
    %100 = vector.extract_strided_slice %98 {offsets = [0, 32], sizes = [8, 32], strides = [1, 1]} : vector<8x64xf32> to vector<8x32xf32>
    %101 = vector.extract_strided_slice %89 {offsets = [0, 64], sizes = [8, 32], strides = [1, 1]} : vector<8x96xf32> to vector<8x32xf32>
    %102 = vector.extract_strided_slice %90 {offsets = [0, 64], sizes = [8, 32], strides = [1, 1]} : vector<8x96xf32> to vector<8x32xf32>
    %103 = arith.addf %102, %26 : vector<8x32xf32>
    %104 = arith.mulf %99, %103 : vector<8x32xf32>
    %105 = arith.addf %101, %104 : vector<8x32xf32>
    %106 = math.tanh %105 : vector<8x32xf32>
    %cst_31 = arith.constant 1.000000e+00 : f32
    %107 = vector.broadcast %cst_31 : f32 to vector<8x32xf32>
    %108 = arith.subf %107, %100 : vector<8x32xf32>
    %109 = arith.mulf %108, %106 : vector<8x32xf32>
    %110 = arith.mulf %100, %88 : vector<8x32xf32>
    %111 = arith.addf %109, %110 : vector<8x32xf32>
    %112 = vector.extract_strided_slice %13 {offsets = [32, 0], sizes = [8, 96], strides = [1, 1]} : vector<64x96xf32> to vector<8x96xf32>
    %cst_32 = arith.constant dense<0.000000e+00> : vector<8x96xf32>
    %113 = tpu.matmul %111, %22, %cst_32 {dimension_numbers = #tpu.dot_dimension_numbers<[1], [0], [0], [1], [0, 0, 1, 1], [], []>} : vector<8x32xf32>, vector<32x96xf32>, vector<8x96xf32> -> vector<8x96xf32>
    %114 = vector.extract_strided_slice %112 {offsets = [0, 0], sizes = [8, 64], strides = [1, 1]} : vector<8x96xf32> to vector<8x64xf32>
    %115 = vector.extract_strided_slice %113 {offsets = [0, 0], sizes = [8, 64], strides = [1, 1]} : vector<8x96xf32> to vector<8x64xf32>
    %116 = arith.addf %114, %115 : vector<8x64xf32>
    %117 = arith.negf %116 : vector<8x64xf32>
    %118 = math.exp %117 : vector<8x64xf32>
    %cst_33 = arith.constant 1.000000e+00 : f32
    %119 = vector.broadcast %cst_33 : f32 to vector<8x64xf32>
    %120 = arith.addf %119, %118 : vector<8x64xf32>
    %121 = arith.divf %119, %120 : vector<8x64xf32>
    %122 = vector.extract_strided_slice %121 {offsets = [0, 0], sizes = [8, 32], strides = [1, 1]} : vector<8x64xf32> to vector<8x32xf32>
    %123 = vector.extract_strided_slice %121 {offsets = [0, 32], sizes = [8, 32], strides = [1, 1]} : vector<8x64xf32> to vector<8x32xf32>
    %124 = vector.extract_strided_slice %112 {offsets = [0, 64], sizes = [8, 32], strides = [1, 1]} : vector<8x96xf32> to vector<8x32xf32>
    %125 = vector.extract_strided_slice %113 {offsets = [0, 64], sizes = [8, 32], strides = [1, 1]} : vector<8x96xf32> to vector<8x32xf32>
    %126 = arith.addf %125, %26 : vector<8x32xf32>
    %127 = arith.mulf %122, %126 : vector<8x32xf32>
    %128 = arith.addf %124, %127 : vector<8x32xf32>
    %129 = math.tanh %128 : vector<8x32xf32>
    %cst_34 = arith.constant 1.000000e+00 : f32
    %130 = vector.broadcast %cst_34 : f32 to vector<8x32xf32>
    %131 = arith.subf %130, %123 : vector<8x32xf32>
    %132 = arith.mulf %131, %129 : vector<8x32xf32>
    %133 = arith.mulf %123, %111 : vector<8x32xf32>
    %134 = arith.addf %132, %133 : vector<8x32xf32>
    %135 = vector.extract_strided_slice %13 {offsets = [40, 0], sizes = [8, 96], strides = [1, 1]} : vector<64x96xf32> to vector<8x96xf32>
    %cst_35 = arith.constant dense<0.000000e+00> : vector<8x96xf32>
    %136 = tpu.matmul %134, %22, %cst_35 {dimension_numbers = #tpu.dot_dimension_numbers<[1], [0], [0], [1], [0, 0, 1, 1], [], []>} : vector<8x32xf32>, vector<32x96xf32>, vector<8x96xf32> -> vector<8x96xf32>
    %137 = vector.extract_strided_slice %135 {offsets = [0, 0], sizes = [8, 64], strides = [1, 1]} : vector<8x96xf32> to vector<8x64xf32>
    %138 = vector.extract_strided_slice %136 {offsets = [0, 0], sizes = [8, 64], strides = [1, 1]} : vector<8x96xf32> to vector<8x64xf32>
    %139 = arith.addf %137, %138 : vector<8x64xf32>
    %140 = arith.negf %139 : vector<8x64xf32>
    %141 = math.exp %140 : vector<8x64xf32>
    %cst_36 = arith.constant 1.000000e+00 : f32
    %142 = vector.broadcast %cst_36 : f32 to vector<8x64xf32>
    %143 = arith.addf %142, %141 : vector<8x64xf32>
    %144 = arith.divf %142, %143 : vector<8x64xf32>
    %145 = vector.extract_strided_slice %144 {offsets = [0, 0], sizes = [8, 32], strides = [1, 1]} : vector<8x64xf32> to vector<8x32xf32>
    %146 = vector.extract_strided_slice %144 {offsets = [0, 32], sizes = [8, 32], strides = [1, 1]} : vector<8x64xf32> to vector<8x32xf32>
    %147 = vector.extract_strided_slice %135 {offsets = [0, 64], sizes = [8, 32], strides = [1, 1]} : vector<8x96xf32> to vector<8x32xf32>
    %148 = vector.extract_strided_slice %136 {offsets = [0, 64], sizes = [8, 32], strides = [1, 1]} : vector<8x96xf32> to vector<8x32xf32>
    %149 = arith.addf %148, %26 : vector<8x32xf32>
    %150 = arith.mulf %145, %149 : vector<8x32xf32>
    %151 = arith.addf %147, %150 : vector<8x32xf32>
    %152 = math.tanh %151 : vector<8x32xf32>
    %cst_37 = arith.constant 1.000000e+00 : f32
    %153 = vector.broadcast %cst_37 : f32 to vector<8x32xf32>
    %154 = arith.subf %153, %146 : vector<8x32xf32>
    %155 = arith.mulf %154, %152 : vector<8x32xf32>
    %156 = arith.mulf %146, %134 : vector<8x32xf32>
    %157 = arith.addf %155, %156 : vector<8x32xf32>
    %158 = vector.extract_strided_slice %13 {offsets = [48, 0], sizes = [8, 96], strides = [1, 1]} : vector<64x96xf32> to vector<8x96xf32>
    %cst_38 = arith.constant dense<0.000000e+00> : vector<8x96xf32>
    %159 = tpu.matmul %157, %22, %cst_38 {dimension_numbers = #tpu.dot_dimension_numbers<[1], [0], [0], [1], [0, 0, 1, 1], [], []>} : vector<8x32xf32>, vector<32x96xf32>, vector<8x96xf32> -> vector<8x96xf32>
    %160 = vector.extract_strided_slice %158 {offsets = [0, 0], sizes = [8, 64], strides = [1, 1]} : vector<8x96xf32> to vector<8x64xf32>
    %161 = vector.extract_strided_slice %159 {offsets = [0, 0], sizes = [8, 64], strides = [1, 1]} : vector<8x96xf32> to vector<8x64xf32>
    %162 = arith.addf %160, %161 : vector<8x64xf32>
    %163 = arith.negf %162 : vector<8x64xf32>
    %164 = math.exp %163 : vector<8x64xf32>
    %cst_39 = arith.constant 1.000000e+00 : f32
    %165 = vector.broadcast %cst_39 : f32 to vector<8x64xf32>
    %166 = arith.addf %165, %164 : vector<8x64xf32>
    %167 = arith.divf %165, %166 : vector<8x64xf32>
    %168 = vector.extract_strided_slice %167 {offsets = [0, 0], sizes = [8, 32], strides = [1, 1]} : vector<8x64xf32> to vector<8x32xf32>
    %169 = vector.extract_strided_slice %167 {offsets = [0, 32], sizes = [8, 32], strides = [1, 1]} : vector<8x64xf32> to vector<8x32xf32>
    %170 = vector.extract_strided_slice %158 {offsets = [0, 64], sizes = [8, 32], strides = [1, 1]} : vector<8x96xf32> to vector<8x32xf32>
    %171 = vector.extract_strided_slice %159 {offsets = [0, 64], sizes = [8, 32], strides = [1, 1]} : vector<8x96xf32> to vector<8x32xf32>
    %172 = arith.addf %171, %26 : vector<8x32xf32>
    %173 = arith.mulf %168, %172 : vector<8x32xf32>
    %174 = arith.addf %170, %173 : vector<8x32xf32>
    %175 = math.tanh %174 : vector<8x32xf32>
    %cst_40 = arith.constant 1.000000e+00 : f32
    %176 = vector.broadcast %cst_40 : f32 to vector<8x32xf32>
    %177 = arith.subf %176, %169 : vector<8x32xf32>
    %178 = arith.mulf %177, %175 : vector<8x32xf32>
    %179 = arith.mulf %169, %157 : vector<8x32xf32>
    %180 = arith.addf %178, %179 : vector<8x32xf32>
    %181 = vector.extract_strided_slice %13 {offsets = [56, 0], sizes = [8, 96], strides = [1, 1]} : vector<64x96xf32> to vector<8x96xf32>
    %cst_41 = arith.constant dense<0.000000e+00> : vector<8x96xf32>
    %182 = tpu.matmul %180, %22, %cst_41 {dimension_numbers = #tpu.dot_dimension_numbers<[1], [0], [0], [1], [0, 0, 1, 1], [], []>} : vector<8x32xf32>, vector<32x96xf32>, vector<8x96xf32> -> vector<8x96xf32>
    %183 = vector.extract_strided_slice %181 {offsets = [0, 0], sizes = [8, 64], strides = [1, 1]} : vector<8x96xf32> to vector<8x64xf32>
    %184 = vector.extract_strided_slice %182 {offsets = [0, 0], sizes = [8, 64], strides = [1, 1]} : vector<8x96xf32> to vector<8x64xf32>
    %185 = arith.addf %183, %184 : vector<8x64xf32>
    %186 = arith.negf %185 : vector<8x64xf32>
    %187 = math.exp %186 : vector<8x64xf32>
    %cst_42 = arith.constant 1.000000e+00 : f32
    %188 = vector.broadcast %cst_42 : f32 to vector<8x64xf32>
    %189 = arith.addf %188, %187 : vector<8x64xf32>
    %190 = arith.divf %188, %189 : vector<8x64xf32>
    %191 = vector.extract_strided_slice %190 {offsets = [0, 0], sizes = [8, 32], strides = [1, 1]} : vector<8x64xf32> to vector<8x32xf32>
    %192 = vector.extract_strided_slice %190 {offsets = [0, 32], sizes = [8, 32], strides = [1, 1]} : vector<8x64xf32> to vector<8x32xf32>
    %193 = vector.extract_strided_slice %181 {offsets = [0, 64], sizes = [8, 32], strides = [1, 1]} : vector<8x96xf32> to vector<8x32xf32>
    %194 = vector.extract_strided_slice %182 {offsets = [0, 64], sizes = [8, 32], strides = [1, 1]} : vector<8x96xf32> to vector<8x32xf32>
    %195 = arith.addf %194, %26 : vector<8x32xf32>
    %196 = arith.mulf %191, %195 : vector<8x32xf32>
    %197 = arith.addf %193, %196 : vector<8x32xf32>
    %198 = math.tanh %197 : vector<8x32xf32>
    %cst_43 = arith.constant 1.000000e+00 : f32
    %199 = vector.broadcast %cst_43 : f32 to vector<8x32xf32>
    %200 = arith.subf %199, %192 : vector<8x32xf32>
    %201 = arith.mulf %200, %198 : vector<8x32xf32>
    %202 = arith.mulf %192, %180 : vector<8x32xf32>
    %203 = arith.addf %201, %202 : vector<8x32xf32>
    %c1_44 = arith.constant 1 : index
    %c0_45 = arith.constant 0 : index
    %c0_46 = arith.constant 0 : index
    %204 = vector.load %arg3[%c1_44, %c0_45, %c0_46] : memref<2x32x96xf32, #tpu.memory_space<vmem>>, vector<1x32x96xf32>
    %205 = vector.shape_cast %204 : vector<1x32x96xf32> to vector<32x96xf32>
    %c1_47 = arith.constant 1 : index
    %c0_48 = arith.constant 0 : index
    %c0_49 = arith.constant 0 : index
    %206 = vector.load %arg4[%c1_47, %c0_48, %c0_49] : memref<2x1x32xf32, #tpu.memory_space<vmem>>, vector<1x1x32xf32>
    %207 = vector.shape_cast %206 : vector<1x1x32xf32> to vector<1x32xf32>
    %208 = vector.shape_cast %207 : vector<1x32xf32> to vector<1x32xf32>
    %209 = vector.broadcast %208 : vector<1x32xf32> to vector<8x32xf32>
    %210 = vector.extract_strided_slice %20 {offsets = [56, 0], sizes = [8, 96], strides = [1, 1]} : vector<64x96xf32> to vector<8x96xf32>
    %211 = vector.extract_strided_slice %210 {offsets = [0, 0], sizes = [8, 64], strides = [1, 1]} : vector<8x96xf32> to vector<8x64xf32>
    %212 = arith.negf %211 : vector<8x64xf32>
    %213 = math.exp %212 : vector<8x64xf32>
    %cst_50 = arith.constant 1.000000e+00 : f32
    %214 = vector.broadcast %cst_50 : f32 to vector<8x64xf32>
    %215 = arith.addf %214, %213 : vector<8x64xf32>
    %216 = arith.divf %214, %215 : vector<8x64xf32>
    %217 = vector.extract_strided_slice %216 {offsets = [0, 0], sizes = [8, 32], strides = [1, 1]} : vector<8x64xf32> to vector<8x32xf32>
    %218 = vector.extract_strided_slice %216 {offsets = [0, 32], sizes = [8, 32], strides = [1, 1]} : vector<8x64xf32> to vector<8x32xf32>
    %219 = vector.extract_strided_slice %210 {offsets = [0, 64], sizes = [8, 32], strides = [1, 1]} : vector<8x96xf32> to vector<8x32xf32>
    %220 = arith.mulf %217, %209 : vector<8x32xf32>
    %221 = arith.addf %219, %220 : vector<8x32xf32>
    %222 = math.tanh %221 : vector<8x32xf32>
    %cst_51 = arith.constant 1.000000e+00 : f32
    %223 = vector.broadcast %cst_51 : f32 to vector<8x32xf32>
    %224 = arith.subf %223, %218 : vector<8x32xf32>
    %225 = arith.mulf %224, %222 : vector<8x32xf32>
    %226 = vector.extract_strided_slice %20 {offsets = [48, 0], sizes = [8, 96], strides = [1, 1]} : vector<64x96xf32> to vector<8x96xf32>
    %cst_52 = arith.constant dense<0.000000e+00> : vector<8x96xf32>
    %227 = tpu.matmul %225, %205, %cst_52 {dimension_numbers = #tpu.dot_dimension_numbers<[1], [0], [0], [1], [0, 0, 1, 1], [], []>} : vector<8x32xf32>, vector<32x96xf32>, vector<8x96xf32> -> vector<8x96xf32>
    %228 = vector.extract_strided_slice %226 {offsets = [0, 0], sizes = [8, 64], strides = [1, 1]} : vector<8x96xf32> to vector<8x64xf32>
    %229 = vector.extract_strided_slice %227 {offsets = [0, 0], sizes = [8, 64], strides = [1, 1]} : vector<8x96xf32> to vector<8x64xf32>
    %230 = arith.addf %228, %229 : vector<8x64xf32>
    %231 = arith.negf %230 : vector<8x64xf32>
    %232 = math.exp %231 : vector<8x64xf32>
    %cst_53 = arith.constant 1.000000e+00 : f32
    %233 = vector.broadcast %cst_53 : f32 to vector<8x64xf32>
    %234 = arith.addf %233, %232 : vector<8x64xf32>
    %235 = arith.divf %233, %234 : vector<8x64xf32>
    %236 = vector.extract_strided_slice %235 {offsets = [0, 0], sizes = [8, 32], strides = [1, 1]} : vector<8x64xf32> to vector<8x32xf32>
    %237 = vector.extract_strided_slice %235 {offsets = [0, 32], sizes = [8, 32], strides = [1, 1]} : vector<8x64xf32> to vector<8x32xf32>
    %238 = vector.extract_strided_slice %226 {offsets = [0, 64], sizes = [8, 32], strides = [1, 1]} : vector<8x96xf32> to vector<8x32xf32>
    %239 = vector.extract_strided_slice %227 {offsets = [0, 64], sizes = [8, 32], strides = [1, 1]} : vector<8x96xf32> to vector<8x32xf32>
    %240 = arith.addf %239, %209 : vector<8x32xf32>
    %241 = arith.mulf %236, %240 : vector<8x32xf32>
    %242 = arith.addf %238, %241 : vector<8x32xf32>
    %243 = math.tanh %242 : vector<8x32xf32>
    %cst_54 = arith.constant 1.000000e+00 : f32
    %244 = vector.broadcast %cst_54 : f32 to vector<8x32xf32>
    %245 = arith.subf %244, %237 : vector<8x32xf32>
    %246 = arith.mulf %245, %243 : vector<8x32xf32>
    %247 = arith.mulf %237, %225 : vector<8x32xf32>
    %248 = arith.addf %246, %247 : vector<8x32xf32>
    %249 = vector.extract_strided_slice %20 {offsets = [40, 0], sizes = [8, 96], strides = [1, 1]} : vector<64x96xf32> to vector<8x96xf32>
    %cst_55 = arith.constant dense<0.000000e+00> : vector<8x96xf32>
    %250 = tpu.matmul %248, %205, %cst_55 {dimension_numbers = #tpu.dot_dimension_numbers<[1], [0], [0], [1], [0, 0, 1, 1], [], []>} : vector<8x32xf32>, vector<32x96xf32>, vector<8x96xf32> -> vector<8x96xf32>
    %251 = vector.extract_strided_slice %249 {offsets = [0, 0], sizes = [8, 64], strides = [1, 1]} : vector<8x96xf32> to vector<8x64xf32>
    %252 = vector.extract_strided_slice %250 {offsets = [0, 0], sizes = [8, 64], strides = [1, 1]} : vector<8x96xf32> to vector<8x64xf32>
    %253 = arith.addf %251, %252 : vector<8x64xf32>
    %254 = arith.negf %253 : vector<8x64xf32>
    %255 = math.exp %254 : vector<8x64xf32>
    %cst_56 = arith.constant 1.000000e+00 : f32
    %256 = vector.broadcast %cst_56 : f32 to vector<8x64xf32>
    %257 = arith.addf %256, %255 : vector<8x64xf32>
    %258 = arith.divf %256, %257 : vector<8x64xf32>
    %259 = vector.extract_strided_slice %258 {offsets = [0, 0], sizes = [8, 32], strides = [1, 1]} : vector<8x64xf32> to vector<8x32xf32>
    %260 = vector.extract_strided_slice %258 {offsets = [0, 32], sizes = [8, 32], strides = [1, 1]} : vector<8x64xf32> to vector<8x32xf32>
    %261 = vector.extract_strided_slice %249 {offsets = [0, 64], sizes = [8, 32], strides = [1, 1]} : vector<8x96xf32> to vector<8x32xf32>
    %262 = vector.extract_strided_slice %250 {offsets = [0, 64], sizes = [8, 32], strides = [1, 1]} : vector<8x96xf32> to vector<8x32xf32>
    %263 = arith.addf %262, %209 : vector<8x32xf32>
    %264 = arith.mulf %259, %263 : vector<8x32xf32>
    %265 = arith.addf %261, %264 : vector<8x32xf32>
    %266 = math.tanh %265 : vector<8x32xf32>
    %cst_57 = arith.constant 1.000000e+00 : f32
    %267 = vector.broadcast %cst_57 : f32 to vector<8x32xf32>
    %268 = arith.subf %267, %260 : vector<8x32xf32>
    %269 = arith.mulf %268, %266 : vector<8x32xf32>
    %270 = arith.mulf %260, %248 : vector<8x32xf32>
    %271 = arith.addf %269, %270 : vector<8x32xf32>
    %272 = vector.extract_strided_slice %20 {offsets = [32, 0], sizes = [8, 96], strides = [1, 1]} : vector<64x96xf32> to vector<8x96xf32>
    %cst_58 = arith.constant dense<0.000000e+00> : vector<8x96xf32>
    %273 = tpu.matmul %271, %205, %cst_58 {dimension_numbers = #tpu.dot_dimension_numbers<[1], [0], [0], [1], [0, 0, 1, 1], [], []>} : vector<8x32xf32>, vector<32x96xf32>, vector<8x96xf32> -> vector<8x96xf32>
    %274 = vector.extract_strided_slice %272 {offsets = [0, 0], sizes = [8, 64], strides = [1, 1]} : vector<8x96xf32> to vector<8x64xf32>
    %275 = vector.extract_strided_slice %273 {offsets = [0, 0], sizes = [8, 64], strides = [1, 1]} : vector<8x96xf32> to vector<8x64xf32>
    %276 = arith.addf %274, %275 : vector<8x64xf32>
    %277 = arith.negf %276 : vector<8x64xf32>
    %278 = math.exp %277 : vector<8x64xf32>
    %cst_59 = arith.constant 1.000000e+00 : f32
    %279 = vector.broadcast %cst_59 : f32 to vector<8x64xf32>
    %280 = arith.addf %279, %278 : vector<8x64xf32>
    %281 = arith.divf %279, %280 : vector<8x64xf32>
    %282 = vector.extract_strided_slice %281 {offsets = [0, 0], sizes = [8, 32], strides = [1, 1]} : vector<8x64xf32> to vector<8x32xf32>
    %283 = vector.extract_strided_slice %281 {offsets = [0, 32], sizes = [8, 32], strides = [1, 1]} : vector<8x64xf32> to vector<8x32xf32>
    %284 = vector.extract_strided_slice %272 {offsets = [0, 64], sizes = [8, 32], strides = [1, 1]} : vector<8x96xf32> to vector<8x32xf32>
    %285 = vector.extract_strided_slice %273 {offsets = [0, 64], sizes = [8, 32], strides = [1, 1]} : vector<8x96xf32> to vector<8x32xf32>
    %286 = arith.addf %285, %209 : vector<8x32xf32>
    %287 = arith.mulf %282, %286 : vector<8x32xf32>
    %288 = arith.addf %284, %287 : vector<8x32xf32>
    %289 = math.tanh %288 : vector<8x32xf32>
    %cst_60 = arith.constant 1.000000e+00 : f32
    %290 = vector.broadcast %cst_60 : f32 to vector<8x32xf32>
    %291 = arith.subf %290, %283 : vector<8x32xf32>
    %292 = arith.mulf %291, %289 : vector<8x32xf32>
    %293 = arith.mulf %283, %271 : vector<8x32xf32>
    %294 = arith.addf %292, %293 : vector<8x32xf32>
    %295 = vector.extract_strided_slice %20 {offsets = [24, 0], sizes = [8, 96], strides = [1, 1]} : vector<64x96xf32> to vector<8x96xf32>
    %cst_61 = arith.constant dense<0.000000e+00> : vector<8x96xf32>
    %296 = tpu.matmul %294, %205, %cst_61 {dimension_numbers = #tpu.dot_dimension_numbers<[1], [0], [0], [1], [0, 0, 1, 1], [], []>} : vector<8x32xf32>, vector<32x96xf32>, vector<8x96xf32> -> vector<8x96xf32>
    %297 = vector.extract_strided_slice %295 {offsets = [0, 0], sizes = [8, 64], strides = [1, 1]} : vector<8x96xf32> to vector<8x64xf32>
    %298 = vector.extract_strided_slice %296 {offsets = [0, 0], sizes = [8, 64], strides = [1, 1]} : vector<8x96xf32> to vector<8x64xf32>
    %299 = arith.addf %297, %298 : vector<8x64xf32>
    %300 = arith.negf %299 : vector<8x64xf32>
    %301 = math.exp %300 : vector<8x64xf32>
    %cst_62 = arith.constant 1.000000e+00 : f32
    %302 = vector.broadcast %cst_62 : f32 to vector<8x64xf32>
    %303 = arith.addf %302, %301 : vector<8x64xf32>
    %304 = arith.divf %302, %303 : vector<8x64xf32>
    %305 = vector.extract_strided_slice %304 {offsets = [0, 0], sizes = [8, 32], strides = [1, 1]} : vector<8x64xf32> to vector<8x32xf32>
    %306 = vector.extract_strided_slice %304 {offsets = [0, 32], sizes = [8, 32], strides = [1, 1]} : vector<8x64xf32> to vector<8x32xf32>
    %307 = vector.extract_strided_slice %295 {offsets = [0, 64], sizes = [8, 32], strides = [1, 1]} : vector<8x96xf32> to vector<8x32xf32>
    %308 = vector.extract_strided_slice %296 {offsets = [0, 64], sizes = [8, 32], strides = [1, 1]} : vector<8x96xf32> to vector<8x32xf32>
    %309 = arith.addf %308, %209 : vector<8x32xf32>
    %310 = arith.mulf %305, %309 : vector<8x32xf32>
    %311 = arith.addf %307, %310 : vector<8x32xf32>
    %312 = math.tanh %311 : vector<8x32xf32>
    %cst_63 = arith.constant 1.000000e+00 : f32
    %313 = vector.broadcast %cst_63 : f32 to vector<8x32xf32>
    %314 = arith.subf %313, %306 : vector<8x32xf32>
    %315 = arith.mulf %314, %312 : vector<8x32xf32>
    %316 = arith.mulf %306, %294 : vector<8x32xf32>
    %317 = arith.addf %315, %316 : vector<8x32xf32>
    %318 = vector.extract_strided_slice %20 {offsets = [16, 0], sizes = [8, 96], strides = [1, 1]} : vector<64x96xf32> to vector<8x96xf32>
    %cst_64 = arith.constant dense<0.000000e+00> : vector<8x96xf32>
    %319 = tpu.matmul %317, %205, %cst_64 {dimension_numbers = #tpu.dot_dimension_numbers<[1], [0], [0], [1], [0, 0, 1, 1], [], []>} : vector<8x32xf32>, vector<32x96xf32>, vector<8x96xf32> -> vector<8x96xf32>
    %320 = vector.extract_strided_slice %318 {offsets = [0, 0], sizes = [8, 64], strides = [1, 1]} : vector<8x96xf32> to vector<8x64xf32>
    %321 = vector.extract_strided_slice %319 {offsets = [0, 0], sizes = [8, 64], strides = [1, 1]} : vector<8x96xf32> to vector<8x64xf32>
    %322 = arith.addf %320, %321 : vector<8x64xf32>
    %323 = arith.negf %322 : vector<8x64xf32>
    %324 = math.exp %323 : vector<8x64xf32>
    %cst_65 = arith.constant 1.000000e+00 : f32
    %325 = vector.broadcast %cst_65 : f32 to vector<8x64xf32>
    %326 = arith.addf %325, %324 : vector<8x64xf32>
    %327 = arith.divf %325, %326 : vector<8x64xf32>
    %328 = vector.extract_strided_slice %327 {offsets = [0, 0], sizes = [8, 32], strides = [1, 1]} : vector<8x64xf32> to vector<8x32xf32>
    %329 = vector.extract_strided_slice %327 {offsets = [0, 32], sizes = [8, 32], strides = [1, 1]} : vector<8x64xf32> to vector<8x32xf32>
    %330 = vector.extract_strided_slice %318 {offsets = [0, 64], sizes = [8, 32], strides = [1, 1]} : vector<8x96xf32> to vector<8x32xf32>
    %331 = vector.extract_strided_slice %319 {offsets = [0, 64], sizes = [8, 32], strides = [1, 1]} : vector<8x96xf32> to vector<8x32xf32>
    %332 = arith.addf %331, %209 : vector<8x32xf32>
    %333 = arith.mulf %328, %332 : vector<8x32xf32>
    %334 = arith.addf %330, %333 : vector<8x32xf32>
    %335 = math.tanh %334 : vector<8x32xf32>
    %cst_66 = arith.constant 1.000000e+00 : f32
    %336 = vector.broadcast %cst_66 : f32 to vector<8x32xf32>
    %337 = arith.subf %336, %329 : vector<8x32xf32>
    %338 = arith.mulf %337, %335 : vector<8x32xf32>
    %339 = arith.mulf %329, %317 : vector<8x32xf32>
    %340 = arith.addf %338, %339 : vector<8x32xf32>
    %341 = vector.extract_strided_slice %20 {offsets = [8, 0], sizes = [8, 96], strides = [1, 1]} : vector<64x96xf32> to vector<8x96xf32>
    %cst_67 = arith.constant dense<0.000000e+00> : vector<8x96xf32>
    %342 = tpu.matmul %340, %205, %cst_67 {dimension_numbers = #tpu.dot_dimension_numbers<[1], [0], [0], [1], [0, 0, 1, 1], [], []>} : vector<8x32xf32>, vector<32x96xf32>, vector<8x96xf32> -> vector<8x96xf32>
    %343 = vector.extract_strided_slice %341 {offsets = [0, 0], sizes = [8, 64], strides = [1, 1]} : vector<8x96xf32> to vector<8x64xf32>
    %344 = vector.extract_strided_slice %342 {offsets = [0, 0], sizes = [8, 64], strides = [1, 1]} : vector<8x96xf32> to vector<8x64xf32>
    %345 = arith.addf %343, %344 : vector<8x64xf32>
    %346 = arith.negf %345 : vector<8x64xf32>
    %347 = math.exp %346 : vector<8x64xf32>
    %cst_68 = arith.constant 1.000000e+00 : f32
    %348 = vector.broadcast %cst_68 : f32 to vector<8x64xf32>
    %349 = arith.addf %348, %347 : vector<8x64xf32>
    %350 = arith.divf %348, %349 : vector<8x64xf32>
    %351 = vector.extract_strided_slice %350 {offsets = [0, 0], sizes = [8, 32], strides = [1, 1]} : vector<8x64xf32> to vector<8x32xf32>
    %352 = vector.extract_strided_slice %350 {offsets = [0, 32], sizes = [8, 32], strides = [1, 1]} : vector<8x64xf32> to vector<8x32xf32>
    %353 = vector.extract_strided_slice %341 {offsets = [0, 64], sizes = [8, 32], strides = [1, 1]} : vector<8x96xf32> to vector<8x32xf32>
    %354 = vector.extract_strided_slice %342 {offsets = [0, 64], sizes = [8, 32], strides = [1, 1]} : vector<8x96xf32> to vector<8x32xf32>
    %355 = arith.addf %354, %209 : vector<8x32xf32>
    %356 = arith.mulf %351, %355 : vector<8x32xf32>
    %357 = arith.addf %353, %356 : vector<8x32xf32>
    %358 = math.tanh %357 : vector<8x32xf32>
    %cst_69 = arith.constant 1.000000e+00 : f32
    %359 = vector.broadcast %cst_69 : f32 to vector<8x32xf32>
    %360 = arith.subf %359, %352 : vector<8x32xf32>
    %361 = arith.mulf %360, %358 : vector<8x32xf32>
    %362 = arith.mulf %352, %340 : vector<8x32xf32>
    %363 = arith.addf %361, %362 : vector<8x32xf32>
    %364 = vector.extract_strided_slice %20 {offsets = [0, 0], sizes = [8, 96], strides = [1, 1]} : vector<64x96xf32> to vector<8x96xf32>
    %cst_70 = arith.constant dense<0.000000e+00> : vector<8x96xf32>
    %365 = tpu.matmul %363, %205, %cst_70 {dimension_numbers = #tpu.dot_dimension_numbers<[1], [0], [0], [1], [0, 0, 1, 1], [], []>} : vector<8x32xf32>, vector<32x96xf32>, vector<8x96xf32> -> vector<8x96xf32>
    %366 = vector.extract_strided_slice %364 {offsets = [0, 0], sizes = [8, 64], strides = [1, 1]} : vector<8x96xf32> to vector<8x64xf32>
    %367 = vector.extract_strided_slice %365 {offsets = [0, 0], sizes = [8, 64], strides = [1, 1]} : vector<8x96xf32> to vector<8x64xf32>
    %368 = arith.addf %366, %367 : vector<8x64xf32>
    %369 = arith.negf %368 : vector<8x64xf32>
    %370 = math.exp %369 : vector<8x64xf32>
    %cst_71 = arith.constant 1.000000e+00 : f32
    %371 = vector.broadcast %cst_71 : f32 to vector<8x64xf32>
    %372 = arith.addf %371, %370 : vector<8x64xf32>
    %373 = arith.divf %371, %372 : vector<8x64xf32>
    %374 = vector.extract_strided_slice %373 {offsets = [0, 0], sizes = [8, 32], strides = [1, 1]} : vector<8x64xf32> to vector<8x32xf32>
    %375 = vector.extract_strided_slice %373 {offsets = [0, 32], sizes = [8, 32], strides = [1, 1]} : vector<8x64xf32> to vector<8x32xf32>
    %376 = vector.extract_strided_slice %364 {offsets = [0, 64], sizes = [8, 32], strides = [1, 1]} : vector<8x96xf32> to vector<8x32xf32>
    %377 = vector.extract_strided_slice %365 {offsets = [0, 64], sizes = [8, 32], strides = [1, 1]} : vector<8x96xf32> to vector<8x32xf32>
    %378 = arith.addf %377, %209 : vector<8x32xf32>
    %379 = arith.mulf %374, %378 : vector<8x32xf32>
    %380 = arith.addf %376, %379 : vector<8x32xf32>
    %381 = math.tanh %380 : vector<8x32xf32>
    %cst_72 = arith.constant 1.000000e+00 : f32
    %382 = vector.broadcast %cst_72 : f32 to vector<8x32xf32>
    %383 = arith.subf %382, %375 : vector<8x32xf32>
    %384 = arith.mulf %383, %381 : vector<8x32xf32>
    %385 = arith.mulf %375, %363 : vector<8x32xf32>
    %386 = arith.addf %384, %385 : vector<8x32xf32>
    %387 = tpu.concatenate %42, %65, %88, %111, %134, %157, %180, %203 in 0 : vector<8x32xf32>, vector<8x32xf32>, vector<8x32xf32>, vector<8x32xf32>, vector<8x32xf32>, vector<8x32xf32>, vector<8x32xf32>, vector<8x32xf32> -> vector<64x32xf32>
    %388 = tpu.concatenate %386, %363, %340, %317, %294, %271, %248, %225 in 0 : vector<8x32xf32>, vector<8x32xf32>, vector<8x32xf32>, vector<8x32xf32>, vector<8x32xf32>, vector<8x32xf32>, vector<8x32xf32>, vector<8x32xf32> -> vector<64x32xf32>
    %c0_73 = arith.constant 0 : index
    %c0_74 = arith.constant 0 : index
    %c0_75 = arith.constant 0 : index
    %389 = vector.load %arg5[%c0_73, %c0_74, %c0_75] : memref<2x32x96xf32, #tpu.memory_space<vmem>>, vector<1x32x96xf32>
    %390 = vector.shape_cast %389 : vector<1x32x96xf32> to vector<32x96xf32>
    %cst_76 = arith.constant dense<0.000000e+00> : vector<64x96xf32>
    %391 = tpu.matmul %387, %390, %cst_76 {dimension_numbers = #tpu.dot_dimension_numbers<[1], [0], [0], [1], [0, 0, 1, 1], [], []>} : vector<64x32xf32>, vector<32x96xf32>, vector<64x96xf32> -> vector<64x96xf32>
    %c0_77 = arith.constant 0 : index
    %c0_78 = arith.constant 0 : index
    %c0_79 = arith.constant 0 : index
    %392 = vector.load %arg6[%c0_77, %c0_78, %c0_79] : memref<2x32x96xf32, #tpu.memory_space<vmem>>, vector<1x32x96xf32>
    %393 = vector.shape_cast %392 : vector<1x32x96xf32> to vector<32x96xf32>
    %cst_80 = arith.constant dense<0.000000e+00> : vector<64x96xf32>
    %394 = tpu.matmul %388, %393, %cst_80 {dimension_numbers = #tpu.dot_dimension_numbers<[1], [0], [0], [1], [0, 0, 1, 1], [], []>} : vector<64x32xf32>, vector<32x96xf32>, vector<64x96xf32> -> vector<64x96xf32>
    %395 = arith.addf %391, %394 : vector<64x96xf32>
    %c0_81 = arith.constant 0 : index
    %c0_82 = arith.constant 0 : index
    %c0_83 = arith.constant 0 : index
    %396 = vector.load %arg7[%c0_81, %c0_82, %c0_83] : memref<2x1x96xf32, #tpu.memory_space<vmem>>, vector<1x1x96xf32>
    %397 = vector.shape_cast %396 : vector<1x1x96xf32> to vector<1x96xf32>
    %398 = vector.broadcast %397 : vector<1x96xf32> to vector<64x96xf32>
    %399 = arith.addf %395, %398 : vector<64x96xf32>
    %c0_84 = arith.constant 0 : index
    %c0_85 = arith.constant 0 : index
    %c0_86 = arith.constant 0 : index
    %400 = vector.load %arg8[%c0_84, %c0_85, %c0_86] : memref<2x32x96xf32, #tpu.memory_space<vmem>>, vector<1x32x96xf32>
    %401 = vector.shape_cast %400 : vector<1x32x96xf32> to vector<32x96xf32>
    %c0_87 = arith.constant 0 : index
    %c0_88 = arith.constant 0 : index
    %c0_89 = arith.constant 0 : index
    %402 = vector.load %arg9[%c0_87, %c0_88, %c0_89] : memref<2x1x32xf32, #tpu.memory_space<vmem>>, vector<1x1x32xf32>
    %403 = vector.shape_cast %402 : vector<1x1x32xf32> to vector<1x32xf32>
    %404 = vector.shape_cast %403 : vector<1x32xf32> to vector<1x32xf32>
    %405 = vector.broadcast %404 : vector<1x32xf32> to vector<8x32xf32>
    %406 = vector.extract_strided_slice %399 {offsets = [0, 0], sizes = [8, 96], strides = [1, 1]} : vector<64x96xf32> to vector<8x96xf32>
    %407 = vector.extract_strided_slice %406 {offsets = [0, 0], sizes = [8, 64], strides = [1, 1]} : vector<8x96xf32> to vector<8x64xf32>
    %408 = arith.negf %407 : vector<8x64xf32>
    %409 = math.exp %408 : vector<8x64xf32>
    %cst_90 = arith.constant 1.000000e+00 : f32
    %410 = vector.broadcast %cst_90 : f32 to vector<8x64xf32>
    %411 = arith.addf %410, %409 : vector<8x64xf32>
    %412 = arith.divf %410, %411 : vector<8x64xf32>
    %413 = vector.extract_strided_slice %412 {offsets = [0, 0], sizes = [8, 32], strides = [1, 1]} : vector<8x64xf32> to vector<8x32xf32>
    %414 = vector.extract_strided_slice %412 {offsets = [0, 32], sizes = [8, 32], strides = [1, 1]} : vector<8x64xf32> to vector<8x32xf32>
    %415 = vector.extract_strided_slice %406 {offsets = [0, 64], sizes = [8, 32], strides = [1, 1]} : vector<8x96xf32> to vector<8x32xf32>
    %416 = arith.mulf %413, %405 : vector<8x32xf32>
    %417 = arith.addf %415, %416 : vector<8x32xf32>
    %418 = math.tanh %417 : vector<8x32xf32>
    %cst_91 = arith.constant 1.000000e+00 : f32
    %419 = vector.broadcast %cst_91 : f32 to vector<8x32xf32>
    %420 = arith.subf %419, %414 : vector<8x32xf32>
    %421 = arith.mulf %420, %418 : vector<8x32xf32>
    %422 = vector.extract_strided_slice %399 {offsets = [8, 0], sizes = [8, 96], strides = [1, 1]} : vector<64x96xf32> to vector<8x96xf32>
    %cst_92 = arith.constant dense<0.000000e+00> : vector<8x96xf32>
    %423 = tpu.matmul %421, %401, %cst_92 {dimension_numbers = #tpu.dot_dimension_numbers<[1], [0], [0], [1], [0, 0, 1, 1], [], []>} : vector<8x32xf32>, vector<32x96xf32>, vector<8x96xf32> -> vector<8x96xf32>
    %424 = vector.extract_strided_slice %422 {offsets = [0, 0], sizes = [8, 64], strides = [1, 1]} : vector<8x96xf32> to vector<8x64xf32>
    %425 = vector.extract_strided_slice %423 {offsets = [0, 0], sizes = [8, 64], strides = [1, 1]} : vector<8x96xf32> to vector<8x64xf32>
    %426 = arith.addf %424, %425 : vector<8x64xf32>
    %427 = arith.negf %426 : vector<8x64xf32>
    %428 = math.exp %427 : vector<8x64xf32>
    %cst_93 = arith.constant 1.000000e+00 : f32
    %429 = vector.broadcast %cst_93 : f32 to vector<8x64xf32>
    %430 = arith.addf %429, %428 : vector<8x64xf32>
    %431 = arith.divf %429, %430 : vector<8x64xf32>
    %432 = vector.extract_strided_slice %431 {offsets = [0, 0], sizes = [8, 32], strides = [1, 1]} : vector<8x64xf32> to vector<8x32xf32>
    %433 = vector.extract_strided_slice %431 {offsets = [0, 32], sizes = [8, 32], strides = [1, 1]} : vector<8x64xf32> to vector<8x32xf32>
    %434 = vector.extract_strided_slice %422 {offsets = [0, 64], sizes = [8, 32], strides = [1, 1]} : vector<8x96xf32> to vector<8x32xf32>
    %435 = vector.extract_strided_slice %423 {offsets = [0, 64], sizes = [8, 32], strides = [1, 1]} : vector<8x96xf32> to vector<8x32xf32>
    %436 = arith.addf %435, %405 : vector<8x32xf32>
    %437 = arith.mulf %432, %436 : vector<8x32xf32>
    %438 = arith.addf %434, %437 : vector<8x32xf32>
    %439 = math.tanh %438 : vector<8x32xf32>
    %cst_94 = arith.constant 1.000000e+00 : f32
    %440 = vector.broadcast %cst_94 : f32 to vector<8x32xf32>
    %441 = arith.subf %440, %433 : vector<8x32xf32>
    %442 = arith.mulf %441, %439 : vector<8x32xf32>
    %443 = arith.mulf %433, %421 : vector<8x32xf32>
    %444 = arith.addf %442, %443 : vector<8x32xf32>
    %445 = vector.extract_strided_slice %399 {offsets = [16, 0], sizes = [8, 96], strides = [1, 1]} : vector<64x96xf32> to vector<8x96xf32>
    %cst_95 = arith.constant dense<0.000000e+00> : vector<8x96xf32>
    %446 = tpu.matmul %444, %401, %cst_95 {dimension_numbers = #tpu.dot_dimension_numbers<[1], [0], [0], [1], [0, 0, 1, 1], [], []>} : vector<8x32xf32>, vector<32x96xf32>, vector<8x96xf32> -> vector<8x96xf32>
    %447 = vector.extract_strided_slice %445 {offsets = [0, 0], sizes = [8, 64], strides = [1, 1]} : vector<8x96xf32> to vector<8x64xf32>
    %448 = vector.extract_strided_slice %446 {offsets = [0, 0], sizes = [8, 64], strides = [1, 1]} : vector<8x96xf32> to vector<8x64xf32>
    %449 = arith.addf %447, %448 : vector<8x64xf32>
    %450 = arith.negf %449 : vector<8x64xf32>
    %451 = math.exp %450 : vector<8x64xf32>
    %cst_96 = arith.constant 1.000000e+00 : f32
    %452 = vector.broadcast %cst_96 : f32 to vector<8x64xf32>
    %453 = arith.addf %452, %451 : vector<8x64xf32>
    %454 = arith.divf %452, %453 : vector<8x64xf32>
    %455 = vector.extract_strided_slice %454 {offsets = [0, 0], sizes = [8, 32], strides = [1, 1]} : vector<8x64xf32> to vector<8x32xf32>
    %456 = vector.extract_strided_slice %454 {offsets = [0, 32], sizes = [8, 32], strides = [1, 1]} : vector<8x64xf32> to vector<8x32xf32>
    %457 = vector.extract_strided_slice %445 {offsets = [0, 64], sizes = [8, 32], strides = [1, 1]} : vector<8x96xf32> to vector<8x32xf32>
    %458 = vector.extract_strided_slice %446 {offsets = [0, 64], sizes = [8, 32], strides = [1, 1]} : vector<8x96xf32> to vector<8x32xf32>
    %459 = arith.addf %458, %405 : vector<8x32xf32>
    %460 = arith.mulf %455, %459 : vector<8x32xf32>
    %461 = arith.addf %457, %460 : vector<8x32xf32>
    %462 = math.tanh %461 : vector<8x32xf32>
    %cst_97 = arith.constant 1.000000e+00 : f32
    %463 = vector.broadcast %cst_97 : f32 to vector<8x32xf32>
    %464 = arith.subf %463, %456 : vector<8x32xf32>
    %465 = arith.mulf %464, %462 : vector<8x32xf32>
    %466 = arith.mulf %456, %444 : vector<8x32xf32>
    %467 = arith.addf %465, %466 : vector<8x32xf32>
    %468 = vector.extract_strided_slice %399 {offsets = [24, 0], sizes = [8, 96], strides = [1, 1]} : vector<64x96xf32> to vector<8x96xf32>
    %cst_98 = arith.constant dense<0.000000e+00> : vector<8x96xf32>
    %469 = tpu.matmul %467, %401, %cst_98 {dimension_numbers = #tpu.dot_dimension_numbers<[1], [0], [0], [1], [0, 0, 1, 1], [], []>} : vector<8x32xf32>, vector<32x96xf32>, vector<8x96xf32> -> vector<8x96xf32>
    %470 = vector.extract_strided_slice %468 {offsets = [0, 0], sizes = [8, 64], strides = [1, 1]} : vector<8x96xf32> to vector<8x64xf32>
    %471 = vector.extract_strided_slice %469 {offsets = [0, 0], sizes = [8, 64], strides = [1, 1]} : vector<8x96xf32> to vector<8x64xf32>
    %472 = arith.addf %470, %471 : vector<8x64xf32>
    %473 = arith.negf %472 : vector<8x64xf32>
    %474 = math.exp %473 : vector<8x64xf32>
    %cst_99 = arith.constant 1.000000e+00 : f32
    %475 = vector.broadcast %cst_99 : f32 to vector<8x64xf32>
    %476 = arith.addf %475, %474 : vector<8x64xf32>
    %477 = arith.divf %475, %476 : vector<8x64xf32>
    %478 = vector.extract_strided_slice %477 {offsets = [0, 0], sizes = [8, 32], strides = [1, 1]} : vector<8x64xf32> to vector<8x32xf32>
    %479 = vector.extract_strided_slice %477 {offsets = [0, 32], sizes = [8, 32], strides = [1, 1]} : vector<8x64xf32> to vector<8x32xf32>
    %480 = vector.extract_strided_slice %468 {offsets = [0, 64], sizes = [8, 32], strides = [1, 1]} : vector<8x96xf32> to vector<8x32xf32>
    %481 = vector.extract_strided_slice %469 {offsets = [0, 64], sizes = [8, 32], strides = [1, 1]} : vector<8x96xf32> to vector<8x32xf32>
    %482 = arith.addf %481, %405 : vector<8x32xf32>
    %483 = arith.mulf %478, %482 : vector<8x32xf32>
    %484 = arith.addf %480, %483 : vector<8x32xf32>
    %485 = math.tanh %484 : vector<8x32xf32>
    %cst_100 = arith.constant 1.000000e+00 : f32
    %486 = vector.broadcast %cst_100 : f32 to vector<8x32xf32>
    %487 = arith.subf %486, %479 : vector<8x32xf32>
    %488 = arith.mulf %487, %485 : vector<8x32xf32>
    %489 = arith.mulf %479, %467 : vector<8x32xf32>
    %490 = arith.addf %488, %489 : vector<8x32xf32>
    %491 = vector.extract_strided_slice %399 {offsets = [32, 0], sizes = [8, 96], strides = [1, 1]} : vector<64x96xf32> to vector<8x96xf32>
    %cst_101 = arith.constant dense<0.000000e+00> : vector<8x96xf32>
    %492 = tpu.matmul %490, %401, %cst_101 {dimension_numbers = #tpu.dot_dimension_numbers<[1], [0], [0], [1], [0, 0, 1, 1], [], []>} : vector<8x32xf32>, vector<32x96xf32>, vector<8x96xf32> -> vector<8x96xf32>
    %493 = vector.extract_strided_slice %491 {offsets = [0, 0], sizes = [8, 64], strides = [1, 1]} : vector<8x96xf32> to vector<8x64xf32>
    %494 = vector.extract_strided_slice %492 {offsets = [0, 0], sizes = [8, 64], strides = [1, 1]} : vector<8x96xf32> to vector<8x64xf32>
    %495 = arith.addf %493, %494 : vector<8x64xf32>
    %496 = arith.negf %495 : vector<8x64xf32>
    %497 = math.exp %496 : vector<8x64xf32>
    %cst_102 = arith.constant 1.000000e+00 : f32
    %498 = vector.broadcast %cst_102 : f32 to vector<8x64xf32>
    %499 = arith.addf %498, %497 : vector<8x64xf32>
    %500 = arith.divf %498, %499 : vector<8x64xf32>
    %501 = vector.extract_strided_slice %500 {offsets = [0, 0], sizes = [8, 32], strides = [1, 1]} : vector<8x64xf32> to vector<8x32xf32>
    %502 = vector.extract_strided_slice %500 {offsets = [0, 32], sizes = [8, 32], strides = [1, 1]} : vector<8x64xf32> to vector<8x32xf32>
    %503 = vector.extract_strided_slice %491 {offsets = [0, 64], sizes = [8, 32], strides = [1, 1]} : vector<8x96xf32> to vector<8x32xf32>
    %504 = vector.extract_strided_slice %492 {offsets = [0, 64], sizes = [8, 32], strides = [1, 1]} : vector<8x96xf32> to vector<8x32xf32>
    %505 = arith.addf %504, %405 : vector<8x32xf32>
    %506 = arith.mulf %501, %505 : vector<8x32xf32>
    %507 = arith.addf %503, %506 : vector<8x32xf32>
    %508 = math.tanh %507 : vector<8x32xf32>
    %cst_103 = arith.constant 1.000000e+00 : f32
    %509 = vector.broadcast %cst_103 : f32 to vector<8x32xf32>
    %510 = arith.subf %509, %502 : vector<8x32xf32>
    %511 = arith.mulf %510, %508 : vector<8x32xf32>
    %512 = arith.mulf %502, %490 : vector<8x32xf32>
    %513 = arith.addf %511, %512 : vector<8x32xf32>
    %514 = vector.extract_strided_slice %399 {offsets = [40, 0], sizes = [8, 96], strides = [1, 1]} : vector<64x96xf32> to vector<8x96xf32>
    %cst_104 = arith.constant dense<0.000000e+00> : vector<8x96xf32>
    %515 = tpu.matmul %513, %401, %cst_104 {dimension_numbers = #tpu.dot_dimension_numbers<[1], [0], [0], [1], [0, 0, 1, 1], [], []>} : vector<8x32xf32>, vector<32x96xf32>, vector<8x96xf32> -> vector<8x96xf32>
    %516 = vector.extract_strided_slice %514 {offsets = [0, 0], sizes = [8, 64], strides = [1, 1]} : vector<8x96xf32> to vector<8x64xf32>
    %517 = vector.extract_strided_slice %515 {offsets = [0, 0], sizes = [8, 64], strides = [1, 1]} : vector<8x96xf32> to vector<8x64xf32>
    %518 = arith.addf %516, %517 : vector<8x64xf32>
    %519 = arith.negf %518 : vector<8x64xf32>
    %520 = math.exp %519 : vector<8x64xf32>
    %cst_105 = arith.constant 1.000000e+00 : f32
    %521 = vector.broadcast %cst_105 : f32 to vector<8x64xf32>
    %522 = arith.addf %521, %520 : vector<8x64xf32>
    %523 = arith.divf %521, %522 : vector<8x64xf32>
    %524 = vector.extract_strided_slice %523 {offsets = [0, 0], sizes = [8, 32], strides = [1, 1]} : vector<8x64xf32> to vector<8x32xf32>
    %525 = vector.extract_strided_slice %523 {offsets = [0, 32], sizes = [8, 32], strides = [1, 1]} : vector<8x64xf32> to vector<8x32xf32>
    %526 = vector.extract_strided_slice %514 {offsets = [0, 64], sizes = [8, 32], strides = [1, 1]} : vector<8x96xf32> to vector<8x32xf32>
    %527 = vector.extract_strided_slice %515 {offsets = [0, 64], sizes = [8, 32], strides = [1, 1]} : vector<8x96xf32> to vector<8x32xf32>
    %528 = arith.addf %527, %405 : vector<8x32xf32>
    %529 = arith.mulf %524, %528 : vector<8x32xf32>
    %530 = arith.addf %526, %529 : vector<8x32xf32>
    %531 = math.tanh %530 : vector<8x32xf32>
    %cst_106 = arith.constant 1.000000e+00 : f32
    %532 = vector.broadcast %cst_106 : f32 to vector<8x32xf32>
    %533 = arith.subf %532, %525 : vector<8x32xf32>
    %534 = arith.mulf %533, %531 : vector<8x32xf32>
    %535 = arith.mulf %525, %513 : vector<8x32xf32>
    %536 = arith.addf %534, %535 : vector<8x32xf32>
    %537 = vector.extract_strided_slice %399 {offsets = [48, 0], sizes = [8, 96], strides = [1, 1]} : vector<64x96xf32> to vector<8x96xf32>
    %cst_107 = arith.constant dense<0.000000e+00> : vector<8x96xf32>
    %538 = tpu.matmul %536, %401, %cst_107 {dimension_numbers = #tpu.dot_dimension_numbers<[1], [0], [0], [1], [0, 0, 1, 1], [], []>} : vector<8x32xf32>, vector<32x96xf32>, vector<8x96xf32> -> vector<8x96xf32>
    %539 = vector.extract_strided_slice %537 {offsets = [0, 0], sizes = [8, 64], strides = [1, 1]} : vector<8x96xf32> to vector<8x64xf32>
    %540 = vector.extract_strided_slice %538 {offsets = [0, 0], sizes = [8, 64], strides = [1, 1]} : vector<8x96xf32> to vector<8x64xf32>
    %541 = arith.addf %539, %540 : vector<8x64xf32>
    %542 = arith.negf %541 : vector<8x64xf32>
    %543 = math.exp %542 : vector<8x64xf32>
    %cst_108 = arith.constant 1.000000e+00 : f32
    %544 = vector.broadcast %cst_108 : f32 to vector<8x64xf32>
    %545 = arith.addf %544, %543 : vector<8x64xf32>
    %546 = arith.divf %544, %545 : vector<8x64xf32>
    %547 = vector.extract_strided_slice %546 {offsets = [0, 0], sizes = [8, 32], strides = [1, 1]} : vector<8x64xf32> to vector<8x32xf32>
    %548 = vector.extract_strided_slice %546 {offsets = [0, 32], sizes = [8, 32], strides = [1, 1]} : vector<8x64xf32> to vector<8x32xf32>
    %549 = vector.extract_strided_slice %537 {offsets = [0, 64], sizes = [8, 32], strides = [1, 1]} : vector<8x96xf32> to vector<8x32xf32>
    %550 = vector.extract_strided_slice %538 {offsets = [0, 64], sizes = [8, 32], strides = [1, 1]} : vector<8x96xf32> to vector<8x32xf32>
    %551 = arith.addf %550, %405 : vector<8x32xf32>
    %552 = arith.mulf %547, %551 : vector<8x32xf32>
    %553 = arith.addf %549, %552 : vector<8x32xf32>
    %554 = math.tanh %553 : vector<8x32xf32>
    %cst_109 = arith.constant 1.000000e+00 : f32
    %555 = vector.broadcast %cst_109 : f32 to vector<8x32xf32>
    %556 = arith.subf %555, %548 : vector<8x32xf32>
    %557 = arith.mulf %556, %554 : vector<8x32xf32>
    %558 = arith.mulf %548, %536 : vector<8x32xf32>
    %559 = arith.addf %557, %558 : vector<8x32xf32>
    %560 = vector.extract_strided_slice %399 {offsets = [56, 0], sizes = [8, 96], strides = [1, 1]} : vector<64x96xf32> to vector<8x96xf32>
    %cst_110 = arith.constant dense<0.000000e+00> : vector<8x96xf32>
    %561 = tpu.matmul %559, %401, %cst_110 {dimension_numbers = #tpu.dot_dimension_numbers<[1], [0], [0], [1], [0, 0, 1, 1], [], []>} : vector<8x32xf32>, vector<32x96xf32>, vector<8x96xf32> -> vector<8x96xf32>
    %562 = vector.extract_strided_slice %560 {offsets = [0, 0], sizes = [8, 64], strides = [1, 1]} : vector<8x96xf32> to vector<8x64xf32>
    %563 = vector.extract_strided_slice %561 {offsets = [0, 0], sizes = [8, 64], strides = [1, 1]} : vector<8x96xf32> to vector<8x64xf32>
    %564 = arith.addf %562, %563 : vector<8x64xf32>
    %565 = arith.negf %564 : vector<8x64xf32>
    %566 = math.exp %565 : vector<8x64xf32>
    %cst_111 = arith.constant 1.000000e+00 : f32
    %567 = vector.broadcast %cst_111 : f32 to vector<8x64xf32>
    %568 = arith.addf %567, %566 : vector<8x64xf32>
    %569 = arith.divf %567, %568 : vector<8x64xf32>
    %570 = vector.extract_strided_slice %569 {offsets = [0, 0], sizes = [8, 32], strides = [1, 1]} : vector<8x64xf32> to vector<8x32xf32>
    %571 = vector.extract_strided_slice %569 {offsets = [0, 32], sizes = [8, 32], strides = [1, 1]} : vector<8x64xf32> to vector<8x32xf32>
    %572 = vector.extract_strided_slice %560 {offsets = [0, 64], sizes = [8, 32], strides = [1, 1]} : vector<8x96xf32> to vector<8x32xf32>
    %573 = vector.extract_strided_slice %561 {offsets = [0, 64], sizes = [8, 32], strides = [1, 1]} : vector<8x96xf32> to vector<8x32xf32>
    %574 = arith.addf %573, %405 : vector<8x32xf32>
    %575 = arith.mulf %570, %574 : vector<8x32xf32>
    %576 = arith.addf %572, %575 : vector<8x32xf32>
    %577 = math.tanh %576 : vector<8x32xf32>
    %cst_112 = arith.constant 1.000000e+00 : f32
    %578 = vector.broadcast %cst_112 : f32 to vector<8x32xf32>
    %579 = arith.subf %578, %571 : vector<8x32xf32>
    %580 = arith.mulf %579, %577 : vector<8x32xf32>
    %581 = arith.mulf %571, %559 : vector<8x32xf32>
    %582 = arith.addf %580, %581 : vector<8x32xf32>
    %c1_113 = arith.constant 1 : index
    %c0_114 = arith.constant 0 : index
    %c0_115 = arith.constant 0 : index
    %583 = vector.load %arg5[%c1_113, %c0_114, %c0_115] : memref<2x32x96xf32, #tpu.memory_space<vmem>>, vector<1x32x96xf32>
    %584 = vector.shape_cast %583 : vector<1x32x96xf32> to vector<32x96xf32>
    %cst_116 = arith.constant dense<0.000000e+00> : vector<8x96xf32>
    %585 = tpu.matmul %203, %584, %cst_116 {dimension_numbers = #tpu.dot_dimension_numbers<[1], [0], [0], [1], [0, 0, 1, 1], [], []>} : vector<8x32xf32>, vector<32x96xf32>, vector<8x96xf32> -> vector<8x96xf32>
    %c1_117 = arith.constant 1 : index
    %c0_118 = arith.constant 0 : index
    %c0_119 = arith.constant 0 : index
    %586 = vector.load %arg6[%c1_117, %c0_118, %c0_119] : memref<2x32x96xf32, #tpu.memory_space<vmem>>, vector<1x32x96xf32>
    %587 = vector.shape_cast %586 : vector<1x32x96xf32> to vector<32x96xf32>
    %cst_120 = arith.constant dense<0.000000e+00> : vector<8x96xf32>
    %588 = tpu.matmul %225, %587, %cst_120 {dimension_numbers = #tpu.dot_dimension_numbers<[1], [0], [0], [1], [0, 0, 1, 1], [], []>} : vector<8x32xf32>, vector<32x96xf32>, vector<8x96xf32> -> vector<8x96xf32>
    %589 = arith.addf %585, %588 : vector<8x96xf32>
    %c1_121 = arith.constant 1 : index
    %c0_122 = arith.constant 0 : index
    %c0_123 = arith.constant 0 : index
    %590 = vector.load %arg7[%c1_121, %c0_122, %c0_123] : memref<2x1x96xf32, #tpu.memory_space<vmem>>, vector<1x1x96xf32>
    %591 = vector.shape_cast %590 : vector<1x1x96xf32> to vector<1x96xf32>
    %592 = vector.broadcast %591 : vector<1x96xf32> to vector<8x96xf32>
    %593 = arith.addf %589, %592 : vector<8x96xf32>
    %c1_124 = arith.constant 1 : index
    %c0_125 = arith.constant 0 : index
    %c0_126 = arith.constant 0 : index
    %594 = vector.load %arg9[%c1_124, %c0_125, %c0_126] : memref<2x1x32xf32, #tpu.memory_space<vmem>>, vector<1x1x32xf32>
    %595 = vector.shape_cast %594 : vector<1x1x32xf32> to vector<1x32xf32>
    %596 = vector.shape_cast %595 : vector<1x32xf32> to vector<1x32xf32>
    %597 = vector.broadcast %596 : vector<1x32xf32> to vector<8x32xf32>
    %598 = vector.extract_strided_slice %593 {offsets = [0, 0], sizes = [8, 64], strides = [1, 1]} : vector<8x96xf32> to vector<8x64xf32>
    %599 = arith.negf %598 : vector<8x64xf32>
    %600 = math.exp %599 : vector<8x64xf32>
    %cst_127 = arith.constant 1.000000e+00 : f32
    %601 = vector.broadcast %cst_127 : f32 to vector<8x64xf32>
    %602 = arith.addf %601, %600 : vector<8x64xf32>
    %603 = arith.divf %601, %602 : vector<8x64xf32>
    %604 = vector.extract_strided_slice %603 {offsets = [0, 0], sizes = [8, 32], strides = [1, 1]} : vector<8x64xf32> to vector<8x32xf32>
    %605 = vector.extract_strided_slice %603 {offsets = [0, 32], sizes = [8, 32], strides = [1, 1]} : vector<8x64xf32> to vector<8x32xf32>
    %606 = vector.extract_strided_slice %593 {offsets = [0, 64], sizes = [8, 32], strides = [1, 1]} : vector<8x96xf32> to vector<8x32xf32>
    %607 = arith.mulf %604, %597 : vector<8x32xf32>
    %608 = arith.addf %606, %607 : vector<8x32xf32>
    %609 = math.tanh %608 : vector<8x32xf32>
    %cst_128 = arith.constant 1.000000e+00 : f32
    %610 = vector.broadcast %cst_128 : f32 to vector<8x32xf32>
    %611 = arith.subf %610, %605 : vector<8x32xf32>
    %612 = arith.mulf %611, %609 : vector<8x32xf32>
    %c0_129 = arith.constant 0 : index
    %c0_130 = arith.constant 0 : index
    %613 = vector.load %arg10[%c0_129, %c0_130] : memref<32x32xf32, #tpu.memory_space<vmem>>, vector<32x32xf32>
    %cst_131 = arith.constant dense<0.000000e+00> : vector<8x32xf32>
    %614 = tpu.matmul %582, %613, %cst_131 {dimension_numbers = #tpu.dot_dimension_numbers<[1], [0], [0], [1], [0, 0, 1, 1], [], []>} : vector<8x32xf32>, vector<32x32xf32>, vector<8x32xf32> -> vector<8x32xf32>
    %c0_132 = arith.constant 0 : index
    %c0_133 = arith.constant 0 : index
    %615 = vector.load %arg11[%c0_132, %c0_133] : memref<32x32xf32, #tpu.memory_space<vmem>>, vector<32x32xf32>
    %cst_134 = arith.constant dense<0.000000e+00> : vector<8x32xf32>
    %616 = tpu.matmul %612, %615, %cst_134 {dimension_numbers = #tpu.dot_dimension_numbers<[1], [0], [0], [1], [0, 0, 1, 1], [], []>} : vector<8x32xf32>, vector<32x32xf32>, vector<8x32xf32> -> vector<8x32xf32>
    %617 = arith.addf %614, %616 : vector<8x32xf32>
    %c0_135 = arith.constant 0 : index
    %c0_136 = arith.constant 0 : index
    %618 = vector.load %arg12[%c0_135, %c0_136] : memref<1x32xf32, #tpu.memory_space<vmem>>, vector<1x32xf32>
    %619 = vector.broadcast %618 : vector<1x32xf32> to vector<8x32xf32>
    %620 = arith.addf %617, %619 : vector<8x32xf32>
    %cst_137 = arith.constant 0.000000e+00 : f32
    %621 = vector.broadcast %cst_137 : f32 to vector<8x32xf32>
    %622 = arith.maximumf %620, %621 : vector<8x32xf32>
    %c0_138 = arith.constant 0 : index
    %c0_139 = arith.constant 0 : index
    %623 = vector.load %arg13[%c0_138, %c0_139] : memref<32x5xf32, #tpu.memory_space<vmem>>, vector<32x5xf32>
    %cst_140 = arith.constant dense<0.000000e+00> : vector<8x5xf32>
    %624 = tpu.matmul %622, %623, %cst_140 {dimension_numbers = #tpu.dot_dimension_numbers<[1], [0], [0], [1], [0, 0, 1, 1], [], []>} : vector<8x32xf32>, vector<32x5xf32>, vector<8x5xf32> -> vector<8x5xf32>
    %c0_141 = arith.constant 0 : index
    %c0_142 = arith.constant 0 : index
    %625 = vector.load %arg14[%c0_141, %c0_142] : memref<1x5xf32, #tpu.memory_space<vmem>>, vector<1x5xf32>
    %626 = vector.broadcast %625 : vector<1x5xf32> to vector<8x5xf32>
    %627 = arith.addf %624, %626 : vector<8x5xf32>
    %c0_143 = arith.constant 0 : index
    %c0_144 = arith.constant 0 : index
    %628 = vector.load %arg15[%c0_143, %c0_144] : memref<8x5xf32, #tpu.memory_space<vmem>>, vector<8x5xf32>
    tpu.vector_store %arg15[%c0_143, %c0_144], %627 {strides = array<i32>} : memref<8x5xf32, #tpu.memory_space<vmem>>, vector<8x5xf32>,
    return
  }
}

</mosaic_0001>

<bundles_post_ra>
// kernel: grunet_forward.1
= control target key start
LH: loop header
LB: loop body
LE: loop exit
PB: predicated region body
PF: predicated region fallthrough
CT: control target
= control target key end

     0   :  { %20 = vsyncpa [#allocation3], 0  ;;  %s5257_s0 = inlined_call_operand.vmem [shape: s32[64,1], index: 0, kind: input, shape index: {}]   ;;  %s5258_s1 = inlined_call_operand.vmem [shape: f32[2,64,96], index: 1, kind: input, shape index: {}]   ;;  %s5259_s2 = inlined_call_operand.vmem [shape: f32[2,1,96], index: 2, kind: input, shape index: {}]   ;;  %s5260_s3 = inlined_call_operand.hbm [shape: f32[2,32,96], index: 3, kind: input, shape index: {}]   ;;  %s5261_s4 = inlined_call_operand.vmem [shape: f32[2,1,32], index: 4, kind: input, shape index: {}]   ;;  %s5262_s5 = inlined_call_operand.hbm [shape: f32[2,32,96], index: 5, kind: input, shape index: {}]   ;;  %s5263_s6 = inlined_call_operand.hbm [shape: f32[2,32,96], index: 6, kind: input, shape index: {}]   ;;  %s5264_s7 = inlined_call_operand.vmem [shape: f32[2,1,96], index: 7, kind: input, shape index: {}]   ;;  %s5265_s8 = inlined_call_operand.hbm [shape: f32[2,32,96], index: 8, kind: input, shape index: {}]   ;;  %s5266_s9 = inlined_call_operand.vmem [shape: f32[2,1,32], index: 9, kind: input, shape index: {}]   ;;  %s5267_s10 = inlined_call_operand.hbm [shape: f32[32,32], index: 10, kind: input, shape index: {}]   ;;  %s5268_s11 = inlined_call_operand.hbm [shape: f32[32,32], index: 11, kind: input, shape index: {}]   ;;  %s5269_s12 = inlined_call_operand.vmem [shape: f32[1,32], index: 12, kind: input, shape index: {}]   ;;  %s5270_s13 = inlined_call_operand.vmem [shape: f32[32,5], index: 13, kind: input, shape index: {}]   ;;  %s5271_s14 = inlined_call_operand.vmem [shape: f32[1,5], index: 14, kind: input, shape index: {}]   ;;  %s5272_s15 = inlined_call_operand.vmem [shape: f32[8,5], index: 15, kind: output, shape index: {}]  }
   0x1   :  { %21 = vsyncpa [#allocation5], 0 }
   0x2   :  { %22 = vsyncpa [#allocation8], 0 }
   0x3   :  { %23 = vsyncpa [#allocation11], 0  ;;  %s4350_s18 = smov [#allocation4]   ;;  %s4351_s20 = smov [#allocation7]  }
   0x4   :  { %s49_s19 = sshll.u32 %s4350_s18, 4  ;;  %s75_s21 = sshll.u32 %s4351_s20, 4  ;;  %s50_s19 = int_to_ptr.vmem [resolvable:$true] %s49_s19  ;;  %s76_s21 = int_to_ptr.vmem [resolvable:$true] %s75_s21 }
   0x5   :  { %s4230_s22 = scalar_lea.vmem %s50_s19, 1024  ;;  %p4235_p1 = scmp.lt.s32.totalorder %s50_s19, %s50_s19 }
   0x6   :  { %p4231_p0 = scmp.ne.s32.totalorder %s50_s19, %s4230_s22  ;;  %p4236_p2 = scmp.lt.s32.totalorder %s4230_s22, %s4230_s22 }
   0x8   :  { %p4237_p3 = por %p4236_p2, %p4235_p1 }
   0xa   :  { %p4238_p4 = pnand %p4237_p3, %p4231_p0 }
   0xc   :  { %4241 = shalt.err (!%p4238_p4)
}
   0xd   :  { %s4352_s23 = smov 128   ;;  %s4353_s24 = smov 8  }
   0xe   :  { %55 = dma.hbm_to_vmem [thread:$0]  %s5262_s5, 1024, %s50_s19, [#allocation5], %s4352_s23, %s4352_s23, %s4353_s24  }
   0xf   :  { %s4250_s27 = scalar_lea.vmem %s76_s21, 1024  ;;  %p4255_p6 = scmp.lt.s32.totalorder %s76_s21, %s76_s21 }
  0x10   :  { %p4251_p5 = scmp.ne.s32.totalorder %s76_s21, %s4250_s27  ;;  %p4256_p7 = scmp.lt.s32.totalorder %s4250_s27, %s4250_s27 }
  0x12   :  { %p4257_p8 = por %p4256_p7, %p4255_p6 }
  0x14   :  { %p4258_p9 = pnand %p4257_p8, %p4251_p5 }
  0x16   :  { %4261 = shalt.err (!%p4258_p9)
}
  0x17   :  { %81 = dma.hbm_to_vmem [thread:$0]  %s5265_s8, 1024, %s76_s21, [#allocation8], %s4352_s23, %s4352_s23, %s4353_s24  }
  0x18   :  { %s4354_s30 = smov [#allocation2]   ;;  %s4355_s17 = smov [#allocation6]  }
  0x19   :  { %s35_s16 = sshll.u32 %s4354_s30, 4  ;;  %s61_s18 = sshll.u32 %s4355_s17, 4  ;;  %s36_s16 = int_to_ptr.vmem [resolvable:$true] %s35_s16  ;;  %s62_s18 = int_to_ptr.vmem [resolvable:$true] %s61_s18 }
  0x1a   :  { %s4270_s5 = scalar_lea.vmem %s36_s16, 1024  ;;  %p4275_p11 = scmp.lt.s32.totalorder %s36_s16, %s36_s16 }
  0x1b   :  { %p4271_p10 = scmp.ne.s32.totalorder %s36_s16, %s4270_s5  ;;  %p4276_p12 = scmp.lt.s32.totalorder %s4270_s5, %s4270_s5 }
  0x1d   :  { %p4277_p13 = por %p4276_p12, %p4275_p11 }
  0x1f   :  { %p4278_p0 = pnand %p4277_p13, %p4271_p10 }
  0x21   :  { %4281 = shalt.err (!%p4278_p0)
}
  0x22   :  { %41 = dma.hbm_to_vmem [thread:$0]  %s5260_s3, 1024, %s36_s16, [#allocation3], %s4352_s23, %s4352_s23, %s4353_s24  }
  0x23   :  { %s4290_s8 = scalar_lea.vmem %s62_s18, 1024  ;;  %p4295_p2 = scmp.lt.s32.totalorder %s62_s18, %s62_s18 }
  0x24   :  { %p4291_p1 = scmp.ne.s32.totalorder %s62_s18, %s4290_s8  ;;  %p4296_p3 = scmp.lt.s32.totalorder %s4290_s8, %s4290_s8 }
  0x26   :  { %p4297_p4 = por %p4296_p3, %p4295_p2 }
  0x28   :  { %p4298_p5 = pnand %p4297_p4, %p4291_p1 }
  0x2a   :  { %4301 = shalt.err (!%p4298_p5)
}
  0x2b   :  { %67 = dma.hbm_to_vmem [thread:$0]  %s5263_s6, 1024, %s62_s18, [#allocation5], %s4352_s23, %s4352_s23, %s4353_s24  }
  0x2c   :  { %s4356_s25 = smov [#allocation9]   ;;  %s4357_s27 = smov [#allocation10]  }
  0x2d   :  { %s89_s26 = sshll.u32 %s4356_s25, 4  ;;  %s101_s28 = sshll.u32 %s4357_s27, 4  ;;  %s90_s26 = int_to_ptr.vmem [resolvable:$true] %s89_s26  ;;  %s102_s28 = int_to_ptr.vmem [resolvable:$true] %s101_s28 }
  0x2e   :  { %s4310_s3 = scalar_lea.vmem %s90_s26, 512  ;;  %p4315_p7 = scmp.lt.s32.totalorder %s90_s26, %s90_s26 }
  0x2f   :  { %p4311_p6 = scmp.ne.s32.totalorder %s90_s26, %s4310_s3  ;;  %p4316_p8 = scmp.lt.s32.totalorder %s4310_s3, %s4310_s3 }
  0x31   :  { %p4317_p9 = por %p4316_p8, %p4315_p7 }
  0x33   :  { %p4318_p10 = pnand %p4317_p9, %p4311_p6 }
  0x35   :  { %4321 = shalt.err (!%p4318_p10)
}
  0x36   :  { %95 = dma.hbm_to_vmem [thread:$0]  %s5267_s10, 512, %s90_s26, [#allocation8], %s4352_s23, %s4352_s23, %s4353_s24  }
  0x37   :  { %s4330_s6 = scalar_lea.vmem %s102_s28, 512  ;;  %p4335_p12 = scmp.lt.s32.totalorder %s102_s28, %s102_s28 }
  0x38   :  { %p4331_p11 = scmp.ne.s32.totalorder %s102_s28, %s4330_s6  ;;  %p4336_p13 = scmp.lt.s32.totalorder %s4330_s6, %s4330_s6 }
  0x3a   :  { %p4337_p0 = por %p4336_p13, %p4335_p12 }
  0x3c   :  { %p4338_p1 = pnand %p4337_p0, %p4331_p11 }
  0x3e   :  { %4341 = shalt.err (!%p4338_p1)
}
  0x3f   :  { %107 = dma.hbm_to_vmem [thread:$0]  %s5268_s11, 512, %s102_s28, [#allocation11], %s4352_s23, %s4352_s23, %s4353_s24  }
  0x40   :  { %4342 = dma.done.wait [#allocation3], 1024  }
  0x41   :  { %4343 = vsyncadd [#allocation3], 4294966272 }
  0x42   :  { %4344 = dma.done.wait [#allocation5], 2048  }
  0x43   :  { %4345 = vsyncadd [#allocation5], 4294965248 }
  0x44   :  { %4346 = dma.done.wait [#allocation8], 1536  }
  0x45   :  { %4347 = vsyncadd [#allocation8], 4294965760 }
  0x46   :  { %4348 = dma.done.wait [#allocation11], 512  }
  0x47   :  { %4349 = vsyncadd [#allocation11], 4294966784  ;;  %v4358_v0 = vmov 0   ;;  %v132_v1 = vld [vmem:[%s5257_s0] sm:$0xff]  ;;  %v133_v2 = vld [vmem:[%s5257_s0 + $0x8] sm:$0xff]  ;;  %v4359_v22 = vmov 0.0   ;;  %v140_v23 = vlaneseq }
  0x48   :  { %4069 = vset.pattern.permute.xlu0 %v4358_v0  ;;  %4070 = vset.pattern.permute.xlu1 %v4358_v0  ;;  %v189_v3 = vld [vmem:[%s5258_s1 + $0x38] sm:$0xff]  ;;  %v188_v5 = vld [vmem:[%s5258_s1 + $0x30] sm:$0xff]  ;;  %v187_v7 = vld [vmem:[%s5258_s1 + $0x28] sm:$0xff]  ;;  %vm197_vm0 = vcmask 523264   ;;  %s4360_s19 = smov 64   ;;  %s4361_s11 = smov 96  }
  0x49   :  { %143 = vperm.xlu0 %4069, %v132_v1   ;;  %3674 = vmatprep.subr.mxu0 %v189_v3  ;;  %v3399_v4 = vld [vmem:[%s5258_s1 + $0x78] sm:$0xff]  ;;  %v3398_v6 = vld [vmem:[%s5258_s1 + $0x70] sm:$0xff]  ;;  %v3397_v8 = vld [vmem:[%s5258_s1 + $0x68] sm:$0xff]  ;;  %v4544_v24 = vand.u32 127, %v140_v23  ;;  %vm4362_vm9 = vmmov 0   ;;  %vm482_vm10 = vcmask 261120  }
  0x4a   :  { %3702 = vmatprep.subr.mxu1 %v3399_v4  ;;  %3675 = vmatpush3.msra.mxu0 %v189_v3  ;;  %v134_v9 = vld [vmem:[%s5257_s0 + $0x10] sm:$0xff]  ;;  %v186_v10 = vld [vmem:[%s5258_s1 + $0x20] sm:$0xff]  ;;  %v185_v12 = vld [vmem:[%s5258_s1 + $0x18] sm:$0xff]  ;;  %vm3373_vm11 = vcmask 39936  }
  0x4b   :  { %3703 = vmatpush3.msra.mxu1 %v3399_v4  ;;  %3676 = vmatprep.subr.mxu0 %v188_v5  ;;  %v3396_v11 = vld [vmem:[%s5258_s1 + $0x60] sm:$0xff]  ;;  %v3395_v13 = vld [vmem:[%s5258_s1 + $0x58] sm:$0xff]  ;;  %v184_v15 = vld [vmem:[%s5258_s1 + $0x10] sm:$0xff] }
  0x4c   :  { %3704 = vmatprep.subr.mxu1 %v3398_v6  ;;  %3677 = vmatpush3.msra.mxu0 %v188_v5  ;;  %v136_v14 = vld [vmem:[%s5257_s0 + $0x20] sm:$0xff]  ;;  %v3394_v16 = vld [vmem:[%s5258_s1 + $0x50] sm:$0xff]  ;;  %v183_v17 = vld [vmem:[%s5258_s1 + $0x8] sm:$0xff] }
  0x4d   :  { %146 = vperm.xlu0 %4069, %v133_v2   ;;  %3705 = vmatpush3.msra.mxu1 %v3398_v6  ;;  %v3393_v18 = vld [vmem:[%s5258_s1 + $0x48] sm:$0xff]  ;;  %v138_v19 = vld [vmem:[%s5257_s0 + $0x30] sm:$0xff]  ;;  %v182_v20 = vld [vmem:[%s5258_s1] sm:$0xff] }
  0x4e   :  { %3678 = vmatprep.subr.mxu0 %v187_v7  ;;  %3706 = vmatprep.subr.mxu1 %v3397_v8  ;;  %v3392_v21 = vld [vmem:[%s5258_s1 + $0x40] sm:$0xff]  ;;  %v135_v44 = vld [vmem:[%s5257_s0 + $0x18] sm:$0xff]  ;;  %v137_v45 = vld [vmem:[%s5257_s0 + $0x28] sm:$0xff] }
  0x4f   :  { %3679 = vmatpush3.msra.mxu0 %v187_v7  ;;  %3707 = vmatpush3.msra.mxu1 %v3397_v8  ;;  %v4563_v32 = vld [vmem:[%s5259_s2] ss:$0 sm:$0xff]  ;;  %v139_v46 = vld [vmem:[%s5257_s0 + $0x38] sm:$0xff]  ;;  %v4583_v48 = vld [vmem:[#allocation2 + $0x10] sm:$0xff] }
  0x50   :  { %3680 = vmatprep.subr.mxu0 %v186_v10  ;;  %3708 = vmatprep.subr.mxu1 %v3396_v11  ;;  %v3410_v38 = vld [vmem:[%s5261_s4] ss:$0 sm:$0xff]  ;;  %v4580_v47 = vld [vmem:[#allocation2 + $0x18] sm:$0xff]  ;;  %v4587_v49 = vld [vmem:[#allocation2 + $0x8] sm:$0xff] }
  0x51   :  { %149 = vperm.xlu0 %4069, %v134_v9   ;;  %3681 = vmatpush3.msra.mxu0 %v186_v10  ;;  %v4592_v50 = vld [vmem:[#allocation2] sm:$0xff] }
  0x52   :  { %3709 = vmatpush3.msra.mxu1 %v3396_v11  ;;  %3682 = vmatprep.subr.mxu0 %v185_v12 }
  0x53   :  { %3710 = vmatprep.subr.mxu1 %v3395_v13  ;;  %3683 = vmatpush3.msra.mxu0 %v185_v12 }
  0x54   :  { %3711 = vmatpush3.msra.mxu1 %v3395_v13  ;;  %3684 = vmatprep.subr.mxu0 %v184_v15 }
  0x55   :  { %155 = vperm.xlu0 %4069, %v136_v14   ;;  %3712 = vmatprep.subr.mxu1 %v3394_v16 }
  0x56   :  { %3685 = vmatpush3.msra.mxu0 %v184_v15  ;;  %3713 = vmatpush3.msra.mxu1 %v3394_v16 }
  0x57   :  { %3686 = vmatprep.subr.mxu0 %v183_v17  ;;  %3714 = vmatprep.subr.mxu1 %v3393_v18 }
  0x58   :  { %3687 = vmatpush3.msra.mxu0 %v183_v17  ;;  %3715 = vmatpush3.msra.mxu1 %v3393_v18 }
  0x59   :  { %161 = vperm.xlu0 %4069, %v138_v19   ;;  %3688 = vmatprep.subr.mxu0 %v182_v20 }
  0x5a   :  { %3716 = vmatprep.subr.mxu1 %v3392_v21  ;;  %3689 = vmatpush3.msra.mxu0 %v182_v20 }
  0x5b   :  { %3717 = vmatpush3.msra.mxu1 %v3392_v21  ;;  %3730 = vmatprep.subr.mxu0 %v4359_v22 }
  0x5c   :  { %3741 = vmatprep.subr.mxu1 %v4359_v22 }
  0xc4   :  { %v144_v25 = vpop.permute.xlu0 %143 }
  0xc5   :  { %vm166_vm1 = vcmp.eq.s32.totalorder %v144_v25, %v4544_v24 }
  0xc6   :  { %v174_v26 = vsel %vm166_vm1, 1.0, %v4359_v22 }
  0xc7   :  { %3690 = vmatprep.mubr.msk.f32.mxu0 %vm197_vm0, %v174_v26  ;;  %3718 = vmatprep.mubr.msk.f32.mxu1 %vm197_vm0, %v174_v26 }
  0xc8   :  { %v147_v27 = vpop.permute.xlu0 %146 }
  0xc9   :  { %vm167_vm2 = vcmp.eq.s32.totalorder %v147_v27, %v4544_v24 }
  0xca   :  { %v175_v28 = vsel %vm167_vm2, 1.0, %v4359_v22 }
  0xcb   :  { %3691 = vmatmul.mubr.msk.f32.vlgmr.msra.gmra.mxu0 %vm197_vm0, %v175_v28  ;;  %3719 = vmatmul.mubr.msk.f32.vlgmr.msra.gmra.mxu1 %vm197_vm0, %v175_v28 }
  0xcc   :  { %v150_v29 = vpop.permute.xlu0 %149  ;;  %3731 = vmatpush3.msra.mxu0 %v4580_v47  ;;  %3742 = vmatpush3.msra.mxu1 %v4580_v47 }
  0xcd   :  { %vm168_vm3 = vcmp.eq.s32.totalorder %v150_v29, %v4544_v24  ;;  %3732 = vmatprep.subr.mxu0 %v4359_v22  ;;  %3743 = vmatprep.subr.mxu1 %v4359_v22 }
  0xce   :  { %v176_v30 = vsel %vm168_vm3, 1.0, %v4359_v22  ;;  %3733 = vmatpush3.msra.mxu0 %v4583_v48  ;;  %3744 = vmatpush3.msra.mxu1 %v4583_v48 }
  0xcf   :  { %3693 = vmatprep.mubr.msk.f32.mxu0 %vm197_vm0, %v176_v30  ;;  %3721 = vmatprep.mubr.msk.f32.mxu1 %vm197_vm0, %v176_v30 }
  0xd0   :  { %3734 = vmatprep.subr.mxu0 %v4359_v22  ;;  %3745 = vmatprep.subr.mxu1 %v4359_v22  ;;  %v156_v54 = vpop.permute.xlu0 %155 }
  0xd1   :  { %3735 = vmatpush3.msra.mxu0 %v4587_v49  ;;  %3746 = vmatpush3.msra.mxu1 %v4587_v49  ;;  %vm170_vm4 = vcmp.eq.s32.totalorder %v156_v54, %v4544_v24 }
  0xd2   :  { %3736 = vmatprep.subr.mxu0 %v4359_v22  ;;  %3747 = vmatprep.subr.mxu1 %v4359_v22  ;;  %v178_v58 = vsel %vm170_vm4, 1.0, %v4359_v22 }
  0xd3   :  { %3737 = vmatpush3.msra.mxu0 %v4592_v50  ;;  %3748 = vmatpush3.msra.mxu1 %v4592_v50 }
  0xd4   :  { %3752 = vmatprep.subr.mxu0 %v4359_v22  ;;  %3763 = vmatprep.subr.mxu1 %v4359_v22  ;;  %v162_v56 = vpop.permute.xlu0 %161 }
  0xd5   :  { %vm172_vm6 = vcmp.eq.s32.totalorder %v162_v56, %v4544_v24 }
  0xd6   :  { %v180_v61 = vsel %vm172_vm6, 1.0, %v4359_v22 }
 0x18b   :  { %v4558_v31 = vpop.f32.mrf.mxu0  ;;  %v4681_v29 = vpop.f32.mrf.mxu1 }
 0x18c   :  { %v294_v11 = vadd.f32 %v4558_v31, %v4563_v32 }
 0x18d   :  { %v288_v33 = vpop.f32.mrf.mxu0  ;;  %v4683_v30 = vpop.f32.mrf.mxu1 }
 0x18e   :  { %v289_v34 = vadd.f32 %v4563_v32, %v288_v33 }
 0x190   :  { %v3411_v35 = vmul.f32 -1.442695, %v289_v34 }
 0x192   :  { %4071 = vpow2.f32 %v3411_v35 }
 0x19f   :  { %v4072_v36 = vpop.eup %4071 }
 0x1a0   :  { %v463_v37 = vadd.f32 1.0, %v4072_v36 }
 0x1a2   :  { %4073 = vrcp.f32 %v463_v37 }
 0x1af   :  { %v4074_v39 = vpop.eup %4073 }
 0x1b0   :  { %v466_v40 = vmul.f32 %v4074_v39, %v3410_v38  ;;  %v473_v51 = vsub.f32 1.0, %v4074_v39 }
 0x1b2   :  { %468 = vrot.lane.b32.xlu1 %v466_v40, %s4360_s19 }
 0x224   :  { %v469_v41 = vpop.permute.xlu1 %468 }
 0x225   :  { %v471_v42 = vadd.f32 %v469_v41, %v289_v34 }
 0x227   :  { %4075 = vtanh.f32 %v471_v42 }
 0x234   :  { %v4076_v43 = vpop.eup %4075 }
 0x235   :  { %475 = vrot.lane.b32.xlu1 %v4076_v43, %s4361_s11 }
 0x239   :  { %152 = vperm.xlu1 %4070, %v135_v44  }
 0x23d   :  { %158 = vperm.xlu1 %4070, %v137_v45  }
 0x241   :  { %164 = vperm.xlu1 %4070, %v139_v46  }
 0x245   :  { %562 = vrot.lane.b32.xlu1 %v3410_v38, %s4360_s19 }
 0x2a7   :  { %v476_v52 = vpop.permute.xlu1 %475 }
 0x2a8   :  { %v4605_v53 = vmul.f32 %v476_v52, %v473_v51 }
 0x2aa   :  { %480 = vrot.lane.b32.xlu0 %v4605_v53, %s4361_s11 }
 0x2b4   :  { %v153_v55 = vpop.permute.xlu1 %152 }
 0x2b5   :  { %vm169_vm5 = vcmp.eq.s32.totalorder %v153_v55, %v4544_v24 }
 0x2b6   :  { %v177_v57 = vsel %vm169_vm5, 1.0, %v4359_v22 }
 0x2b7   :  { %3694 = vmatmul.mubr.msk.f32.gmra.mxu0 %vm197_vm0, %v177_v57  ;;  %3722 = vmatmul.mubr.msk.f32.gmra.mxu1 %vm197_vm0, %v177_v57 }
 0x2b8   :  { %v159_v59 = vpop.permute.xlu1 %158  ;;  %3696 = vmatprep.mubr.msk.f32.mxu0 %vm197_vm0, %v178_v58  ;;  %3724 = vmatprep.mubr.msk.f32.mxu1 %vm197_vm0, %v178_v58 }
 0x2b9   :  { %vm171_vm7 = vcmp.eq.s32.totalorder %v159_v59, %v4544_v24 }
 0x2ba   :  { %v179_v60 = vsel %vm171_vm7, 1.0, %v4359_v22 }
 0x2bb   :  { %3697 = vmatmul.mubr.msk.f32.gmra.mxu0 %vm197_vm0, %v179_v60  ;;  %3725 = vmatmul.mubr.msk.f32.gmra.mxu1 %vm197_vm0, %v179_v60 }
 0x2bc   :  { %3699 = vmatprep.mubr.msk.f32.mxu0 %vm197_vm0, %v180_v61  ;;  %3727 = vmatprep.mubr.msk.f32.mxu1 %vm197_vm0, %v180_v61  ;;  %v165_v62 = vpop.permute.xlu1 %164 }
 0x2bd   :  { %vm173_vm8 = vcmp.eq.s32.totalorder %v165_v62, %v4544_v24 }
 0x2be   :  { %v181_v63 = vsel %vm173_vm8, 1.0, %v4359_v22 }
 0x2bf   :  { %3700 = vmatmul.mubr.msk.f32.gmra.mxu0 %vm197_vm0, %v181_v63  ;;  %3728 = vmatmul.mubr.msk.f32.gmra.mxu1 %vm197_vm0, %v181_v63 }
 0x2c0   :  { %3738 = vmatprep.mubr.msk.f32.mxu0 %vm4362_vm9, %v4359_v22  ;;  %3749 = vmatprep.mubr.msk.f32.mxu1 %vm4362_vm9, %v4359_v22  ;;  %v4657_v7 = vpop.permute.xlu1 %562 }
 0x31c   :  { %v4633_v0 = vpop.permute.xlu0 %480 }
 0x31d   :  { %3739 = vmatmul.mubr.msk.f32.vlgmr.msra.gmra.mxu0 %vm482_vm10, %v4633_v0 }
 0x31e   :  { %3753 = vmatpush3.msra.mxu0 %v4580_v47  ;;  %3760 = vmatprep.mubr.msk.f32.mxu0 %vm4362_vm9, %v4359_v22 }
 0x31f   :  { %3754 = vmatprep.subr.mxu0 %v4359_v22 }
 0x320   :  { %3755 = vmatpush3.msra.mxu0 %v4583_v48 }
 0x321   :  { %3756 = vmatprep.subr.mxu0 %v4359_v22 }
 0x322   :  { %3757 = vmatpush3.msra.mxu0 %v4587_v49 }
 0x323   :  { %3758 = vmatprep.subr.mxu0 %v4359_v22 }
 0x324   :  { %3759 = vmatpush3.msra.mxu0 %v4592_v50 }
 0x325   :  { %3774 = vmatprep.subr.mxu0 %v4359_v22 }
 0x377   :  { %v4647_v1 = vpop.f32.mrf.mxu0  ;;  %v4685_v31 = vpop.f32.mrf.mxu1 }
 0x379   :  { %v298_v2 = vpop.f32.mrf.mxu0  ;;  %v4687_v33 = vpop.f32.mrf.mxu1 }
 0x37a   :  { %v299_v41 = vadd.f32 %v4563_v32, %v298_v2 }
 0x37b   :  { %v4649_v3 = vpop.f32.mrf.mxu0  ;;  %v4689_v34 = vpop.f32.mrf.mxu1 }
 0x37d   :  { %v4651_v4 = vpop.f32.mrf.mxu0  ;;  %v4691_v35 = vpop.f32.mrf.mxu1 }
 0x37f   :  { %v4653_v5 = vpop.f32.mrf.mxu0  ;;  %v4693_v36 = vpop.f32.mrf.mxu1 }
 0x381   :  { %v4655_v6 = vpop.f32.mrf.mxu0  ;;  %v4695_v37 = vpop.f32.mrf.mxu1 }
 0x3dd   :  { %v551_v8 = vpop.f32.mrf.mxu0 }
 0x3de   :  { %v565_v9 = vadd.f32 %v4657_v7, %v551_v8  ;;  %v555_v12 = vadd.f32 %v551_v8, %v294_v11  ;;  %v304_v8 = vadd.f32 %v4647_v1, %v4563_v32 }
 0x3df   :  { %v3740_v10 = vpop.f32.mrf.mxu0 }
 0x3e0   :  { %567 = vrot.lane.b32.xlu0 %v565_v9, %s4360_s19  ;;  %v3413_v13 = vmul.f32 -1.442695, %v555_v12 }
 0x3e2   :  { %4077 = vpow2.f32 %v3413_v13 }
 0x3ef   :  { %v4078_v14 = vpop.eup %4077 }
 0x3f0   :  { %v559_v15 = vadd.f32 1.0, %v4078_v14 }
 0x3f2   :  { %4079 = vrcp.f32 %v559_v15 }
 0x3ff   :  { %v4080_v16 = vpop.eup %4079 }
 0x400   :  { %v577_v23 = vsub.f32 1.0, %v4080_v16  ;;  %v583_v25 = vmul.f32 %v4080_v16, %v4605_v53 }
 0x452   :  { %v568_v17 = vpop.permute.xlu0 %567 }
 0x453   :  { %v570_v18 = vmul.f32 %v4080_v16, %v568_v17 }
 0x455   :  { %572 = vrot.lane.b32.xlu1 %v570_v18, %s4360_s19 }
 0x4c7   :  { %v573_v19 = vpop.permute.xlu1 %572 }
 0x4c8   :  { %v575_v20 = vadd.f32 %v573_v19, %v294_v11 }
 0x4ca   :  { %4081 = vtanh.f32 %v575_v20 }
 0x4d7   :  { %v4082_v21 = vpop.eup %4081 }
 0x4d8   :  { %579 = vrot.lane.b32.xlu0 %v4082_v21, %s4361_s11 }
 0x54a   :  { %v580_v24 = vpop.permute.xlu0 %579 }
 0x54b   :  { %v582_v26 = vmul.f32 %v580_v24, %v577_v23 }
 0x54d   :  { %v584_v27 = vadd.f32 %v583_v25, %v582_v26 }
 0x54f   :  { %586 = vrot.lane.b32.xlu1 %v584_v27, %s4361_s11 }
 0x5c1   :  { %v4667_v28 = vpop.permute.xlu1 %586 }
 0x5c2   :  { %3750 = vmatmul.mubr.msk.f32.vlgmr.msra.gmra.mxu1 %vm482_vm10, %v4667_v28 }
 0x5c3   :  { %3764 = vmatpush3.msra.mxu1 %v4580_v47  ;;  %3771 = vmatprep.mubr.msk.f32.mxu1 %vm4362_vm9, %v4359_v22 }
 0x5c4   :  { %3765 = vmatprep.subr.mxu1 %v4359_v22 }
 0x5c5   :  { %3766 = vmatpush3.msra.mxu1 %v4583_v48 }
 0x5c6   :  { %3767 = vmatprep.subr.mxu1 %v4359_v22 }
 0x5c7   :  { %3768 = vmatpush3.msra.mxu1 %v4587_v49 }
 0x5c8   :  { %3769 = vmatprep.subr.mxu1 %v4359_v22 }
 0x5c9   :  { %3770 = vmatpush3.msra.mxu1 %v4592_v50 }
 0x5ca   :  { %3785 = vmatprep.subr.mxu1 %v4359_v22 }
 0x682   :  { %v656_v38 = vpop.f32.mrf.mxu1 }
 0x683   :  { %v667_v39 = vadd.f32 %v656_v38, %v4657_v7  ;;  %v660_v42 = vadd.f32 %v656_v38, %v299_v41  ;;  %v309_v38 = vadd.f32 %v4563_v32, %v4651_v4 }
 0x684   :  { %v3751_v40 = vpop.f32.mrf.mxu1 }
 0x685   :  { %669 = vrot.lane.b32.xlu0 %v667_v39, %s4360_s19  ;;  %v3415_v43 = vmul.f32 -1.442695, %v660_v42 }
 0x687   :  { %4083 = vpow2.f32 %v3415_v43 }
 0x694   :  { %v4084_v44 = vpop.eup %4083 }
 0x695   :  { %v664_v45 = vadd.f32 1.0, %v4084_v44 }
 0x697   :  { %4085 = vrcp.f32 %v664_v45 }
 0x6a4   :  { %v4086_v46 = vpop.eup %4085 }
 0x6a5   :  { %v679_v56 = vsub.f32 1.0, %v4086_v46  ;;  %v685_v58 = vmul.f32 %v4086_v46, %v584_v27 }
 0x6f7   :  { %v670_v51 = vpop.permute.xlu0 %669 }
 0x6f8   :  { %v672_v52 = vmul.f32 %v4086_v46, %v670_v51 }
 0x6fa   :  { %674 = vrot.lane.b32.xlu1 %v672_v52, %s4360_s19 }
 0x76c   :  { %v675_v53 = vpop.permute.xlu1 %674 }
 0x76d   :  { %v677_v54 = vadd.f32 %v675_v53, %v299_v41 }
 0x76f   :  { %4087 = vtanh.f32 %v677_v54 }
 0x77c   :  { %v4088_v55 = vpop.eup %4087 }
 0x77d   :  { %681 = vrot.lane.b32.xlu0 %v4088_v55, %s4361_s11 }
 0x7ef   :  { %v682_v57 = vpop.permute.xlu0 %681 }
 0x7f0   :  { %v684_v59 = vmul.f32 %v682_v57, %v679_v56 }
 0x7f2   :  { %v686_v60 = vadd.f32 %v685_v58, %v684_v59 }
 0x7f4   :  { %688 = vrot.lane.b32.xlu1 %v686_v60, %s4361_s11 }
 0x866   :  { %v4703_v61 = vpop.permute.xlu1 %688 }
 0x867   :  { %3761 = vmatmul.mubr.msk.f32.vlgmr.msra.gmra.mxu0 %vm482_vm10, %v4703_v61 }
 0x868   :  { %3775 = vmatpush3.msra.mxu0 %v4580_v47  ;;  %3782 = vmatprep.mubr.msk.f32.mxu0 %vm4362_vm9, %v4359_v22 }
 0x869   :  { %3776 = vmatprep.subr.mxu0 %v4359_v22 }
 0x86a   :  { %3777 = vmatpush3.msra.mxu0 %v4583_v48 }
 0x86b   :  { %3778 = vmatprep.subr.mxu0 %v4359_v22 }
 0x86c   :  { %3779 = vmatpush3.msra.mxu0 %v4587_v49 }
 0x86d   :  { %3780 = vmatprep.subr.mxu0 %v4359_v22 }
 0x86e   :  { %3781 = vmatpush3.msra.mxu0 %v4592_v50 }
 0x86f   :  { %3796 = vmatprep.subr.mxu0 %v4359_v22 }
 0x927   :  { %v758_v62 = vpop.f32.mrf.mxu0 }
 0x928   :  { %v769_v63 = vadd.f32 %v758_v62, %v4657_v7  ;;  %v762_v9 = vadd.f32 %v758_v62, %v304_v8 }
 0x929   :  { %v3762_v2 = vpop.f32.mrf.mxu0 }
 0x92a   :  { %771 = vrot.lane.b32.xlu0 %v769_v63, %s4360_s19  ;;  %v3417_v10 = vmul.f32 -1.442695, %v762_v9  ;;  %v3427_v2 = vld [vmem:[%s5261_s4 + $0x1] ss:$0 sm:$0xff] }
 0x92c   :  { %4089 = vpow2.f32 %v3417_v10 }
 0x939   :  { %v4090_v11 = vpop.eup %4089 }
 0x93a   :  { %v766_v12 = vadd.f32 1.0, %v4090_v11 }
 0x93c   :  { %4091 = vrcp.f32 %v766_v12 }
 0x949   :  { %v4092_v13 = vpop.eup %4091 }
 0x94a   :  { %v781_v19 = vsub.f32 1.0, %v4092_v13  ;;  %v787_v1 = vmul.f32 %v4092_v13, %v686_v60 }
 0x99c   :  { %v772_v14 = vpop.permute.xlu0 %771 }
 0x99d   :  { %v774_v15 = vmul.f32 %v4092_v13, %v772_v14 }
 0x99f   :  { %776 = vrot.lane.b32.xlu1 %v774_v15, %s4360_s19 }
 0xa11   :  { %v777_v16 = vpop.permute.xlu1 %776 }
 0xa12   :  { %v779_v17 = vadd.f32 %v777_v16, %v304_v8 }
 0xa14   :  { %4093 = vtanh.f32 %v779_v17 }
 0xa21   :  { %v4094_v18 = vpop.eup %4093 }
 0xa22   :  { %783 = vrot.lane.b32.xlu0 %v4094_v18, %s4361_s11 }
 0xa94   :  { %v784_v20 = vpop.permute.xlu0 %783 }
 0xa95   :  { %v786_v21 = vmul.f32 %v784_v20, %v781_v19 }
 0xa97   :  { %v788_v23 = vadd.f32 %v787_v1, %v786_v21 }
 0xa99   :  { %790 = vrot.lane.b32.xlu1 %v788_v23, %s4361_s11 }
 0xb0b   :  { %v4724_v24 = vpop.permute.xlu1 %790 }
 0xb0c   :  { %3772 = vmatmul.mubr.msk.f32.vlgmr.msra.gmra.mxu1 %vm482_vm10, %v4724_v24 }
 0xb0d   :  { %3786 = vmatpush3.msra.mxu1 %v4580_v47  ;;  %3793 = vmatprep.mubr.msk.f32.mxu1 %vm4362_vm9, %v4359_v22 }
 0xb0e   :  { %3787 = vmatprep.subr.mxu1 %v4359_v22 }
 0xb0f   :  { %3788 = vmatpush3.msra.mxu1 %v4583_v48 }
 0xb10   :  { %3789 = vmatprep.subr.mxu1 %v4359_v22 }
 0xb11   :  { %3790 = vmatpush3.msra.mxu1 %v4587_v49 }
 0xb12   :  { %3791 = vmatprep.subr.mxu1 %v4359_v22 }
 0xb13   :  { %3792 = vmatpush3.msra.mxu1 %v4592_v50 }
 0xb14   :  { %3807 = vmatprep.subr.mxu1 %v4359_v22 }
 0xbcc   :  { %v860_v25 = vpop.f32.mrf.mxu1 }
 0xbcd   :  { %v871_v26 = vadd.f32 %v860_v25, %v4657_v7  ;;  %v864_v39 = vadd.f32 %v860_v25, %v309_v38 }
 0xbce   :  { %v3773_v27 = vpop.f32.mrf.mxu1 }
 0xbcf   :  { %873 = vrot.lane.b32.xlu0 %v871_v26, %s4360_s19  ;;  %v3419_v40 = vmul.f32 -1.442695, %v864_v39 }
 0xbd1   :  { %4095 = vpow2.f32 %v3419_v40  ;;  %v4786_v40 = vld [vmem:[#allocation2 + $0x38] sm:$0xff] }
 0xbde   :  { %v4096_v41 = vpop.eup %4095 }
 0xbdf   :  { %v868_v42 = vadd.f32 1.0, %v4096_v41 }
 0xbe1   :  { %4097 = vrcp.f32 %v868_v42  ;;  %v4792_v42 = vld [vmem:[#allocation2 + $0x30] sm:$0xff] }
 0xbee   :  { %v4098_v43 = vpop.eup %4097 }
 0xbef   :  { %v883_v53 = vsub.f32 1.0, %v4098_v43  ;;  %v889_v4 = vmul.f32 %v4098_v43, %v788_v23 }
 0xc41   :  { %v874_v44 = vpop.permute.xlu0 %873 }
 0xc42   :  { %v876_v45 = vmul.f32 %v4098_v43, %v874_v44  ;;  %v4798_v43 = vld [vmem:[#allocation2 + $0x28] sm:$0xff]  ;;  %v4802_v44 = vld [vmem:[#allocation2 + $0x20] sm:$0xff] }
 0xc44   :  { %878 = vrot.lane.b32.xlu1 %v876_v45, %s4360_s19 }
 0xcb6   :  { %v879_v46 = vpop.permute.xlu1 %878 }
 0xcb7   :  { %v881_v51 = vadd.f32 %v879_v46, %v309_v38 }
 0xcb9   :  { %4099 = vtanh.f32 %v881_v51 }
 0xcc6   :  { %v4100_v52 = vpop.eup %4099 }
 0xcc7   :  { %885 = vrot.lane.b32.xlu0 %v4100_v52, %s4361_s11 }
 0xd39   :  { %v886_v54 = vpop.permute.xlu0 %885 }
 0xd3a   :  { %v888_v55 = vmul.f32 %v886_v54, %v883_v53 }
 0xd3c   :  { %v890_v56 = vadd.f32 %v889_v4, %v888_v55 }
 0xd3e   :  { %892 = vrot.lane.b32.xlu1 %v890_v56, %s4361_s11 }
 0xdb0   :  { %v4745_v57 = vpop.permute.xlu1 %892 }
 0xdb1   :  { %3783 = vmatmul.mubr.msk.f32.vlgmr.msra.gmra.mxu0 %vm482_vm10, %v4745_v57 }
 0xdb2   :  { %3797 = vmatpush3.msra.mxu0 %v4580_v47  ;;  %3804 = vmatprep.mubr.msk.f32.mxu0 %vm4362_vm9, %v4359_v22  ;;  %v4762_v47 = vld [vmem:[%s5259_s2 + $0x1] ss:$0 sm:$0xff] }
 0xdb3   :  { %3798 = vmatprep.subr.mxu0 %v4359_v22  ;;  %v446_v58 = vadd.f32 %v4693_v36, %v4762_v47  ;;  %v314_v36 = vadd.f32 %v4649_v3, %v4563_v32 }
 0xdb4   :  { %3799 = vmatpush3.msra.mxu0 %v4583_v48 }
 0xdb5   :  { %3800 = vmatprep.subr.mxu0 %v4359_v22  ;;  %v3428_v59 = vmul.f32 -1.442695, %v446_v58 }
 0xdb6   :  { %3801 = vmatpush3.msra.mxu0 %v4587_v49 }
 0xdb7   :  { %3802 = vmatprep.subr.mxu0 %v4359_v22  ;;  %4101 = vpow2.f32 %v3428_v59 }
 0xdb8   :  { %3803 = vmatpush3.msra.mxu0 %v4592_v50 }
 0xdb9   :  { %3818 = vmatprep.subr.mxu0 %v4359_v22 }
 0xdc4   :  { %v4102_v48 = vpop.eup %4101 }
 0xdc5   :  { %v1213_v60 = vadd.f32 1.0, %v4102_v48  ;;  %v441_v48 = vadd.f32 %v4762_v47, %v4695_v37 }
 0xdc7   :  { %4103 = vrcp.f32 %v1213_v60 }
 0xdd4   :  { %v4104_v63 = vpop.eup %4103 }
 0xdd5   :  { %v1216_v8 = vmul.f32 %v4104_v63, %v3427_v2  ;;  %v1223_v1 = vsub.f32 1.0, %v4104_v63 }
 0xe71   :  { %v962_v49 = vpop.f32.mrf.mxu0 }
 0xe72   :  { %v973_v62 = vadd.f32 %v962_v49, %v4657_v7  ;;  %v966_v9 = vadd.f32 %v962_v49, %v314_v36 }
 0xe73   :  { %v3784_v50 = vpop.f32.mrf.mxu0 }
 0xe74   :  { %975 = vrot.lane.b32.xlu0 %v973_v62, %s4360_s19  ;;  %v3421_v10 = vmul.f32 -1.442695, %v966_v9 }
 0xe76   :  { %4105 = vpow2.f32 %v3421_v10 }
 0xe78   :  { %1218 = vrot.lane.b32.xlu0 %v1216_v8, %s4360_s19 }
 0xe83   :  { %v4106_v11 = vpop.eup %4105 }
 0xe84   :  { %v970_v12 = vadd.f32 1.0, %v4106_v11 }
 0xe86   :  { %4107 = vrcp.f32 %v970_v12 }
 0xe93   :  { %v4108_v13 = vpop.eup %4107 }
 0xe94   :  { %v985_v25 = vsub.f32 1.0, %v4108_v13  ;;  %v991_v27 = vmul.f32 %v4108_v13, %v890_v56  ;;  %v319_v56 = vadd.f32 %v4563_v32, %v4655_v6 }
 0xee6   :  { %v976_v14 = vpop.permute.xlu0 %975 }
 0xee7   :  { %v978_v15 = vmul.f32 %v4108_v13, %v976_v14 }
 0xee9   :  { %980 = vrot.lane.b32.xlu1 %v978_v15, %s4360_s19 }
 0xeea   :  { %v1219_v16 = vpop.permute.xlu0 %1218 }
 0xeeb   :  { %v1221_v17 = vadd.f32 %v1219_v16, %v446_v58 }
 0xeed   :  { %4109 = vtanh.f32 %v1221_v17 }
 0xefa   :  { %v4110_v18 = vpop.eup %4109 }
 0xefb   :  { %1225 = vrot.lane.b32.xlu0 %v4110_v18, %s4361_s11 }
 0xf5b   :  { %v981_v19 = vpop.permute.xlu1 %980 }
 0xf5c   :  { %v983_v20 = vadd.f32 %v981_v19, %v314_v36 }
 0xf5e   :  { %4111 = vtanh.f32 %v983_v20 }
 0xf6b   :  { %v4112_v3 = vpop.eup %4111 }
 0xf6c   :  { %987 = vrot.lane.b32.xlu1 %v4112_v3, %s4361_s11 }
 0xf6d   :  { %v1226_v21 = vpop.permute.xlu0 %1225 }
 0xf6e   :  { %v4777_v23 = vmul.f32 %v1226_v21, %v1223_v1 }
 0xf70   :  { %1230 = vrot.lane.b32.xlu0 %v4777_v23, %s4361_s11 }
 0xfde   :  { %v988_v26 = vpop.permute.xlu1 %987 }
 0xfdf   :  { %v990_v38 = vmul.f32 %v988_v26, %v985_v25 }
 0xfe1   :  { %v4781_v39 = vadd.f32 %v991_v27, %v990_v38 }
 0xfe2   :  { %v4806_v45 = vpop.permute.xlu0 %1230 }
 0xfe3   :  { %994 = vrot.lane.b32.xlu1 %v4781_v39, %s4361_s11 }
 0xfe7   :  { %1311 = vrot.lane.b32.xlu1 %v3427_v2, %s4360_s19 }
0x1055   :  { %v4788_v41 = vpop.permute.xlu1 %994 }
0x1056   :  { %3794 = vmatmul.mubr.msk.f32.vlgmr.msra.gmra.mxu1 %vm482_vm10, %v4788_v41 }
0x1057   :  { %3808 = vmatpush3.msra.mxu1 %v4786_v40  ;;  %3815 = vmatprep.mubr.msk.f32.mxu1 %vm4362_vm9, %v4359_v22 }
0x1058   :  { %3809 = vmatprep.subr.mxu1 %v4359_v22 }
0x1059   :  { %3810 = vmatpush3.msra.mxu1 %v4792_v42  ;;  %v4824_v53 = vpop.permute.xlu1 %1311 }
0x105a   :  { %3811 = vmatprep.subr.mxu1 %v4359_v22 }
0x105b   :  { %3812 = vmatpush3.msra.mxu1 %v4798_v43 }
0x105c   :  { %3813 = vmatprep.subr.mxu1 %v4359_v22 }
0x105d   :  { %3814 = vmatpush3.msra.mxu1 %v4802_v44 }
0x105e   :  { %3816 = vmatmul.mubr.msk.f32.vlgmr.msra.gmra.mxu1 %vm482_vm10, %v4806_v45  ;;  %3829 = vmatprep.subr.mxu1 %v4359_v22 }
0x105f   :  { %3830 = vmatpush3.msra.mxu1 %v4786_v40  ;;  %3837 = vmatprep.mubr.msk.f32.mxu1 %vm4362_vm9, %v4359_v22 }
0x1060   :  { %3831 = vmatprep.subr.mxu1 %v4359_v22 }
0x1061   :  { %3832 = vmatpush3.msra.mxu1 %v4792_v42 }
0x1062   :  { %3833 = vmatprep.subr.mxu1 %v4359_v22 }
0x1063   :  { %3834 = vmatpush3.msra.mxu1 %v4798_v43 }
0x1064   :  { %3835 = vmatprep.subr.mxu1 %v4359_v22 }
0x1065   :  { %3836 = vmatpush3.msra.mxu1 %v4802_v44 }
0x1066   :  { %3851 = vmatprep.subr.mxu1 %v4359_v22 }
0x1116   :  { %v1064_v46 = vpop.f32.mrf.mxu1 }
0x1117   :  { %v1075_v51 = vadd.f32 %v1064_v46, %v4657_v7  ;;  %v1068_v58 = vadd.f32 %v1064_v46, %v319_v56 }
0x1118   :  { %v3795_v52 = vpop.f32.mrf.mxu1 }
0x1119   :  { %1077 = vrot.lane.b32.xlu0 %v1075_v51, %s4360_s19  ;;  %v3423_v59 = vmul.f32 -1.442695, %v1068_v58 }
0x111b   :  { %4113 = vpow2.f32 %v3423_v59 }
0x111e   :  { %v1300_v54 = vpop.f32.mrf.mxu1 }
0x111f   :  { %v1314_v4 = vadd.f32 %v4824_v53, %v1300_v54  ;;  %v1304_v60 = vadd.f32 %v1300_v54, %v441_v48  ;;  %v436_v54 = vadd.f32 %v4689_v34, %v4762_v47 }
0x1120   :  { %v3817_v55 = vpop.f32.mrf.mxu1 }
0x1121   :  { %1316 = vrot.lane.b32.xlu1 %v1314_v4, %s4360_s19  ;;  %v3430_v49 = vmul.f32 -1.442695, %v1304_v60 }
0x1123   :  { %4115 = vpow2.f32 %v3430_v49 }
0x1128   :  { %v4114_v62 = vpop.eup %4113 }
0x1129   :  { %v1072_v63 = vadd.f32 1.0, %v4114_v62 }
0x112b   :  { %4117 = vrcp.f32 %v1072_v63 }
0x1130   :  { %v4116_v50 = vpop.eup %4115 }
0x1131   :  { %v1308_v2 = vadd.f32 1.0, %v4116_v50 }
0x1133   :  { %4119 = vrcp.f32 %v1308_v2 }
0x1138   :  { %v4118_v8 = vpop.eup %4117 }
0x1139   :  { %v1087_v16 = vsub.f32 1.0, %v4118_v8  ;;  %v1093_v18 = vmul.f32 %v4118_v8, %v4781_v39 }
0x1140   :  { %v4120_v32 = vpop.eup %4119 }
0x1141   :  { %v1326_v3 = vsub.f32 1.0, %v4120_v32  ;;  %v1332_v21 = vmul.f32 %v4120_v32, %v4777_v23 }
0x118b   :  { %v1078_v36 = vpop.permute.xlu0 %1077 }
0x118c   :  { %v1080_v9 = vmul.f32 %v4118_v8, %v1078_v36 }
0x118e   :  { %1082 = vrot.lane.b32.xlu0 %v1080_v9, %s4360_s19 }
0x1193   :  { %v1317_v6 = vpop.permute.xlu1 %1316 }
0x1194   :  { %v1319_v10 = vmul.f32 %v4120_v32, %v1317_v6 }
0x1196   :  { %1321 = vrot.lane.b32.xlu1 %v1319_v10, %s4360_s19 }
0x1200   :  { %v1083_v37 = vpop.permute.xlu0 %1082 }
0x1201   :  { %v1085_v11 = vadd.f32 %v1083_v37, %v319_v56  ;;  %v431_v37 = vadd.f32 %v4762_v47, %v4691_v35 }
0x1203   :  { %4121 = vtanh.f32 %v1085_v11 }
0x1208   :  { %v1322_v12 = vpop.permute.xlu1 %1321 }
0x1209   :  { %v1324_v13 = vadd.f32 %v1322_v12, %v441_v48 }
0x120b   :  { %4123 = vtanh.f32 %v1324_v13 }
0x1210   :  { %v4122_v14 = vpop.eup %4121 }
0x1211   :  { %1089 = vrot.lane.b32.xlu0 %v4122_v14, %s4361_s11 }
0x1218   :  { %v4124_v15 = vpop.eup %4123 }
0x1219   :  { %1328 = vrot.lane.b32.xlu1 %v4124_v15, %s4361_s11 }
0x1283   :  { %v1090_v17 = vpop.permute.xlu0 %1089 }
0x1284   :  { %v1092_v19 = vmul.f32 %v1090_v17, %v1087_v16 }
0x1286   :  { %v4837_v20 = vadd.f32 %v1093_v18, %v1092_v19 }
0x1288   :  { %1096 = vrot.lane.b32.xlu0 %v4837_v20, %s4361_s11 }
0x128b   :  { %v1329_v1 = vpop.permute.xlu1 %1328 }
0x128c   :  { %v1331_v25 = vmul.f32 %v1329_v1, %v1326_v3 }
0x128e   :  { %v1333_v26 = vadd.f32 %v1332_v21, %v1331_v25 }
0x1290   :  { %1335 = vrot.lane.b32.xlu1 %v1333_v26, %s4361_s11 }
0x12fa   :  { %v4843_v27 = vpop.permute.xlu0 %1096 }
0x12fb   :  { %3805 = vmatmul.mubr.msk.f32.vlgmr.msra.gmra.mxu0 %vm482_vm10, %v4843_v27 }
0x12fc   :  { %3819 = vmatpush3.msra.mxu0 %v4786_v40  ;;  %3826 = vmatprep.mubr.msk.f32.mxu0 %vm4362_vm9, %v4359_v22 }
0x12fd   :  { %3820 = vmatprep.subr.mxu0 %v4359_v22 }
0x12fe   :  { %3821 = vmatpush3.msra.mxu0 %v4792_v42 }
0x12ff   :  { %3822 = vmatprep.subr.mxu0 %v4359_v22 }
0x1300   :  { %3823 = vmatpush3.msra.mxu0 %v4798_v43 }
0x1301   :  { %3824 = vmatprep.subr.mxu0 %v4359_v22 }
0x1302   :  { %3825 = vmatpush3.msra.mxu0 %v4802_v44  ;;  %v4856_v23 = vpop.permute.xlu1 %1335 }
0x1303   :  { %3827 = vmatmul.mubr.msk.f32.vlgmr.msra.gmra.mxu0 %vm482_vm10, %v4856_v23  ;;  %3840 = vmatprep.subr.mxu0 %v4359_v22 }
0x1304   :  { %3841 = vmatpush3.msra.mxu0 %v4786_v40  ;;  %3848 = vmatprep.mubr.msk.f32.mxu0 %vm4362_vm9, %v4359_v22 }
0x1305   :  { %3842 = vmatprep.subr.mxu0 %v4359_v22 }
0x1306   :  { %3843 = vmatpush3.msra.mxu0 %v4792_v42 }
0x1307   :  { %3844 = vmatprep.subr.mxu0 %v4359_v22 }
0x1308   :  { %3845 = vmatpush3.msra.mxu0 %v4798_v43 }
0x1309   :  { %3846 = vmatprep.subr.mxu0 %v4359_v22 }
0x130a   :  { %3847 = vmatpush3.msra.mxu0 %v4802_v44 }
0x130b   :  { %3862 = vmatprep.subr.mxu0 %v4359_v22 }
0x13bb   :  { %v4871_v38 = vpop.f32.mrf.mxu0 }
0x13bd   :  { %v3806_v39 = vpop.f32.mrf.mxu0 }
0x13c3   :  { %v1405_v46 = vpop.f32.mrf.mxu0 }
0x13c4   :  { %v1416_v51 = vadd.f32 %v1405_v46, %v4824_v53  ;;  %v1409_v4 = vadd.f32 %v1405_v46, %v436_v54 }
0x13c5   :  { %v3828_v52 = vpop.f32.mrf.mxu0 }
0x13c6   :  { %1418 = vrot.lane.b32.xlu0 %v1416_v51, %s4360_s19  ;;  %v3432_v55 = vmul.f32 -1.442695, %v1409_v4 }
0x13c8   :  { %4125 = vpow2.f32 %v3432_v55 }
0x13d5   :  { %v4126_v56 = vpop.eup %4125 }
0x13d6   :  { %v1413_v58 = vadd.f32 1.0, %v4126_v56 }
0x13d8   :  { %4127 = vrcp.f32 %v1413_v58 }
0x13e5   :  { %v4128_v59 = vpop.eup %4127 }
0x13e6   :  { %v1428_v50 = vsub.f32 1.0, %v4128_v59  ;;  %v1434_v34 = vmul.f32 %v4128_v59, %v1333_v26 }
0x1438   :  { %v1419_v48 = vpop.permute.xlu0 %1418 }
0x1439   :  { %v1421_v60 = vmul.f32 %v4128_v59, %v1419_v48 }
0x143b   :  { %1423 = vrot.lane.b32.xlu1 %v1421_v60, %s4360_s19 }
0x14ad   :  { %v1424_v49 = vpop.permute.xlu1 %1423 }
0x14ae   :  { %v1426_v62 = vadd.f32 %v1424_v49, %v436_v54  ;;  %v426_v54 = vadd.f32 %v4685_v31, %v4762_v47 }
0x14b0   :  { %4129 = vtanh.f32 %v1426_v62 }
0x14bd   :  { %v4130_v63 = vpop.eup %4129 }
0x14be   :  { %1430 = vrot.lane.b32.xlu0 %v4130_v63, %s4361_s11 }
0x1530   :  { %v1431_v2 = vpop.permute.xlu0 %1430 }
0x1531   :  { %v1433_v8 = vmul.f32 %v1431_v2, %v1428_v50 }
0x1533   :  { %v1435_v36 = vadd.f32 %v1434_v34, %v1433_v8 }
0x1535   :  { %1437 = vrot.lane.b32.xlu1 %v1435_v36, %s4361_s11 }
0x15a7   :  { %v4880_v9 = vpop.permute.xlu1 %1437 }
0x15a8   :  { %3838 = vmatmul.mubr.msk.f32.vlgmr.msra.gmra.mxu1 %vm482_vm10, %v4880_v9 }
0x15a9   :  { %3852 = vmatpush3.msra.mxu1 %v4786_v40  ;;  %3859 = vmatprep.mubr.msk.f32.mxu1 %vm4362_vm9, %v4359_v22 }
0x15aa   :  { %3853 = vmatprep.subr.mxu1 %v4359_v22 }
0x15ab   :  { %3854 = vmatpush3.msra.mxu1 %v4792_v42 }
0x15ac   :  { %3855 = vmatprep.subr.mxu1 %v4359_v22 }
0x15ad   :  { %3856 = vmatpush3.msra.mxu1 %v4798_v43 }
0x15ae   :  { %3857 = vmatprep.subr.mxu1 %v4359_v22 }
0x15af   :  { %3858 = vmatpush3.msra.mxu1 %v4802_v44 }
0x15b0   :  { %3873 = vmatprep.subr.mxu1 %v4359_v22 }
0x1668   :  { %v1507_v32 = vpop.f32.mrf.mxu1 }
0x1669   :  { %v1518_v6 = vadd.f32 %v1507_v32, %v4824_v53  ;;  %v1511_v11 = vadd.f32 %v1507_v32, %v431_v37 }
0x166a   :  { %v3839_v10 = vpop.f32.mrf.mxu1 }
0x166b   :  { %1520 = vrot.lane.b32.xlu0 %v1518_v6, %s4360_s19  ;;  %v3434_v12 = vmul.f32 -1.442695, %v1511_v11 }
0x166d   :  { %4131 = vpow2.f32 %v3434_v12 }
0x167a   :  { %v4132_v13 = vpop.eup %4131 }
0x167b   :  { %v1515_v14 = vadd.f32 1.0, %v4132_v13 }
0x167d   :  { %4133 = vrcp.f32 %v1515_v14 }
0x168a   :  { %v4134_v15 = vpop.eup %4133 }
0x168b   :  { %v1530_v1 = vsub.f32 1.0, %v4134_v15  ;;  %v1536_v35 = vmul.f32 %v4134_v15, %v1435_v36 }
0x16dd   :  { %v1521_v16 = vpop.permute.xlu0 %1520 }
0x16de   :  { %v1523_v17 = vmul.f32 %v4134_v15, %v1521_v16 }
0x16e0   :  { %1525 = vrot.lane.b32.xlu1 %v1523_v17, %s4360_s19 }
0x1752   :  { %v1526_v18 = vpop.permute.xlu1 %1525 }
0x1753   :  { %v1528_v19 = vadd.f32 %v1526_v18, %v431_v37 }
0x1755   :  { %4135 = vtanh.f32 %v1528_v19 }
0x1762   :  { %v4136_v3 = vpop.eup %4135 }
0x1763   :  { %1532 = vrot.lane.b32.xlu0 %v4136_v3, %s4361_s11 }
0x17d5   :  { %v1533_v21 = vpop.permute.xlu0 %1532 }
0x17d6   :  { %v1535_v25 = vmul.f32 %v1533_v21, %v1530_v1 }
0x17d8   :  { %v1537_v26 = vadd.f32 %v1536_v35, %v1535_v25 }
0x17da   :  { %1539 = vrot.lane.b32.xlu1 %v1537_v26, %s4361_s11 }
0x184c   :  { %v4901_v39 = vpop.permute.xlu1 %1539 }
0x184d   :  { %3849 = vmatmul.mubr.msk.f32.vlgmr.msra.gmra.mxu0 %vm482_vm10, %v4901_v39 }
0x184e   :  { %3863 = vmatpush3.msra.mxu0 %v4786_v40  ;;  %3870 = vmatprep.mubr.msk.f32.mxu0 %vm4362_vm9, %v4359_v22 }
0x184f   :  { %3864 = vmatprep.subr.mxu0 %v4359_v22 }
0x1850   :  { %3865 = vmatpush3.msra.mxu0 %v4792_v42 }
0x1851   :  { %3866 = vmatprep.subr.mxu0 %v4359_v22 }
0x1852   :  { %3867 = vmatpush3.msra.mxu0 %v4798_v43 }
0x1853   :  { %3868 = vmatprep.subr.mxu0 %v4359_v22 }
0x1854   :  { %3869 = vmatpush3.msra.mxu0 %v4802_v44 }
0x190d   :  { %v1609_v46 = vpop.f32.mrf.mxu0 }
0x190e   :  { %v1620_v51 = vadd.f32 %v1609_v46, %v4824_v53  ;;  %v1613_v4 = vadd.f32 %v1609_v46, %v426_v54 }
0x190f   :  { %v3850_v52 = vpop.f32.mrf.mxu0 }
0x1910   :  { %1622 = vrot.lane.b32.xlu0 %v1620_v51, %s4360_s19  ;;  %v3436_v55 = vmul.f32 -1.442695, %v1613_v4 }
0x1912   :  { %4137 = vpow2.f32 %v3436_v55 }
0x191f   :  { %v4138_v56 = vpop.eup %4137 }
0x1920   :  { %v1617_v58 = vadd.f32 1.0, %v4138_v56 }
0x1922   :  { %4139 = vrcp.f32 %v1617_v58 }
0x192f   :  { %v4140_v59 = vpop.eup %4139 }
0x1930   :  { %v1632_v50 = vsub.f32 1.0, %v4140_v59  ;;  %v1638_v31 = vmul.f32 %v4140_v59, %v1537_v26  ;;  %v416_v26 = vadd.f32 %v4681_v29, %v4762_v47 }
0x1982   :  { %v1623_v48 = vpop.permute.xlu0 %1622 }
0x1983   :  { %v1625_v60 = vmul.f32 %v4140_v59, %v1623_v48  ;;  %v1949_v48 = vld [vmem:[#allocation4 + $0x18] sm:$0xff] }
0x1985   :  { %1627 = vrot.lane.b32.xlu1 %v1625_v60, %s4360_s19 }
0x19f7   :  { %v1628_v49 = vpop.permute.xlu1 %1627 }
0x19f8   :  { %v1630_v62 = vadd.f32 %v1628_v49, %v426_v54 }
0x19fa   :  { %4141 = vtanh.f32 %v1630_v62 }
0x1a07   :  { %v4142_v63 = vpop.eup %4141 }
0x1a08   :  { %1634 = vrot.lane.b32.xlu0 %v4142_v63, %s4361_s11 }
0x1a7a   :  { %v1635_v2 = vpop.permute.xlu0 %1634 }
0x1a7b   :  { %v1637_v34 = vmul.f32 %v1635_v2, %v1632_v50 }
0x1a7d   :  { %v1639_v8 = vadd.f32 %v1638_v31, %v1637_v34  ;;  %v1948_v31 = vld [vmem:[#allocation4 + $0x10] sm:$0xff]  ;;  %v1947_v34 = vld [vmem:[#allocation4 + $0x8] sm:$0xff] }
0x1a7f   :  { %1641 = vrot.lane.b32.xlu1 %v1639_v8, %s4361_s11 }
0x1af1   :  { %v4921_v36 = vpop.permute.xlu1 %1641 }
0x1af2   :  { %3860 = vmatmul.mubr.msk.f32.vlgmr.msra.gmra.mxu1 %vm482_vm10, %v4921_v36 }
0x1af3   :  { %3874 = vmatpush3.msra.mxu1 %v4786_v40  ;;  %3881 = vmatprep.mubr.msk.f32.mxu1 %vm4362_vm9, %v4359_v22  ;;  %v421_v40 = vadd.f32 %v4762_v47, %v4687_v33 }
0x1af4   :  { %3875 = vmatprep.subr.mxu1 %v4359_v22 }
0x1af5   :  { %3876 = vmatpush3.msra.mxu1 %v4792_v42 }
0x1af6   :  { %3877 = vmatprep.subr.mxu1 %v4359_v22 }
0x1af7   :  { %3878 = vmatpush3.msra.mxu1 %v4798_v43 }
0x1af8   :  { %3879 = vmatprep.subr.mxu1 %v4359_v22 }
0x1af9   :  { %3880 = vmatpush3.msra.mxu1 %v4802_v44 }
0x1afa   :  { %3904 = vmatprep.subr.mxu1 %v1949_v48 }
0x1bb2   :  { %v1711_v32 = vpop.f32.mrf.mxu1 }
0x1bb3   :  { %v1722_v6 = vadd.f32 %v1711_v32, %v4824_v53  ;;  %v1715_v37 = vadd.f32 %v1711_v32, %v421_v40 }
0x1bb4   :  { %v3861_v10 = vpop.f32.mrf.mxu1 }
0x1bb5   :  { %1724 = vrot.lane.b32.xlu0 %v1722_v6, %s4360_s19  ;;  %v3438_v11 = vmul.f32 -1.442695, %v1715_v37 }
0x1bb7   :  { %4143 = vpow2.f32 %v3438_v11 }
0x1bc4   :  { %v4144_v42 = vpop.eup %4143 }
0x1bc5   :  { %v1719_v12 = vadd.f32 1.0, %v4144_v42  ;;  %v1952_v42 = vld [vmem:[#allocation6 + $0x10] sm:$0xff] }
0x1bc7   :  { %4145 = vrcp.f32 %v1719_v12  ;;  %v1951_v12 = vld [vmem:[#allocation6 + $0x8] sm:$0xff] }
0x1bd4   :  { %v4146_v43 = vpop.eup %4145 }
0x1bd5   :  { %v1734_v17 = vsub.f32 1.0, %v4146_v43  ;;  %v1740_v33 = vmul.f32 %v4146_v43, %v1639_v8  ;;  %v1946_v8 = vld [vmem:[#allocation4] sm:$0xff] }
0x1c27   :  { %v1725_v13 = vpop.permute.xlu0 %1724 }
0x1c28   :  { %v1727_v14 = vmul.f32 %v4146_v43, %v1725_v13 }
0x1c2a   :  { %1729 = vrot.lane.b32.xlu1 %v1727_v14, %s4360_s19 }
0x1c9c   :  { %v1730_v44 = vpop.permute.xlu1 %1729 }
0x1c9d   :  { %v1732_v15 = vadd.f32 %v1730_v44, %v421_v40 }
0x1c9f   :  { %4147 = vtanh.f32 %v1732_v15 }
0x1cac   :  { %v4148_v16 = vpop.eup %4147 }
0x1cad   :  { %1736 = vrot.lane.b32.xlu0 %v4148_v16, %s4361_s11 }
0x1d1f   :  { %v1737_v18 = vpop.permute.xlu0 %1736 }
0x1d20   :  { %v1739_v19 = vmul.f32 %v1737_v18, %v1734_v17 }
0x1d22   :  { %v1741_v3 = vadd.f32 %v1740_v33, %v1739_v19 }
0x1d24   :  { %1743 = vrot.lane.b32.xlu1 %v1741_v3, %s4361_s11 }
0x1d96   :  { %v4941_v1 = vpop.permute.xlu1 %1743 }
0x1d97   :  { %3871 = vmatmul.mubr.msk.f32.vlgmr.msra.gmra.mxu0 %vm482_vm10, %v4941_v1 }
0x1e57   :  { %v1813_v21 = vpop.f32.mrf.mxu0 }
0x1e58   :  { %v1824_v35 = vadd.f32 %v1813_v21, %v4824_v53  ;;  %v1817_v46 = vadd.f32 %v1813_v21, %v416_v26  ;;  %v3460_v21 = vld [vmem:[%s5266_s9] ss:$0 sm:$0xff] }
0x1e59   :  { %v3872_v25 = vpop.f32.mrf.mxu0 }
0x1e5a   :  { %1826 = vrot.lane.b32.xlu0 %v1824_v35, %s4360_s19  ;;  %v3440_v51 = vmul.f32 -1.442695, %v1817_v46 }
0x1e5c   :  { %4149 = vpow2.f32 %v3440_v51  ;;  %v5006_v51 = vld [vmem:[#allocation7 + $0x18] sm:$0xff] }
0x1e69   :  { %v4150_v52 = vpop.eup %4149 }
0x1e6a   :  { %v1821_v54 = vadd.f32 1.0, %v4150_v52  ;;  %v5008_v52 = vld [vmem:[#allocation7 + $0x10] sm:$0xff] }
0x1e6c   :  { %4151 = vrcp.f32 %v1821_v54  ;;  %v5013_v54 = vld [vmem:[#allocation7 + $0x8] sm:$0xff] }
0x1e79   :  { %v4152_v4 = vpop.eup %4151 }
0x1e7a   :  { %v1836_v29 = vsub.f32 1.0, %v4152_v4  ;;  %v1842_v62 = vmul.f32 %v4152_v4, %v1741_v3 }
0x1ecc   :  { %v1827_v55 = vpop.permute.xlu0 %1826 }
0x1ecd   :  { %v1829_v56 = vmul.f32 %v4152_v4, %v1827_v55  ;;  %v5019_v4 = vld [vmem:[#allocation7] sm:$0xff] }
0x1ecf   :  { %1831 = vrot.lane.b32.xlu1 %v1829_v56, %s4360_s19 }
0x1f41   :  { %v1832_v58 = vpop.permute.xlu1 %1831 }
0x1f42   :  { %v1834_v59 = vadd.f32 %v1832_v58, %v416_v26 }
0x1f44   :  { %4153 = vtanh.f32 %v1834_v59 }
0x1f51   :  { %v4154_v60 = vpop.eup %4153 }
0x1f52   :  { %1838 = vrot.lane.b32.xlu0 %v4154_v60, %s4361_s11  ;;  %v4221_v60 = vld [vmem:[%s5259_s2] ss:$0 sm:$0xff] }
0x1fc4   :  { %v1839_v49 = vpop.permute.xlu0 %1838 }
0x1fc5   :  { %v1841_v63 = vmul.f32 %v1839_v49, %v1836_v29  ;;  %v324_v29 = vadd.f32 %v4221_v60, %v4653_v5 }
0x1fc7   :  { %v1843_v50 = vadd.f32 %v1842_v62, %v1841_v63  ;;  %v1170_v49 = vadd.f32 %v4871_v38, %v324_v29 }
0x1fc9   :  { %1845 = vrot.lane.b32.xlu1 %v1843_v50, %s4361_s11  ;;  %v3425_v62 = vmul.f32 -1.442695, %v1170_v49 }
0x203b   :  { %v1846_v2 = vpop.permute.xlu1 %1845 }
0x203c   :  { %3882 = vmatmul.mubr.msk.f32.vlgmr.msra.gmra.mxu1 %vm482_vm10, %v1846_v2 }
0x203d   :  { %3905 = vmatpush3.msra.mxu1 %v1949_v48  ;;  %3912 = vmatprep.mubr.msk.f32.mxu1 %vm482_vm10, %v4633_v0  ;;  %v1177_v48 = vadd.f32 %v4871_v38, %v4657_v7 }
0x203e   :  { %3906 = vmatprep.subr.mxu1 %v1948_v31 }
0x203f   :  { %3907 = vmatpush3.msra.mxu1 %v1948_v31 }
0x2040   :  { %3908 = vmatprep.subr.mxu1 %v1947_v34 }
0x2041   :  { %3909 = vmatpush3.msra.mxu1 %v1947_v34 }
0x2042   :  { %3910 = vmatprep.subr.mxu1 %v1946_v8 }
0x2043   :  { %3911 = vmatpush3.msra.mxu1 %v1946_v8 }
0x2044   :  { %3913 = vmatmul.mubr.msk.f32.vlgmr.msra.gmra.mxu1 %vm482_vm10, %v4667_v28  ;;  %3935 = vmatprep.subr.mxu1 %v4359_v22 }
0x2045   :  { %3915 = vmatprep.mubr.msk.f32.mxu1 %vm482_vm10, %v4703_v61  ;;  %v411_v61 = vadd.f32 %v4762_v47, %v4683_v30  ;;  %v1950_v30 = vld [vmem:[#allocation6] sm:$0xff]  ;;  %3936 = vmatpush3.msra.mxu1 %v5006_v51 }
0x2046   :  { %3937 = vmatprep.subr.mxu1 %v4359_v22 }
0x2047   :  { %3938 = vmatpush3.msra.mxu1 %v5008_v52 }
0x2048   :  { %3916 = vmatmul.mubr.msk.f32.gmra.mxu1 %vm482_vm10, %v4724_v24  ;;  %3939 = vmatprep.subr.mxu1 %v4359_v22 }
0x2049   :  { %3918 = vmatprep.mubr.msk.f32.mxu1 %vm482_vm10, %v4745_v57  ;;  %3940 = vmatpush3.msra.mxu1 %v5013_v54 }
0x204a   :  { %3941 = vmatprep.subr.mxu1 %v4359_v22 }
0x204b   :  { %3942 = vmatpush3.msra.mxu1 %v5019_v4 }
0x204c   :  { %3919 = vmatmul.mubr.msk.f32.gmra.mxu1 %vm482_vm10, %v4788_v41  ;;  %3957 = vmatprep.subr.mxu1 %v4359_v22 }
0x204d   :  { %3921 = vmatprep.mubr.msk.f32.mxu1 %vm482_vm10, %v4843_v27 }
0x20fc   :  { %v1915_v0 = vpop.f32.mrf.mxu1 }
0x20fd   :  { %v1926_v28 = vadd.f32 %v1915_v0, %v4824_v53  ;;  %v1919_v6 = vadd.f32 %v1915_v0, %v411_v61  ;;  %v1953_v53 = vld [vmem:[#allocation6 + $0x18] sm:$0xff] }
0x20fe   :  { %v3883_v32 = vpop.f32.mrf.mxu1  ;;  %3884 = vmatprep.subr.mxu0 %v1953_v53 }
0x20ff   :  { %1928 = vrot.lane.b32.xlu0 %v1926_v28, %s4360_s19  ;;  %v3442_v24 = vmul.f32 -1.442695, %v1919_v6  ;;  %3885 = vmatpush3.msra.mxu0 %v1953_v53 }
0x2100   :  { %3886 = vmatprep.subr.mxu0 %v1952_v42 }
0x2101   :  { %4155 = vpow2.f32 %v3442_v24  ;;  %3887 = vmatpush3.msra.mxu0 %v1952_v42 }
0x2102   :  { %3888 = vmatprep.subr.mxu0 %v1951_v12 }
0x2103   :  { %3889 = vmatpush3.msra.mxu0 %v1951_v12 }
0x2104   :  { %3890 = vmatprep.subr.mxu0 %v1950_v30  ;;  %v4992_v17 = vpop.f32.mrf.mxu1 }
0x2105   :  { %3891 = vmatpush3.msra.mxu0 %v1950_v30 }
0x2106   :  { %3924 = vmatprep.subr.mxu0 %v4359_v22 }
0x210e   :  { %v4156_v10 = vpop.eup %4155 }
0x210f   :  { %v1923_v57 = vadd.f32 1.0, %v4156_v10 }
0x2111   :  { %4157 = vrcp.f32 %v1923_v57 }
0x211e   :  { %v4158_v40 = vpop.eup %4157 }
0x211f   :  { %v1938_v43 = vsub.f32 1.0, %v4158_v40  ;;  %v1944_v14 = vmul.f32 %v4158_v40, %v1843_v50 }
0x2171   :  { %v1929_v41 = vpop.permute.xlu0 %1928 }
0x2172   :  { %v1931_v37 = vmul.f32 %v4158_v40, %v1929_v41 }
0x2174   :  { %1933 = vrot.lane.b32.xlu1 %v1931_v37, %s4360_s19 }
0x21e6   :  { %v1934_v27 = vpop.permute.xlu1 %1933 }
0x21e7   :  { %v1936_v11 = vadd.f32 %v1934_v27, %v411_v61 }
0x21e9   :  { %4159 = vtanh.f32 %v1936_v11 }
0x21f6   :  { %v4160_v47 = vpop.eup %4159 }
0x21f7   :  { %1940 = vrot.lane.b32.xlu0 %v4160_v47, %s4361_s11 }
0x2269   :  { %v1941_v13 = vpop.permute.xlu0 %1940 }
0x226a   :  { %v1943_v44 = vmul.f32 %v1941_v13, %v1938_v43 }
0x226c   :  { %v1945_v15 = vadd.f32 %v1944_v14, %v1943_v44 }
0x226e   :  { %1955 = vrot.lane.b32.xlu1 %v1945_v15, %s4361_s11 }
0x22e0   :  { %v1956_v16 = vpop.permute.xlu1 %1955 }
0x22e1   :  { %3892 = vmatprep.mubr.msk.f32.mxu0 %vm482_vm10, %v1956_v16 }
0x22e2   :  { %3893 = vmatmul.mubr.msk.f32.vlgmr.msra.gmra.mxu0 %vm482_vm10, %v1846_v2 }
0x22e3   :  { %3895 = vmatprep.mubr.msk.f32.mxu0 %vm482_vm10, %v4941_v1  ;;  %3925 = vmatpush3.msra.mxu0 %v5006_v51 }
0x22e4   :  { %3926 = vmatprep.subr.mxu0 %v4359_v22 }
0x22e5   :  { %3927 = vmatpush3.msra.mxu0 %v5008_v52 }
0x22e6   :  { %3896 = vmatmul.mubr.msk.f32.gmra.mxu0 %vm482_vm10, %v4921_v36  ;;  %v2135_v36 = vpop.f32.mrf.mxu1  ;;  %3928 = vmatprep.subr.mxu0 %v4359_v22 }
0x22e7   :  { %3898 = vmatprep.mubr.msk.f32.mxu0 %vm482_vm10, %v4901_v39  ;;  %3929 = vmatpush3.msra.mxu0 %v5013_v54 }
0x22e8   :  { %3930 = vmatprep.subr.mxu0 %v4359_v22 }
0x22e9   :  { %3931 = vmatpush3.msra.mxu0 %v5019_v4 }
0x22ea   :  { %3899 = vmatmul.mubr.msk.f32.gmra.mxu0 %vm482_vm10, %v4880_v9  ;;  %v4999_v9 = vld [vmem:[%s5264_s7] ss:$0 sm:$0xff]  ;;  %3946 = vmatprep.subr.mxu0 %v4359_v22 }
0x22eb   :  { %3901 = vmatprep.mubr.msk.f32.mxu0 %vm482_vm10, %v4856_v23 }
0x22ee   :  { %3902 = vmatmul.mubr.msk.f32.gmra.mxu0 %vm482_vm10, %v4806_v45 }
0x22ef   :  { %3932 = vmatprep.mubr.msk.f32.mxu0 %vm4362_vm9, %v4359_v22 }
0x23a2   :  { %v4994_v18 = vpop.f32.mrf.mxu0 }
0x23a3   :  { %v2141_v12 = vadd.f32 %v4992_v17, %v4994_v18 }
0x23a4   :  { %v2025_v33 = vpop.f32.mrf.mxu0 }
0x23a5   :  { %v2136_v19 = vadd.f32 %v2135_v36, %v2025_v33  ;;  %v2182_v30 = vadd.f32 %v4999_v9, %v2141_v12 }
0x23a6   :  { %v5057_v0 = vpop.f32.mrf.mxu0 }
0x23a7   :  { %v2181_v23 = vadd.f32 %v4999_v9, %v2136_v19 }
0x23a8   :  { %v5059_v28 = vpop.f32.mrf.mxu0 }
0x23a9   :  { %v3461_v39 = vmul.f32 -1.442695, %v2181_v23 }
0x23aa   :  { %v5061_v32 = vpop.f32.mrf.mxu0 }
0x23ab   :  { %4161 = vpow2.f32 %v3461_v39 }
0x23ac   :  { %v5063_v61 = vpop.f32.mrf.mxu0 }
0x23ae   :  { %v5065_v6 = vpop.f32.mrf.mxu0 }
0x23b0   :  { %v5067_v24 = vpop.f32.mrf.mxu0 }
0x23b8   :  { %v4162_v3 = vpop.eup %4161 }
0x23b9   :  { %v2203_v1 = vadd.f32 1.0, %v4162_v3 }
0x23bb   :  { %4163 = vrcp.f32 %v2203_v1 }
0x23c8   :  { %v4164_v35 = vpop.eup %4163 }
0x23c9   :  { %v2206_v25 = vmul.f32 %v4164_v35, %v3460_v21  ;;  %v2213_v56 = vsub.f32 1.0, %v4164_v35 }
0x23cb   :  { %2208 = vrot.lane.b32.xlu0 %v2206_v25, %s4360_s19 }
0x243d   :  { %v2209_v26 = vpop.permute.xlu0 %2208 }
0x243e   :  { %v2211_v46 = vadd.f32 %v2209_v26, %v2181_v23 }
0x2440   :  { %4165 = vtanh.f32 %v2211_v46 }
0x2441   :  { %4167 = vpow2.f32 %v3425_v62 }
0x244d   :  { %v4166_v55 = vpop.eup %4165 }
0x244e   :  { %2215 = vrot.lane.b32.xlu1 %v4166_v55, %s4361_s11  ;;  %v4168_v63 = vpop.eup %4167 }
0x244f   :  { %v1174_v50 = vadd.f32 1.0, %v4168_v63 }
0x2451   :  { %4169 = vrcp.f32 %v1174_v50 }
0x2452   :  { %2301 = vrot.lane.b32.xlu1 %v3460_v21, %s4360_s19  ;;  %v3917_v21 = vpop.f32.mrf.mxu1 }
0x2454   :  { %v2145_v35 = vpop.f32.mrf.mxu1 }
0x2456   :  { %v5099_v25 = vpop.f32.mrf.mxu1 }
0x2458   :  { %v5101_v26 = vpop.f32.mrf.mxu1 }
0x245e   :  { %v4170_v7 = vpop.eup %4169 }
0x245f   :  { %v1189_v37 = vsub.f32 1.0, %v4170_v7  ;;  %v1195_v11 = vmul.f32 %v4170_v7, %v4837_v20 }
0x24c0   :  { %v2216_v58 = vpop.permute.xlu1 %2215 }
0x24c1   :  { %v5032_v59 = vmul.f32 %v2216_v58, %v2213_v56 }
0x24c3   :  { %2220 = vrot.lane.b32.xlu0 %v5032_v59, %s4361_s11 }
0x24c4   :  { %v5069_v10 = vpop.permute.xlu1 %2301 }
0x24c7   :  { %1179 = vrot.lane.b32.xlu0 %v1177_v48, %s4360_s19  ;;  %v2146_v48 = vadd.f32 %v2145_v35, %v5059_v28 }
0x24c9   :  { %v2183_v60 = vadd.f32 %v4999_v9, %v2146_v48 }
0x2535   :  { %v2221_v2 = vpop.permute.xlu0 %2220 }
0x2536   :  { %3933 = vmatmul.mubr.msk.f32.vlgmr.msra.gmra.mxu0 %vm482_vm10, %v2221_v2 }
0x2537   :  { %3947 = vmatpush3.msra.mxu0 %v5006_v51  ;;  %3954 = vmatprep.mubr.msk.f32.mxu0 %vm4362_vm9, %v4359_v22 }
0x2538   :  { %3948 = vmatprep.subr.mxu0 %v4359_v22 }
0x2539   :  { %v1180_v31 = vpop.permute.xlu0 %1179  ;;  %3949 = vmatpush3.msra.mxu0 %v5008_v52 }
0x253a   :  { %v1182_v5 = vmul.f32 %v4170_v7, %v1180_v31  ;;  %3950 = vmatprep.subr.mxu0 %v4359_v22 }
0x253b   :  { %3951 = vmatpush3.msra.mxu0 %v5013_v54 }
0x253c   :  { %1184 = vrot.lane.b32.xlu0 %v1182_v5, %s4360_s19  ;;  %3952 = vmatprep.subr.mxu0 %v4359_v22 }
0x253d   :  { %3953 = vmatpush3.msra.mxu0 %v5019_v4 }
0x253e   :  { %3968 = vmatprep.subr.mxu0 %v4359_v22 }
0x25ae   :  { %v1185_v38 = vpop.permute.xlu0 %1184 }
0x25af   :  { %v1187_v34 = vadd.f32 %v1185_v38, %v324_v29 }
0x25b1   :  { %4171 = vtanh.f32 %v1187_v34 }
0x25be   :  { %v4172_v8 = vpop.eup %4171 }
0x25bf   :  { %1191 = vrot.lane.b32.xlu0 %v4172_v8, %s4361_s11 }
0x25f6   :  { %v2290_v57 = vpop.f32.mrf.mxu0 }
0x25f7   :  { %v2304_v40 = vadd.f32 %v5069_v10, %v2290_v57  ;;  %v2294_v47 = vadd.f32 %v2290_v57, %v2182_v30 }
0x25f8   :  { %v3934_v41 = vpop.f32.mrf.mxu0 }
0x25f9   :  { %2306 = vrot.lane.b32.xlu1 %v2304_v40, %s4360_s19  ;;  %v3463_v43 = vmul.f32 -1.442695, %v2294_v47 }
0x25fb   :  { %4173 = vpow2.f32 %v3463_v43 }
0x2608   :  { %v4174_v13 = vpop.eup %4173 }
0x2609   :  { %v2298_v14 = vadd.f32 1.0, %v4174_v13 }
0x260b   :  { %4175 = vrcp.f32 %v2298_v14 }
0x2618   :  { %v4176_v44 = vpop.eup %4175 }
0x2619   :  { %v2316_v33 = vsub.f32 1.0, %v4176_v44  ;;  %v2322_v23 = vmul.f32 %v4176_v44, %v5032_v59 }
0x2631   :  { %v1192_v27 = vpop.permute.xlu0 %1191 }
0x2632   :  { %v1194_v53 = vmul.f32 %v1192_v27, %v1189_v37 }
0x2634   :  { %v1196_v42 = vadd.f32 %v1195_v11, %v1194_v53  ;;  %v2151_v53 = vadd.f32 %v3917_v21, %v5057_v0  ;;  %v2156_v21 = vadd.f32 %v5101_v26, %v5063_v61 }
0x2636   :  { %2065 = vrot.lane.b32.xlu0 %v1196_v42, %s4361_s11  ;;  %v2184_v42 = vadd.f32 %v4999_v9, %v2151_v53  ;;  %v2185_v35 = vadd.f32 %v4999_v9, %v2156_v21 }
0x266b   :  { %v2307_v15 = vpop.permute.xlu1 %2306 }
0x266c   :  { %v2309_v16 = vmul.f32 %v4176_v44, %v2307_v15 }
0x266e   :  { %2311 = vrot.lane.b32.xlu1 %v2309_v16, %s4360_s19 }
0x26a8   :  { %v5079_v20 = vpop.permute.xlu0 %2065 }
0x26a9   :  { %3922 = vmatmul.mubr.msk.f32.gmra.mxu1 %vm482_vm10, %v5079_v20 }
0x26aa   :  { %3943 = vmatprep.mubr.msk.f32.mxu1 %vm4362_vm9, %v4359_v22 }
0x26e0   :  { %v2312_v17 = vpop.permute.xlu1 %2311 }
0x26e1   :  { %v2314_v18 = vadd.f32 %v2312_v17, %v2182_v30 }
0x26e3   :  { %4177 = vtanh.f32 %v2314_v18 }
0x26f0   :  { %v4178_v36 = vpop.eup %4177 }
0x26f1   :  { %2318 = vrot.lane.b32.xlu1 %v4178_v36, %s4361_s11 }
0x2763   :  { %v2319_v19 = vpop.permute.xlu1 %2318 }
0x2764   :  { %v2321_v39 = vmul.f32 %v2319_v19, %v2316_v33 }
0x2766   :  { %v2323_v3 = vadd.f32 %v2322_v23, %v2321_v39 }
0x2768   :  { %2325 = vrot.lane.b32.xlu1 %v2323_v3, %s4361_s11 }
0x2769   :  { %v5103_v46 = vpop.f32.mrf.mxu1 }
0x276b   :  { %v5105_v55 = vpop.f32.mrf.mxu1 }
0x27da   :  { %v2326_v1 = vpop.permute.xlu1 %2325 }
0x27db   :  { %3944 = vmatmul.mubr.msk.f32.vlgmr.msra.gmra.mxu1 %vm482_vm10, %v2326_v1 }
0x27dc   :  { %3958 = vmatpush3.msra.mxu1 %v5006_v51  ;;  %3965 = vmatprep.mubr.msk.f32.mxu1 %vm4362_vm9, %v4359_v22 }
0x27dd   :  { %3959 = vmatprep.subr.mxu1 %v4359_v22 }
0x27de   :  { %3960 = vmatpush3.msra.mxu1 %v5008_v52 }
0x27df   :  { %3961 = vmatprep.subr.mxu1 %v4359_v22 }
0x27e0   :  { %3962 = vmatpush3.msra.mxu1 %v5013_v54 }
0x27e1   :  { %3963 = vmatprep.subr.mxu1 %v4359_v22 }
0x27e2   :  { %3964 = vmatpush3.msra.mxu1 %v5019_v4 }
0x27e3   :  { %3979 = vmatprep.subr.mxu1 %v4359_v22 }
0x289b   :  { %v2395_v56 = vpop.f32.mrf.mxu1 }
0x289c   :  { %v2406_v58 = vadd.f32 %v2395_v56, %v5069_v10  ;;  %v2399_v29 = vadd.f32 %v2395_v56, %v2183_v60 }
0x289d   :  { %v3945_v59 = vpop.f32.mrf.mxu1 }
0x289e   :  { %2408 = vrot.lane.b32.xlu0 %v2406_v58, %s4360_s19  ;;  %v3465_v49 = vmul.f32 -1.442695, %v2399_v29 }
0x28a0   :  { %4179 = vpow2.f32 %v3465_v49 }
0x28ad   :  { %v4180_v62 = vpop.eup %4179 }
0x28ae   :  { %v2403_v63 = vadd.f32 1.0, %v4180_v62 }
0x28b0   :  { %4181 = vrcp.f32 %v2403_v63 }
0x28bd   :  { %v4182_v50 = vpop.eup %4181 }
0x28be   :  { %v2418_v34 = vsub.f32 1.0, %v4182_v50  ;;  %v2424_v28 = vmul.f32 %v4182_v50, %v2323_v3 }
0x2910   :  { %v2409_v2 = vpop.permute.xlu0 %2408 }
0x2911   :  { %v2411_v7 = vmul.f32 %v4182_v50, %v2409_v2 }
0x2913   :  { %2413 = vrot.lane.b32.xlu1 %v2411_v7, %s4360_s19 }
0x2985   :  { %v2414_v31 = vpop.permute.xlu1 %2413 }
0x2986   :  { %v2416_v5 = vadd.f32 %v2414_v31, %v2183_v60 }
0x2988   :  { %4183 = vtanh.f32 %v2416_v5 }
0x2995   :  { %v4184_v38 = vpop.eup %4183 }
0x2996   :  { %2420 = vrot.lane.b32.xlu0 %v4184_v38, %s4361_s11 }
0x2a08   :  { %v2421_v8 = vpop.permute.xlu0 %2420 }
0x2a09   :  { %v2423_v57 = vmul.f32 %v2421_v8, %v2418_v34  ;;  %v2161_v8 = vadd.f32 %v5099_v25, %v5061_v32 }
0x2a0b   :  { %v2425_v40 = vadd.f32 %v2424_v28, %v2423_v57 }
0x2a0d   :  { %2427 = vrot.lane.b32.xlu1 %v2425_v40, %s4361_s11 }
0x2a7f   :  { %v2428_v41 = vpop.permute.xlu1 %2427 }
0x2a80   :  { %3955 = vmatmul.mubr.msk.f32.vlgmr.msra.gmra.mxu0 %vm482_vm10, %v2428_v41 }
0x2a81   :  { %3969 = vmatpush3.msra.mxu0 %v5006_v51  ;;  %3976 = vmatprep.mubr.msk.f32.mxu0 %vm4362_vm9, %v4359_v22 }
0x2a82   :  { %3970 = vmatprep.subr.mxu0 %v4359_v22 }
0x2a83   :  { %3971 = vmatpush3.msra.mxu0 %v5008_v52 }
0x2a84   :  { %3972 = vmatprep.subr.mxu0 %v4359_v22 }
0x2a85   :  { %3973 = vmatpush3.msra.mxu0 %v5013_v54 }
0x2a86   :  { %3974 = vmatprep.subr.mxu0 %v4359_v22 }
0x2a87   :  { %3975 = vmatpush3.msra.mxu0 %v5019_v4 }
0x2a88   :  { %3990 = vmatprep.subr.mxu0 %v4359_v22 }
0x2b40   :  { %v2497_v37 = vpop.f32.mrf.mxu0 }
0x2b41   :  { %v2508_v27 = vadd.f32 %v2497_v37, %v5069_v10  ;;  %v2501_v12 = vadd.f32 %v2497_v37, %v2184_v42 }
0x2b42   :  { %v3956_v11 = vpop.f32.mrf.mxu0 }
0x2b43   :  { %2510 = vrot.lane.b32.xlu0 %v2508_v27, %s4360_s19  ;;  %v3467_v30 = vmul.f32 -1.442695, %v2501_v12 }
0x2b45   :  { %4185 = vpow2.f32 %v3467_v30 }
0x2b52   :  { %v4186_v47 = vpop.eup %4185 }
0x2b53   :  { %v2505_v43 = vadd.f32 1.0, %v4186_v47  ;;  %v2945_v47 = vld [vmem:[#allocation6 + $0x38] sm:$0xff] }
0x2b55   :  { %4187 = vrcp.f32 %v2505_v43 }
0x2b62   :  { %v4188_v13 = vpop.eup %4187 }
0x2b63   :  { %v2520_v0 = vsub.f32 1.0, %v4188_v13  ;;  %v2526_v36 = vmul.f32 %v4188_v13, %v2425_v40 }
0x2bb5   :  { %v2511_v14 = vpop.permute.xlu0 %2510 }
0x2bb6   :  { %v2513_v44 = vmul.f32 %v4188_v13, %v2511_v14  ;;  %v2944_v13 = vld [vmem:[#allocation6 + $0x30] sm:$0xff]  ;;  %v2943_v14 = vld [vmem:[#allocation6 + $0x28] sm:$0xff] }
0x2bb8   :  { %2515 = vrot.lane.b32.xlu1 %v2513_v44, %s4360_s19  ;;  %v2942_v44 = vld [vmem:[#allocation6 + $0x20] sm:$0xff] }
0x2c2a   :  { %v2516_v15 = vpop.permute.xlu1 %2515 }
0x2c2b   :  { %v2518_v16 = vadd.f32 %v2516_v15, %v2184_v42 }
0x2c2d   :  { %4189 = vtanh.f32 %v2518_v16 }
0x2c3a   :  { %v4190_v17 = vpop.eup %4189 }
0x2c3b   :  { %2522 = vrot.lane.b32.xlu0 %v4190_v17, %s4361_s11 }
0x2cad   :  { %v2523_v18 = vpop.permute.xlu0 %2522 }
0x2cae   :  { %v2525_v33 = vmul.f32 %v2523_v18, %v2520_v0 }
0x2cb0   :  { %v2527_v19 = vadd.f32 %v2526_v36, %v2525_v33  ;;  %v2166_v36 = vadd.f32 %v5105_v55, %v5067_v24 }
0x2cb2   :  { %2529 = vrot.lane.b32.xlu1 %v2527_v19, %s4361_s11  ;;  %v2187_v33 = vadd.f32 %v4999_v9, %v2166_v36 }
0x2d24   :  { %v2530_v23 = vpop.permute.xlu1 %2529 }
0x2d25   :  { %3966 = vmatmul.mubr.msk.f32.vlgmr.msra.gmra.mxu1 %vm482_vm10, %v2530_v23 }
0x2d26   :  { %3980 = vmatpush3.msra.mxu1 %v5006_v51  ;;  %3987 = vmatprep.mubr.msk.f32.mxu1 %vm4362_vm9, %v4359_v22 }
0x2d27   :  { %3981 = vmatprep.subr.mxu1 %v4359_v22 }
0x2d28   :  { %3982 = vmatpush3.msra.mxu1 %v5008_v52 }
0x2d29   :  { %3983 = vmatprep.subr.mxu1 %v4359_v22 }
0x2d2a   :  { %3984 = vmatpush3.msra.mxu1 %v5013_v54 }
0x2d2b   :  { %3985 = vmatprep.subr.mxu1 %v4359_v22 }
0x2d2c   :  { %3986 = vmatpush3.msra.mxu1 %v5019_v4 }
0x2d2d   :  { %4001 = vmatprep.subr.mxu1 %v4359_v22 }
0x2de5   :  { %v2599_v39 = vpop.f32.mrf.mxu1 }
0x2de6   :  { %v2610_v3 = vadd.f32 %v2599_v39, %v5069_v10  ;;  %v2603_v56 = vadd.f32 %v2599_v39, %v2185_v35 }
0x2de7   :  { %v3967_v1 = vpop.f32.mrf.mxu1 }
0x2de8   :  { %2612 = vrot.lane.b32.xlu0 %v2610_v3, %s4360_s19  ;;  %v3469_v58 = vmul.f32 -1.442695, %v2603_v56 }
0x2dea   :  { %4191 = vpow2.f32 %v3469_v58 }
0x2df7   :  { %v4192_v59 = vpop.eup %4191 }
0x2df8   :  { %v2607_v48 = vadd.f32 1.0, %v4192_v59 }
0x2dfa   :  { %4193 = vrcp.f32 %v2607_v48 }
0x2e07   :  { %v4194_v60 = vpop.eup %4193 }
0x2e08   :  { %v2622_v61 = vsub.f32 1.0, %v4194_v60  ;;  %v2628_v2 = vmul.f32 %v4194_v60, %v2527_v19 }
0x2e5a   :  { %v2613_v29 = vpop.permute.xlu0 %2612 }
0x2e5b   :  { %v2615_v49 = vmul.f32 %v4194_v60, %v2613_v29  ;;  %v2940_v29 = vld [vmem:[#allocation4 + $0x38] sm:$0xff] }
0x2e5d   :  { %2617 = vrot.lane.b32.xlu1 %v2615_v49, %s4360_s19 }
0x2ecf   :  { %v2618_v62 = vpop.permute.xlu1 %2617 }
0x2ed0   :  { %v2620_v63 = vadd.f32 %v2618_v62, %v2185_v35  ;;  %v2939_v62 = vld [vmem:[#allocation4 + $0x30] sm:$0xff] }
0x2ed2   :  { %4195 = vtanh.f32 %v2620_v63  ;;  %v2938_v63 = vld [vmem:[#allocation4 + $0x28] sm:$0xff] }
0x2edf   :  { %v4196_v50 = vpop.eup %4195 }
0x2ee0   :  { %2624 = vrot.lane.b32.xlu0 %v4196_v50, %s4361_s11  ;;  %v2937_v50 = vld [vmem:[#allocation4 + $0x20] sm:$0xff] }
0x2f52   :  { %v2625_v26 = vpop.permute.xlu0 %2624 }
0x2f53   :  { %v2627_v7 = vmul.f32 %v2625_v26, %v2622_v61 }
0x2f55   :  { %v2629_v31 = vadd.f32 %v2628_v2, %v2627_v7 }
0x2f57   :  { %2631 = vrot.lane.b32.xlu1 %v2629_v31, %s4361_s11 }
0x2fc9   :  { %v2632_v5 = vpop.permute.xlu1 %2631 }
0x2fca   :  { %3977 = vmatmul.mubr.msk.f32.vlgmr.msra.gmra.mxu0 %vm482_vm10, %v2632_v5 }
0x2fcb   :  { %3991 = vmatpush3.msra.mxu0 %v5006_v51  ;;  %3998 = vmatprep.mubr.msk.f32.mxu0 %vm4362_vm9, %v4359_v22 }
0x2fcc   :  { %3992 = vmatprep.subr.mxu0 %v4359_v22 }
0x2fcd   :  { %3993 = vmatpush3.msra.mxu0 %v5008_v52  ;;  %v2186_v52 = vadd.f32 %v4999_v9, %v2161_v8 }
0x2fce   :  { %3994 = vmatprep.subr.mxu0 %v4359_v22 }
0x2fcf   :  { %3995 = vmatpush3.msra.mxu0 %v5013_v54 }
0x2fd0   :  { %3996 = vmatprep.subr.mxu0 %v4359_v22 }
0x2fd1   :  { %3997 = vmatpush3.msra.mxu0 %v5019_v4 }
0x2fd2   :  { %4012 = vmatprep.subr.mxu0 %v4359_v22 }
0x308a   :  { %v2701_v38 = vpop.f32.mrf.mxu0 }
0x308b   :  { %v2712_v51 = vadd.f32 %v2701_v38, %v5069_v10  ;;  %v2705_v28 = vadd.f32 %v2701_v38, %v2186_v52 }
0x308c   :  { %v3978_v34 = vpop.f32.mrf.mxu0 }
0x308d   :  { %2714 = vrot.lane.b32.xlu0 %v2712_v51, %s4360_s19  ;;  %v3471_v57 = vmul.f32 -1.442695, %v2705_v28 }
0x308f   :  { %4197 = vpow2.f32 %v3471_v57  ;;  %v2171_v57 = vadd.f32 %v5103_v46, %v5065_v6 }
0x309c   :  { %v4198_v54 = vpop.eup %4197 }
0x309d   :  { %v2709_v40 = vadd.f32 1.0, %v4198_v54  ;;  %v2188_v54 = vadd.f32 %v4999_v9, %v2171_v57  ;;  %v3129_v9 = vld [vmem:[#allocation10 + $0x18] sm:$0xff] }
0x309f   :  { %4199 = vrcp.f32 %v2709_v40 }
0x30ac   :  { %v4200_v4 = vpop.eup %4199 }
0x30ad   :  { %v2724_v32 = vsub.f32 1.0, %v4200_v4  ;;  %v2730_v42 = vmul.f32 %v4200_v4, %v2629_v31  ;;  %v3479_v31 = vld [vmem:[%s5264_s7 + $0x1] ss:$0 sm:$0xff] }
0x30ff   :  { %v2715_v41 = vpop.permute.xlu0 %2714 }
0x3100   :  { %v2717_v37 = vmul.f32 %v4200_v4, %v2715_v41 }
0x3102   :  { %2719 = vrot.lane.b32.xlu1 %v2717_v37, %s4360_s19 }
0x3174   :  { %v2720_v27 = vpop.permute.xlu1 %2719 }
0x3175   :  { %v2722_v11 = vadd.f32 %v2720_v27, %v2186_v52 }
0x3177   :  { %4201 = vtanh.f32 %v2722_v11 }
0x3184   :  { %v4202_v53 = vpop.eup %4201 }
0x3185   :  { %2726 = vrot.lane.b32.xlu0 %v4202_v53, %s4361_s11 }
0x31f7   :  { %v2727_v25 = vpop.permute.xlu0 %2726 }
0x31f8   :  { %v2729_v12 = vmul.f32 %v2727_v25, %v2724_v32 }
0x31fa   :  { %v2731_v30 = vadd.f32 %v2730_v42, %v2729_v12  ;;  %v3128_v12 = vld [vmem:[#allocation10 + $0x10] sm:$0xff] }
0x31fc   :  { %2733 = vrot.lane.b32.xlu1 %v2731_v30, %s4361_s11 }
0x326e   :  { %v2734_v43 = vpop.permute.xlu1 %2733 }
0x326f   :  { %3988 = vmatmul.mubr.msk.f32.vlgmr.msra.gmra.mxu1 %vm482_vm10, %v2734_v43 }
0x3270   :  { %4002 = vmatpush3.msra.mxu1 %v2945_v47  ;;  %4009 = vmatprep.mubr.msk.f32.mxu1 %vm4362_vm9, %v4359_v22  ;;  %v3126_v47 = vld [vmem:[#allocation10] sm:$0xff] }
0x3271   :  { %4003 = vmatprep.subr.mxu1 %v4359_v22 }
0x3272   :  { %4004 = vmatpush3.msra.mxu1 %v2944_v13  ;;  %v3125_v13 = vld [vmem:[#allocation9 + $0x18] sm:$0xff] }
0x3273   :  { %4005 = vmatprep.subr.mxu1 %v4359_v22 }
0x3274   :  { %4006 = vmatpush3.msra.mxu1 %v2943_v14  ;;  %v3124_v14 = vld [vmem:[#allocation9 + $0x10] sm:$0xff] }
0x3275   :  { %4007 = vmatprep.subr.mxu1 %v4359_v22 }
0x3276   :  { %4008 = vmatpush3.msra.mxu1 %v2942_v44  ;;  %v3123_v44 = vld [vmem:[#allocation9 + $0x8] sm:$0xff] }
0x3277   :  { %4010 = vmatmul.mubr.msk.f32.vlgmr.msra.gmra.mxu1 %vm482_vm10, %v4806_v45  ;;  %4023 = vmatprep.subr.mxu1 %v4359_v22 }
0x3278   :  { %4031 = vmatprep.mubr.msk.f32.mxu1 %vm4362_vm9, %v4359_v22  ;;  %4024 = vmatpush3.msra.mxu1 %v3129_v9 }
0x3279   :  { %4025 = vmatprep.subr.mxu1 %v4359_v22 }
0x327a   :  { %4026 = vmatpush3.msra.mxu1 %v3128_v12 }
0x327b   :  { %4027 = vmatprep.subr.mxu1 %v4359_v22 }
0x332f   :  { %v2803_v15 = vpop.f32.mrf.mxu1 }
0x3330   :  { %v2814_v16 = vadd.f32 %v2803_v15, %v5069_v10  ;;  %v2807_v19 = vadd.f32 %v2803_v15, %v2187_v33  ;;  %v3122_v15 = vld [vmem:[#allocation9] sm:$0xff] }
0x3331   :  { %v3989_v17 = vpop.f32.mrf.mxu1 }
0x3332   :  { %2816 = vrot.lane.b32.xlu0 %v2814_v16, %s4360_s19  ;;  %v3473_v45 = vmul.f32 -1.442695, %v2807_v19 }
0x3334   :  { %4203 = vpow2.f32 %v3473_v45 }
0x3337   :  { %v3012_v0 = vpop.f32.mrf.mxu1 }
0x3339   :  { %v4011_v18 = vpop.f32.mrf.mxu1 }
0x3341   :  { %v4204_v23 = vpop.eup %4203 }
0x3342   :  { %v2811_v39 = vadd.f32 1.0, %v4204_v23 }
0x3344   :  { %4205 = vrcp.f32 %v2811_v39 }
0x3351   :  { %v4206_v3 = vpop.eup %4205 }
0x3352   :  { %v2826_v24 = vsub.f32 1.0, %v4206_v3  ;;  %v2832_v59 = vmul.f32 %v4206_v3, %v2731_v30  ;;  %v3127_v30 = vld [vmem:[#allocation10 + $0x8] sm:$0xff] }
0x3353   :  { %4028 = vmatpush3.msra.mxu1 %v3127_v30 }
0x3354   :  { %4029 = vmatprep.subr.mxu1 %v4359_v22 }
0x3355   :  { %4030 = vmatpush3.msra.mxu1 %v3126_v47 }
0x3356   :  { %4045 = vmatprep.subr.mxu1 %v4359_v22 }
0x33a4   :  { %v2817_v1 = vpop.permute.xlu0 %2816 }
0x33a5   :  { %v2819_v21 = vmul.f32 %v4206_v3, %v2817_v1  ;;  %v3292_v3 = vld [vmem:[%s5270_s13 + $0x18] sm:$0xff]  ;;  %v3291_v1 = vld [vmem:[%s5270_s13 + $0x10] sm:$0xff] }
0x33a7   :  { %2821 = vrot.lane.b32.xlu1 %v2819_v21, %s4360_s19  ;;  %v3290_v21 = vld [vmem:[%s5270_s13 + $0x8] sm:$0xff] }
0x3419   :  { %v2822_v35 = vpop.permute.xlu1 %2821 }
0x341a   :  { %v2824_v56 = vadd.f32 %v2822_v35, %v2187_v33  ;;  %v3289_v35 = vld [vmem:[%s5270_s13] sm:$0xff] }
0x341c   :  { %4207 = vtanh.f32 %v2824_v56 }
0x3429   :  { %v4208_v58 = vpop.eup %4207 }
0x342a   :  { %2828 = vrot.lane.b32.xlu0 %v4208_v58, %s4361_s11 }
0x349c   :  { %v2829_v55 = vpop.permute.xlu0 %2828 }
0x349d   :  { %v2831_v48 = vmul.f32 %v2829_v55, %v2826_v24  ;;  %v3485_v55 = vld [vmem:[%s5269_s12] ss:$0 sm:$0xff] }
0x349f   :  { %v5188_v60 = vadd.f32 %v2832_v59, %v2831_v48 }
0x34a1   :  { %2835 = vrot.lane.b32.xlu1 %v5188_v60, %s4361_s11 }
0x3513   :  { %v2836_v49 = vpop.permute.xlu1 %2835 }
0x3514   :  { %3999 = vmatmul.mubr.msk.f32.vlgmr.msra.gmra.mxu0 %vm482_vm10, %v2836_v49  ;;  %v3486_v49 = vld [vmem:[%s5271_s14] ss:$0 sm:$0xff] }
0x3515   :  { %4013 = vmatpush3.msra.mxu0 %v2940_v29  ;;  %4020 = vmatprep.mubr.msk.f32.mxu0 %vm4362_vm9, %v4359_v22 }
0x3516   :  { %4014 = vmatprep.subr.mxu0 %v4359_v22 }
0x3517   :  { %4015 = vmatpush3.msra.mxu0 %v2939_v62 }
0x3518   :  { %4016 = vmatprep.subr.mxu0 %v4359_v22 }
0x3519   :  { %4017 = vmatpush3.msra.mxu0 %v2938_v63 }
0x351a   :  { %4018 = vmatprep.subr.mxu0 %v4359_v22 }
0x351b   :  { %4019 = vmatpush3.msra.mxu0 %v2937_v50 }
0x351c   :  { %4021 = vmatmul.mubr.msk.f32.vlgmr.msra.gmra.mxu0 %vm482_vm10, %v5079_v20  ;;  %4034 = vmatprep.subr.mxu0 %v4359_v22 }
0x351d   :  { %4042 = vmatprep.mubr.msk.f32.mxu0 %vm4362_vm9, %v4359_v22  ;;  %4035 = vmatpush3.msra.mxu0 %v3125_v13 }
0x351e   :  { %4036 = vmatprep.subr.mxu0 %v4359_v22 }
0x351f   :  { %4037 = vmatpush3.msra.mxu0 %v3124_v14 }
0x3520   :  { %4038 = vmatprep.subr.mxu0 %v4359_v22 }
0x3521   :  { %4039 = vmatpush3.msra.mxu0 %v3123_v44 }
0x3522   :  { %4040 = vmatprep.subr.mxu0 %v4359_v22 }
0x3523   :  { %4041 = vmatpush3.msra.mxu0 %v3122_v15 }
0x35d4   :  { %v2905_v61 = vpop.f32.mrf.mxu0 }
0x35d5   :  { %v2916_v26 = vadd.f32 %v2905_v61, %v5069_v10  ;;  %v3481_v10 = vld [vmem:[%s5266_s9 + $0x1] ss:$0 sm:$0xff]  ;;  %v2909_v40 = vadd.f32 %v2905_v61, %v2188_v54 }
0x35d6   :  { %v4000_v2 = vpop.f32.mrf.mxu0 }
0x35d7   :  { %2918 = vrot.lane.b32.xlu0 %v2916_v26, %s4360_s19  ;;  %v3475_v4 = vmul.f32 -1.442695, %v2909_v40 }
0x35dc   :  { %v3082_v7 = vpop.f32.mrf.mxu0 }
0x35dd   :  { %v3083_v5 = vadd.f32 %v3082_v7, %v3012_v0 }
0x35de   :  { %v4022_v38 = vpop.f32.mrf.mxu0 }
0x35df   :  { %v3094_v51 = vadd.f32 %v3479_v31, %v3083_v5 }
0x35e1   :  { %v3482_v20 = vmul.f32 -1.442695, %v3094_v51 }
0x35e3   :  { %4209 = vpow2.f32 %v3482_v20 }
0x35f0   :  { %v4210_v34 = vpop.eup %4209 }
0x35f1   :  { %v3106_v8 = vadd.f32 1.0, %v4210_v34 }
0x35f3   :  { %4211 = vrcp.f32 %v3106_v8 }
0x35f4   :  { %4213 = vpow2.f32 %v3475_v4 }
0x3600   :  { %v4212_v52 = vpop.eup %4211 }
0x3601   :  { %v3109_v28 = vmul.f32 %v4212_v52, %v3481_v10  ;;  %v4214_v41 = vpop.eup %4213  ;;  %v3116_v16 = vsub.f32 1.0, %v4212_v52 }
0x3602   :  { %v2913_v37 = vadd.f32 1.0, %v4214_v41 }
0x3603   :  { %3111 = vrot.lane.b32.xlu0 %v3109_v28, %s4360_s19 }
0x3604   :  { %4215 = vrcp.f32 %v2913_v37 }
0x3611   :  { %v4216_v27 = vpop.eup %4215 }
0x3612   :  { %v2928_v18 = vsub.f32 1.0, %v4216_v27  ;;  %v2934_v33 = vmul.f32 %v4216_v27, %v5188_v60 }
0x3649   :  { %v2919_v11 = vpop.permute.xlu0 %2918 }
0x364a   :  { %v2921_v53 = vmul.f32 %v4216_v27, %v2919_v11 }
0x364c   :  { %2923 = vrot.lane.b32.xlu1 %v2921_v53, %s4360_s19 }
0x3675   :  { %v3112_v32 = vpop.permute.xlu0 %3111 }
0x3676   :  { %v3114_v25 = vadd.f32 %v3112_v32, %v3094_v51 }
0x3678   :  { %4217 = vtanh.f32 %v3114_v25 }
0x3685   :  { %v4218_v42 = vpop.eup %4217 }
0x3686   :  { %3118 = vrot.lane.b32.xlu0 %v4218_v42, %s4361_s11 }
0x36be   :  { %v2924_v6 = vpop.permute.xlu1 %2923 }
0x36bf   :  { %v2926_v46 = vadd.f32 %v2924_v6, %v2188_v54 }
0x36c1   :  { %4219 = vtanh.f32 %v2926_v46 }
0x36ce   :  { %v4220_v43 = vpop.eup %4219 }
0x36cf   :  { %2930 = vrot.lane.b32.xlu1 %v4220_v43, %s4361_s11 }
0x36f8   :  { %v3119_v17 = vpop.permute.xlu0 %3118 }
0x36f9   :  { %v3121_v0 = vmul.f32 %v3119_v17, %v3116_v16 }
0x36fb   :  { %3131 = vrot.lane.b32.xlu1 %v3121_v0, %s4361_s11 }
0x3741   :  { %v2931_v36 = vpop.permute.xlu1 %2930 }
0x3742   :  { %v2933_v19 = vmul.f32 %v2931_v36, %v2928_v18 }
0x3744   :  { %v2935_v45 = vadd.f32 %v2934_v33, %v2933_v19 }
0x3746   :  { %3206 = vrot.lane.b32.xlu0 %v2935_v45, %s4361_s11 }
0x376d   :  { %v3132_v23 = vpop.permute.xlu1 %3131 }
0x376e   :  { %4032 = vmatmul.mubr.msk.f32.vlgmr.msra.gmra.mxu1 %vm482_vm10, %v3132_v23 }
0x376f   :  { %4053 = vmatprep.mubr.msk.f32.mxu1 %vm4362_vm9, %v4359_v22  ;;  %4046 = vmatpush3.msra.mxu1 %v3292_v3 }
0x3770   :  { %4047 = vmatprep.subr.mxu1 %v4359_v22 }
0x3771   :  { %4048 = vmatpush3.msra.mxu1 %v3291_v1 }
0x3772   :  { %4049 = vmatprep.subr.mxu1 %v4359_v22 }
0x3773   :  { %4050 = vmatpush3.msra.mxu1 %v3290_v21 }
0x3774   :  { %4051 = vmatprep.subr.mxu1 %v4359_v22 }
0x3775   :  { %4052 = vmatpush3.msra.mxu1 %v3289_v35 }
0x37b8   :  { %v3207_v39 = vpop.permute.xlu0 %3206 }
0x37b9   :  { %4043 = vmatmul.mubr.msk.f32.vlgmr.msra.gmra.mxu0 %vm482_vm10, %v3207_v39 }
0x382e   :  { %v3201_v56 = vpop.f32.mrf.mxu1 }
0x3830   :  { %v4033_v58 = vpop.f32.mrf.mxu1 }
0x3879   :  { %v3276_v24 = vpop.f32.mrf.mxu0 }
0x387a   :  { %v3277_v59 = vadd.f32 %v3276_v24, %v3201_v56 }
0x387b   :  { %v4044_v48 = vpop.f32.mrf.mxu0 }
0x387c   :  { %v3287_v60 = vadd.f32 %v3485_v55, %v3277_v59 }
0x387e   :  { %v3288_v29 = vmax.f32 %v3287_v60, 0.0 }
0x3880   :  { %4054 = vmatmul.mubr.msk.f32.vlgmr.msra.gmra.mxu1 %vm482_vm10, %v3288_v29 }
0x3940   :  { %v3369_v62 = vpop.f32.mrf.mxu1 }
0x3941   :  { %v3370_v22 = vadd.f32 %v3486_v49, %v3369_v62 }
0x3942   :  { %v4055_v63 = vpop.f32.mrf.mxu1 }
0x3943   :  { %3374 = vst.msk [vmem:[%s5272_s15] sm:$0xff] %vm3373_vm11, %v3370_v22 }
0x3944   :  { %3379 = vsyncpa [#allocation3], 1 }
0x3945   :  { %3380 = vsyncpa [#allocation5], 1 }
0x3946   :  { %3381 = vsyncpa [#allocation8], 1 }
0x3947   :  { %3382 = vsyncpa [#allocation11], 1 }

</bundles_post_ra>
